<compile_context>
chip_gen: v5e
topology: v5e:2x2
jax: 0.10.0
libtpu: 0.0.40
codegen_flags: <defaults>
</compile_context>

<pallas_src>
import math
from functools import partial

import jax
import jax.numpy as jnp
import numpy as np
from jax.experimental import pallas as pl
from jax.experimental.pallas import tpu as pltpu

EPS = 1e-6
NEG_INF = -1.0e9                     # matches torch masked_fill(-1000000000.0)
VMEM_LIMIT = 28 * 1024 * 1024        # < v7x 32 MiB scoped default, safe on v5e/v6e
FFN_RESIDENT_BUDGET = 20 * 1024 * 1024


# ----------------------------- helpers ------------------------------

def _cparams(*sem):
    return pltpu.CompilerParams(dimension_semantics=tuple(sem),
                                vmem_limit_bytes=VMEM_LIMIT)


def _pick_tile(n, cap=512):
    """Largest row tile <= cap that divides n and is a multiple of 8 (else n)."""
    if n <= cap:
        return n
    for c in range(cap, 7, -8):
        if n % c == 0:
            return c
    return n


def _layernorm(x, a, b):
    # torch.std semantics: unbiased variance, eps added to std (not variance).
    n = x.shape[-1]
    mean = jnp.mean(x, axis=-1, keepdims=True)
    d = x - mean
    var = jnp.sum(d * d, axis=-1, keepdims=True) / (n - 1)
    return a * d / (jnp.sqrt(var) + EPS) + b


# ----------------------------- in-kernel building blocks ------------------------------

def _prep_heads(kvef, base, wo_ref, kp_ref, vwo_ref, heads, dim_k, lin_dim,
                use_linear):
    """Fill per-head scratch once per batch (hoisted out of the q-tile loop):
         kp_ref[h]  = e_h^T k_h          (L, dk)   [or k_h itself for full attn]
         vwo_ref[h] = (f_h^T v_h) @ Wo_h (L, E)    [or v_h @ Wo_h]
    `kvef` columns are laid out [k | v | e | f] starting at `base`."""
    HD = heads * dim_k
    HL = heads * lin_dim
    for h in range(heads):
        kh = kvef[:, base + h * dim_k:base + (h + 1) * dim_k]
        vh = kvef[:, base + HD + h * dim_k:base + HD + (h + 1) * dim_k]
        woh = wo_ref[h * dim_k:(h + 1) * dim_k, :]          # (dk, E) sublane slice
        if use_linear:
            eh = kvef[:, base + 2 * HD + h * lin_dim:
                      base + 2 * HD + (h + 1) * lin_dim]
            fh = kvef[:, base + 2 * HD + HL + h * lin_dim:
                      base + 2 * HD + HL + (h + 1) * lin_dim]
            kp_ref[h] = jnp.einsum('sl,sd->ld', eh, kh,
                                   preferred_element_type=jnp.float32)
            vp = jnp.einsum('sl,sd->ld', fh, vh,
                            preferred_element_type=jnp.float32)
            vwo_ref[h] = jnp.dot(vp, woh, preferred_element_type=jnp.float32)
        else:
            kp_ref[h] = kh
            vwo_ref[h] = jnp.dot(vh, woh, preferred_element_type=jnp.float32)


def _attn_core(q, mask_bias, kp_ref, vwo_ref, heads, dim_k, out_dim):
    """Per-q-tile attention using the precomputed per-head scratch.  The output
    projection is accumulated per head (no lane concat of head contexts).
    `q` is already scaled by 1/sqrt(dim_k) (folded into Wq)."""
    tq = q.shape[0]
    acc = jnp.zeros((tq, out_dim), jnp.float32)
    for h in range(heads):
        qh = q[:, h * dim_k:(h + 1) * dim_k]
        s = jnp.einsum('qd,nd->qn', qh, kp_ref[h],
                       preferred_element_type=jnp.float32)
        s = s + mask_bias                       # additive mask bias (0 / -1e9)
        s = s - jnp.max(s, axis=-1, keepdims=True)
        p = jnp.exp(s)
        p = p / jnp.sum(p, axis=-1, keepdims=True)   # exact divide for parity
        acc = acc + jnp.dot(p, vwo_ref[h], preferred_element_type=jnp.float32)
    return acc


# ----------------------------- Pallas kernels ------------------------------

def _norm_proj_kernel(x_ref, a_ref, g_ref, w_ref, b_ref, o_ref):
    normed = _layernorm(x_ref[0], a_ref[...], g_ref[...])
    o_ref[0] = jnp.dot(normed, w_ref[...],
                       preferred_element_type=jnp.float32) + b_ref[...]


def _self_attn_kernel(q_ref, kv_ref, mb_ref, res_ref, wo_ref, bo_ref,
                      n2a_ref, n2b_ref, wq2_ref, bq2_ref,
                      x_ref, q2_ref, kp_ref, vwo_ref, *,
                      heads, dim_k, lin_dim, use_linear):
    HD = heads * dim_k

    @pl.when(pl.program_id(1) == 0)          # once per batch: build kp / vwo
    def _prep():
        _prep_heads(kv_ref[0], HD, wo_ref, kp_ref, vwo_ref,
                    heads, dim_k, lin_dim, use_linear)

    q = q_ref[0][:, :HD]                      # Q columns of the fused projection
    acc = _attn_core(q, mb_ref[0], kp_ref, vwo_ref, heads, dim_k,
                     out_dim=wo_ref.shape[1])
    x_tile = res_ref[0] + acc + bo_ref[...]   # out-proj bias + residual
    x_ref[0] = x_tile
    # fused epilogue: norm_2 + cross-attention Q projection (Wq2 pre-scaled)
    nrm = _layernorm(x_tile, n2a_ref[...], n2b_ref[...])
    q2_ref[0] = jnp.dot(nrm, wq2_ref[...],
                        preferred_element_type=jnp.float32) + bq2_ref[...]


def _cross_attn_kernel(q_ref, en_ref, wkv_ref, bkv_ref, mb_ref, res_ref,
                       wo_ref, bo_ref, x_ref, kp_ref, vwo_ref, *,
                       heads, dim_k, lin_dim, use_linear):
    @pl.when(pl.program_id(1) == 0)          # once per batch: encoder KVEF proj
    def _prep():
        kvef = jnp.dot(en_ref[0], wkv_ref[...],
                       preferred_element_type=jnp.float32) + bkv_ref[...]
        _prep_heads(kvef, 0, wo_ref, kp_ref, vwo_ref,
                    heads, dim_k, lin_dim, use_linear)

    acc = _attn_core(q_ref[0], mb_ref[0], kp_ref, vwo_ref, heads, dim_k,
                     out_dim=wo_ref.shape[1])
    x_ref[0] = res_ref[0] + acc + bo_ref[...]


def _ffn_kernel(x_ref, a_ref, g_ref, w1_ref, b1_ref, w2_ref, b2_ref, o_ref):
    x = x_ref[0]
    nrm = _layernorm(x, a_ref[...], g_ref[...])
    h = jnp.dot(nrm, w1_ref[...], preferred_element_type=jnp.float32) + b1_ref[...]
    h = jnp.maximum(h, 0.0)
    o_ref[0] = x + jnp.dot(h, w2_ref[...],
                           preferred_element_type=jnp.float32) + b2_ref[...]


def _ffn_tiled_kernel(x_ref, a_ref, g_ref, w1_ref, b1_ref, w2_ref, b2_ref,
                      o_ref, nrm_ref, acc_ref):
    # fallback when FF weights do not fit the VMEM budget (e.g. huge FF on v7x)
    f = pl.program_id(2)

    @pl.when(f == 0)
    def _init():
        nrm_ref[...] = _layernorm(x_ref[0], a_ref[...], g_ref[...])
        acc_ref[...] = jnp.zeros_like(acc_ref)

    h = jnp.dot(nrm_ref[...], w1_ref[...],
                preferred_element_type=jnp.float32) + b1_ref[...]
    h = jnp.maximum(h, 0.0)
    acc_ref[...] += jnp.dot(h, w2_ref[...], preferred_element_type=jnp.float32)

    @pl.when(f == pl.num_programs(2) - 1)
    def _fin():
        o_ref[0] = x_ref[0] + acc_ref[...] + b2_ref[...]


# ----------------------------- Pallas wrappers ------------------------------

def pallas_norm_proj(x, alpha, beta, w, b):
    B, S, E = x.shape
    N = w.shape[1]
    ts = _pick_tile(S)
    return pl.pallas_call(
        _norm_proj_kernel,
        out_shape=jax.ShapeDtypeStruct((B, S, N), jnp.float32),
        grid=(B, S // ts),
        in_specs=[pl.BlockSpec((1, ts, E), lambda b, i: (b, i, 0)),
                  pl.BlockSpec((1, E), lambda b, i: (0, 0)),
                  pl.BlockSpec((1, E), lambda b, i: (0, 0)),
                  pl.BlockSpec((E, N), lambda b, i: (0, 0)),
                  pl.BlockSpec((1, N), lambda b, i: (0, 0))],
        out_specs=pl.BlockSpec((1, ts, N), lambda b, i: (b, i, 0)),
        compiler_params=_cparams("parallel", "parallel"),
    )(x, alpha.reshape(1, E), beta.reshape(1, E), w, b)


def _mask_spec(mask_bias, tq, n_att):
    if mask_bias.shape[1] == 1:                     # broadcast (source) mask
        return pl.BlockSpec((1, 1, n_att), lambda b, i: (b, 0, 0))
    return pl.BlockSpec((1, tq, n_att), lambda b, i: (b, i, 0))


def pallas_self_attention(qkvef, mask_bias, residual, wo, bo,
                          n2a, n2b, wq2, bq2, *, heads, dim_k, lin_dim):
    B, Sq, W = qkvef.shape
    E = residual.shape[2]
    HD = heads * dim_k
    use_linear = lin_dim < Sq                       # reference: e.shape[-1] < Skv
    n_att = lin_dim if use_linear else Sq
    assert mask_bias.shape[2] == n_att
    tq = _pick_tile(Sq, 256)

    kernel = partial(_self_attn_kernel, heads=heads, dim_k=dim_k,
                     lin_dim=lin_dim, use_linear=use_linear)
    return pl.pallas_call(
        kernel,
        out_shape=(jax.ShapeDtypeStruct((B, Sq, E), jnp.float32),
                   jax.ShapeDtypeStruct((B, Sq, HD), jnp.float32)),
        grid=(B, Sq // tq),
        in_specs=[
            # same HBM array passed twice: q-tile window + per-batch resident KV
            pl.BlockSpec((1, tq, W), lambda b, i: (b, i, 0)),
            pl.BlockSpec((1, Sq, W), lambda b, i: (b, 0, 0)),
            _mask_spec(mask_bias, tq, n_att),
            pl.BlockSpec((1, tq, E), lambda b, i: (b, i, 0)),
            pl.BlockSpec((HD, E), lambda b, i: (0, 0)),
            pl.BlockSpec((1, E), lambda b, i: (0, 0)),
            pl.BlockSpec((1, E), lambda b, i: (0, 0)),
            pl.BlockSpec((1, E), lambda b, i: (0, 0)),
            pl.BlockSpec((E, HD), lambda b, i: (0, 0)),
            pl.BlockSpec((1, HD), lambda b, i: (0, 0))],
        out_specs=(pl.BlockSpec((1, tq, E), lambda b, i: (b, i, 0)),
                   pl.BlockSpec((1, tq, HD), lambda b, i: (b, i, 0))),
        scratch_shapes=[pltpu.VMEM((heads, n_att, dim_k), jnp.float32),
                        pltpu.VMEM((heads, n_att, E), jnp.float32)],
        compiler_params=_cparams("parallel", "arbitrary"),
    )(qkvef, qkvef, mask_bias, residual, wo, bo,
      n2a.reshape(1, E), n2b.reshape(1, E), wq2, bq2)


def pallas_cross_attention(q, en_out, w_kvef, b_kvef, mask_bias, residual,
                           wo, bo, *, heads, dim_k, lin_dim):
    B, Sq, HD = q.shape
    Skv, E = en_out.shape[1], en_out.shape[2]
    WK = w_kvef.shape[1]
    use_linear = lin_dim < Skv
    n_att = lin_dim if use_linear else Skv
    assert mask_bias.shape[2] == n_att
    tq = _pick_tile(Sq, 256)

    kernel = partial(_cross_attn_kernel, heads=heads, dim_k=dim_k,
                     lin_dim=lin_dim, use_linear=use_linear)
    return pl.pallas_call(
        kernel,
        out_shape=jax.ShapeDtypeStruct((B, Sq, E), jnp.float32),
        grid=(B, Sq // tq),
        in_specs=[pl.BlockSpec((1, tq, HD), lambda b, i: (b, i, 0)),
                  pl.BlockSpec((1, Skv, E), lambda b, i: (b, 0, 0)),
                  pl.BlockSpec((E, WK), lambda b, i: (0, 0)),
                  pl.BlockSpec((1, WK), lambda b, i: (0, 0)),
                  _mask_spec(mask_bias, tq, n_att),
                  pl.BlockSpec((1, tq, E), lambda b, i: (b, i, 0)),
                  pl.BlockSpec((HD, E), lambda b, i: (0, 0)),
                  pl.BlockSpec((1, E), lambda b, i: (0, 0))],
        out_specs=pl.BlockSpec((1, tq, E), lambda b, i: (b, i, 0)),
        scratch_shapes=[pltpu.VMEM((heads, n_att, dim_k), jnp.float32),
                        pltpu.VMEM((heads, n_att, E), jnp.float32)],
        compiler_params=_cparams("parallel", "arbitrary"),
    )(q, en_out, w_kvef, b_kvef, mask_bias, residual, wo, bo)


def pallas_ffn(x, alpha, beta, w1, b1, w2, b2):
    B, S, E = x.shape
    F = w1.shape[1]
    ts = _pick_tile(S)
    # VMEM working set if the whole hidden dim stays resident (double-buffered)
    resident_bytes = 4 * (2 * (2 * E * F + F + 3 * E) + 4 * ts * E + ts * F)
    if resident_bytes <= FFN_RESIDENT_BUDGET:
        return pl.pallas_call(
            _ffn_kernel,
            out_shape=jax.ShapeDtypeStruct((B, S, E), jnp.float32),
            grid=(B, S // ts),
            in_specs=[pl.BlockSpec((1, ts, E), lambda b, i: (b, i, 0)),
                      pl.BlockSpec((1, E), lambda b, i: (0, 0)),
                      pl.BlockSpec((1, E), lambda b, i: (0, 0)),
                      pl.BlockSpec((E, F), lambda b, i: (0, 0)),
                      pl.BlockSpec((1, F), lambda b, i: (0, 0)),
                      pl.BlockSpec((F, E), lambda b, i: (0, 0)),
                      pl.BlockSpec((1, E), lambda b, i: (0, 0))],
            out_specs=pl.BlockSpec((1, ts, E), lambda b, i: (b, i, 0)),
            compiler_params=_cparams("parallel", "parallel"),
        )(x, alpha.reshape(1, E), beta.reshape(1, E), w1, b1, w2, b2)

    tf = 512 if F % 512 == 0 else F                 # hidden-dim tiling fallback
    return pl.pallas_call(
        _ffn_tiled_kernel,
        out_shape=jax.ShapeDtypeStruct((B, S, E), jnp.float32),
        grid=(B, S // ts, F // tf),
        in_specs=[pl.BlockSpec((1, ts, E), lambda b, i, f: (b, i, 0)),
                  pl.BlockSpec((1, E), lambda b, i, f: (0, 0)),
                  pl.BlockSpec((1, E), lambda b, i, f: (0, 0)),
                  pl.BlockSpec((E, tf), lambda b, i, f: (0, f)),
                  pl.BlockSpec((1, tf), lambda b, i, f: (0, f)),
                  pl.BlockSpec((tf, E), lambda b, i, f: (f, 0)),
                  pl.BlockSpec((1, E), lambda b, i, f: (0, 0))],
        out_specs=pl.BlockSpec((1, ts, E), lambda b, i, f: (b, i, 0)),
        scratch_shapes=[pltpu.VMEM((ts, E), jnp.float32),
                        pltpu.VMEM((ts, E), jnp.float32)],
        compiler_params=_cparams("parallel", "parallel", "arbitrary"),
    )(x, alpha.reshape(1, E), beta.reshape(1, E), w1, b1, w2, b2)


# ----------------------------- Parameter preparation (once, outside forward) -----------

def prepare_layer(params, *, heads, dim_k, lin_dim):
    """Fold all per-forward-invariant fusions once:
       - compose E/F into the K/V projections (e = x@(Wk@We) + (bk@We + be)),
       - fold 1/sqrt(dim_k) into the Q projections,
       - concatenate into the fused [Q|K|V|E|F] / [K|V|E|F] matmuls."""
    s = 1.0 / math.sqrt(dim_k)
    p1, p2 = params['attn1'], params['attn2']
    prep = {
        'w_qkvef1': jnp.concatenate(
            [p1['wq'] * s, p1['wk'], p1['wv'],
             p1['wk'] @ p1['we'], p1['wv'] @ p1['wf']], axis=1),
        'b_qkvef1': jnp.concatenate(
            [p1['bq'] * s, p1['bk'], p1['bv'],
             p1['bk'] @ p1['we'] + p1['be'],
             p1['bv'] @ p1['wf'] + p1['bf']], axis=1),
        'wo1': p1['wo'], 'bo1': p1['bo'],
        'wq2': p2['wq'] * s, 'bq2': p2['bq'] * s,
        'w_kvef2': jnp.concatenate(
            [p2['wk'], p2['wv'], p2['wk'] @ p2['we'], p2['wv'] @ p2['wf']], axis=1),
        'b_kvef2': jnp.concatenate(
            [p2['bk'], p2['bv'], p2['bk'] @ p2['we'] + p2['be'],
             p2['bv'] @ p2['wf'] + p2['bf']], axis=1),
        'wo2': p2['wo'], 'bo2': p2['bo'],
    }
    for k in ('n1_a', 'n1_b', 'n2_a', 'n2_b', 'n3_a', 'n3_b',
              'ff_w1', 'ff_b1', 'ff_w2', 'ff_b2'):
        prep[k] = params[k]
    return prep


# ----------------------------- Forward pass ------------------------------

def linformer_decoder_layer(prep, de_out, de_mask, en_out, en_mask, *,
                            heads, dim_k, lin_dim):
    B, Sq, E = de_out.shape
    Skv = en_out.shape[1]

    # mask -> additive bias (narrowed to the Linformer width when active)
    n1 = lin_dim if lin_dim < Sq else Sq
    n2 = lin_dim if lin_dim < Skv else Skv
    mb1 = jnp.where(de_mask[:, :, :n1] == 0, NEG_INF, 0.0).astype(jnp.float32)
    mb2 = jnp.where(en_mask[:, :, :n2] == 0, NEG_INF, 0.0).astype(jnp.float32)

    # launch 1: norm_1 + fused [Q*scale | K | V | E | F] projection
    qkvef = pallas_norm_proj(de_out, prep['n1_a'], prep['n1_b'],
                             prep['w_qkvef1'], prep['b_qkvef1'])

    # launch 2: self attention + residual, fused with norm_2 + cross-attn Q proj
    x, q2 = pallas_self_attention(qkvef, mb1, de_out, prep['wo1'], prep['bo1'],
                                  prep['n2_a'], prep['n2_b'],
                                  prep['wq2'], prep['bq2'],
                                  heads=heads, dim_k=dim_k, lin_dim=lin_dim)

    # launch 3: cross attention (encoder KVEF projection fused in-kernel) + residual
    x = pallas_cross_attention(q2, en_out, prep['w_kvef2'], prep['b_kvef2'],
                               mb2, x, prep['wo2'], prep['bo2'],
                               heads=heads, dim_k=dim_k, lin_dim=lin_dim)

    # launch 4: norm_3 + FFN + residual
    return pallas_ffn(x, prep['n3_a'], prep['n3_b'],
                      prep['ff_w1'], prep['ff_b1'],
                      prep['ff_w2'], prep['ff_b2'])


# ----------------------------- Parameter init ------------------------------

def _init_linear(key, in_f, out_f):
    kw, kb = jax.random.split(key)
    bound = 1.0 / math.sqrt(in_f)
    w = jax.random.uniform(kw, (in_f, out_f), jnp.float32, -bound, bound)
    b = jax.random.uniform(kb, (1, out_f), jnp.float32, -bound, bound)
    return w, b


def init_params(key, emb_dim, linear_dim, heads, ff_dim):
    dim_k = emb_dim // heads
    keys = jax.random.split(key, 4)
    params = {}
    for name, kk in zip(('attn1', 'attn2'), (keys[0], keys[1])):
        ks = jax.random.split(kk, 6)
        p = {}
        p['wq'], p['bq'] = _init_linear(ks[0], emb_dim, dim_k * heads)
        p['wk'], p['bk'] = _init_linear(ks[1], emb_dim, dim_k * heads)
        p['wv'], p['bv'] = _init_linear(ks[2], emb_dim, dim_k * heads)
        p['we'], p['be'] = _init_linear(ks[3], emb_dim, linear_dim * heads)
        p['wf'], p['bf'] = _init_linear(ks[4], emb_dim, linear_dim * heads)
        p['wo'], p['bo'] = _init_linear(ks[5], dim_k * heads, emb_dim)
        params[name] = p
    for i in (1, 2, 3):
        params[f'n{i}_a'] = jnp.ones((emb_dim,), jnp.float32)
        params[f'n{i}_b'] = jnp.zeros((emb_dim,), jnp.float32)
    params['ff_w1'], params['ff_b1'] = _init_linear(keys[2], emb_dim, ff_dim)
    params['ff_w2'], params['ff_b2'] = _init_linear(keys[3], ff_dim, emb_dim)
    return params


# ----------------------------- Pure-JAX reference ------------------------------

def _ref_norm(x, a, b):
    mean = x.mean(-1, keepdims=True)
    d = x - mean
    std = jnp.sqrt((d * d).sum(-1, keepdims=True) / (x.shape[-1] - 1))
    return a * d / (std + EPS) + b


def _ref_mha(p, q_in, k_in, v_in, mask, H, dk, L):
    B, Sq, E = q_in.shape
    Skv = k_in.shape[1]
    q = q_in @ p['wq'] + p['bq']
    k = k_in @ p['wk'] + p['bk']
    v = v_in @ p['wv'] + p['bv']
    e = k @ p['we'] + p['be']
    f = v @ p['wf'] + p['bf']
    q = q.reshape(B, Sq, H, dk).transpose(0, 2, 1, 3)
    k = k.reshape(B, Skv, H, dk).transpose(0, 2, 1, 3)
    v = v.reshape(B, Skv, H, dk).transpose(0, 2, 1, 3)
    e = e.reshape(B, Skv, H, L).transpose(0, 2, 1, 3)
    f = f.reshape(B, Skv, H, L).transpose(0, 2, 1, 3)
    if L < Skv:
        kproj = jnp.einsum('bhsl,bhsd->bhld', e, k)
        scores = jnp.einsum('bhqd,bhld->bhql', q, kproj) / math.sqrt(dk)
        scores = jnp.where(mask[:, :, :L][:, None] == 0, NEG_INF, scores)
        pa = jax.nn.softmax(scores, -1)
        vproj = jnp.einsum('bhsl,bhsd->bhld', f, v)
        attn = jnp.einsum('bhql,bhld->bhqd', pa, vproj)
    else:
        scores = jnp.einsum('bhqd,bhkd->bhqk', q, k) / math.sqrt(dk)
        scores = jnp.where(mask[:, None] == 0, NEG_INF, scores)
        pa = jax.nn.softmax(scores, -1)
        attn = jnp.einsum('bhqk,bhkd->bhqd', pa, v)
    concat = attn.transpose(0, 2, 1, 3).reshape(B, Sq, H * dk)
    return concat @ p['wo'] + p['bo']


def _ref_decoder(params, de_out, de_mask, en_out, en_mask, H, dk, L):
    x = de_out
    nrm = _ref_norm(x, params['n1_a'], params['n1_b'])
    x = x + _ref_mha(params['attn1'], nrm, nrm, nrm, de_mask, H, dk, L)
    nrm = _ref_norm(x, params['n2_a'], params['n2_b'])
    x = x + _ref_mha(params['attn2'], nrm, en_out, en_out, en_mask, H, dk, L)
    nrm = _ref_norm(x, params['n3_a'], params['n3_b'])
    h = jnp.maximum(nrm @ params['ff_w1'] + params['ff_b1'], 0.0)
    return x + (h @ params['ff_w2'] + params['ff_b2'])


# ----------------------------- Main ------------------------------

if __name__ == "__main__":
    B, S_DE, S_EN = 2, 8, 8
    EMB, HEADS, LIN_DIM, FF_DIM = 32, 4, 4, 2048
    DIM_K = EMB // HEADS      # 8 ; LIN_DIM < S -> Linformer linearAttention path

    key = jax.random.PRNGKey(0)
    kparam, kd, ke = jax.random.split(key, 3)
    params = init_params(kparam, EMB, LIN_DIM, HEADS, FF_DIM)
    prep = prepare_layer(params, heads=HEADS, dim_k=DIM_K, lin_dim=LIN_DIM)

    de_out = jax.random.normal(kd, (B, S_DE, EMB), jnp.float32)
    en_out = jax.random.normal(ke, (B, S_EN, EMB), jnp.float32)
    de_mask = jnp.tile(jnp.tril(jnp.ones((S_DE, S_DE), jnp.float32))[None], (B, 1, 1))
    en_mask = jnp.ones((B, 1, S_EN), jnp.float32)

    fwd = jax.jit(partial(linformer_decoder_layer,
                          heads=HEADS, dim_k=DIM_K, lin_dim=LIN_DIM))
    out = jax.block_until_ready(fwd(prep, de_out, de_mask, en_out, en_mask))

    ref = _ref_decoder(params, de_out, de_mask, en_out, en_mask, HEADS, DIM_K, LIN_DIM)
    np.testing.assert_allclose(np.asarray(out), np.asarray(ref), rtol=2e-4, atol=2e-4)
    print("KERNEL_OK")
</pallas_src>

<mosaic_0001>
module attributes {stable_mosaic.version = 11 : i64} {
  func.func @_norm_proj_kernel(%arg0: i32, %arg1: i32, %arg2: memref<1x8x32xf32, #tpu.memory_space<vmem>>, %arg3: memref<1x32xf32, #tpu.memory_space<vmem>>, %arg4: memref<1x32xf32, #tpu.memory_space<vmem>>, %arg5: memref<32x128xf32, #tpu.memory_space<vmem>>, %arg6: memref<1x128xf32, #tpu.memory_space<vmem>>, %arg7: memref<1x8x128xf32, #tpu.memory_space<vmem>>) attributes {dimension_semantics = [#tpu.dimension_semantics<parallel>, #tpu.dimension_semantics<parallel>], iteration_bounds = array<i64: 2, 1>, scalar_prefetch = 0 : i64, scratch_operands = 0 : i64, tpu.core_type = #tpu.core_type<tc>, window_params = [{transform_indices = @transform_0, window_bounds = array<i64: 1, 8, 32>}, {pipeline_mode = #tpu.pipeline_mode<synchronous>, transform_indices = @transform_1, window_bounds = array<i64: 1, 32>}, {pipeline_mode = #tpu.pipeline_mode<synchronous>, transform_indices = @transform_2, window_bounds = array<i64: 1, 32>}, {pipeline_mode = #tpu.pipeline_mode<synchronous>, transform_indices = @transform_3, window_bounds = array<i64: 32, 128>}, {pipeline_mode = #tpu.pipeline_mode<synchronous>, transform_indices = @transform_4, window_bounds = array<i64: 1, 128>}, {transform_indices = @transform_5, window_bounds = array<i64: 1, 8, 128>}]} {
    %c0 = arith.constant 0 : index
    %c0_0 = arith.constant 0 : index
    %c0_1 = arith.constant 0 : index
    %0 = vector.load %arg2[%c0, %c0_0, %c0_1] : memref<1x8x32xf32, #tpu.memory_space<vmem>>, vector<1x8x32xf32>
    %1 = vector.shape_cast %0 : vector<1x8x32xf32> to vector<8x32xf32>
    %c0_2 = arith.constant 0 : index
    %c0_3 = arith.constant 0 : index
    %2 = vector.load %arg3[%c0_2, %c0_3] : memref<1x32xf32, #tpu.memory_space<vmem>>, vector<1x32xf32>
    %c0_4 = arith.constant 0 : index
    %c0_5 = arith.constant 0 : index
    %3 = vector.load %arg4[%c0_4, %c0_5] : memref<1x32xf32, #tpu.memory_space<vmem>>, vector<1x32xf32>
    %cst = arith.constant dense<0.000000e+00> : vector<8xf32>
    %4 = vector.multi_reduction <add>, %1, %cst [1] : vector<8x32xf32> to vector<8xf32>
    %5 = vector.shape_cast %4 : vector<8xf32> to vector<8x1xf32>
    %cst_6 = arith.constant 3.200000e+01 : f32
    %6 = vector.broadcast %cst_6 : f32 to vector<8x1xf32>
    %7 = arith.divf %5, %6 : vector<8x1xf32>
    %8 = vector.broadcast %7 : vector<8x1xf32> to vector<8x32xf32>
    %9 = arith.subf %1, %8 : vector<8x32xf32>
    %10 = arith.mulf %9, %9 : vector<8x32xf32>
    %cst_7 = arith.constant dense<0.000000e+00> : vector<8xf32>
    %11 = vector.multi_reduction <add>, %10, %cst_7 [1] : vector<8x32xf32> to vector<8xf32>
    %12 = vector.shape_cast %11 : vector<8xf32> to vector<8x1xf32>
    %cst_8 = arith.constant 3.100000e+01 : f32
    %13 = vector.broadcast %cst_8 : f32 to vector<8x1xf32>
    %14 = arith.divf %12, %13 : vector<8x1xf32>
    %15 = vector.broadcast %2 : vector<1x32xf32> to vector<8x32xf32>
    %16 = arith.mulf %15, %9 : vector<8x32xf32>
    %17 = math.sqrt %14 : vector<8x1xf32>
    %cst_9 = arith.constant 9.99999997E-7 : f32
    %18 = vector.broadcast %cst_9 : f32 to vector<8x1xf32>
    %19 = arith.addf %17, %18 : vector<8x1xf32>
    %20 = vector.broadcast %19 : vector<8x1xf32> to vector<8x32xf32>
    %21 = arith.divf %16, %20 : vector<8x32xf32>
    %22 = vector.broadcast %3 : vector<1x32xf32> to vector<8x32xf32>
    %23 = arith.addf %21, %22 : vector<8x32xf32>
    %c0_10 = arith.constant 0 : index
    %c0_11 = arith.constant 0 : index
    %24 = vector.load %arg5[%c0_10, %c0_11] : memref<32x128xf32, #tpu.memory_space<vmem>>, vector<32x128xf32>
    %cst_12 = arith.constant dense<0.000000e+00> : vector<8x128xf32>
    %25 = tpu.matmul %23, %24, %cst_12 {dimension_numbers = #tpu.dot_dimension_numbers<[1], [0], [0], [1], [0, 0, 1, 1], [], []>} : vector<8x32xf32>, vector<32x128xf32>, vector<8x128xf32> -> vector<8x128xf32>
    %c0_13 = arith.constant 0 : index
    %c0_14 = arith.constant 0 : index
    %26 = vector.load %arg6[%c0_13, %c0_14] : memref<1x128xf32, #tpu.memory_space<vmem>>, vector<1x128xf32>
    %27 = vector.broadcast %26 : vector<1x128xf32> to vector<8x128xf32>
    %28 = arith.addf %25, %27 : vector<8x128xf32>
    %c0_15 = arith.constant 0 : index
    %c0_16 = arith.constant 0 : index
    %c0_17 = arith.constant 0 : index
    %29 = vector.load %arg7[%c0_15, %c0_16, %c0_17] : memref<1x8x128xf32, #tpu.memory_space<vmem>>, vector<1x8x128xf32>
    %30 = vector.shape_cast %29 : vector<1x8x128xf32> to vector<8x128xf32>
    %31 = vector.shape_cast %28 : vector<8x128xf32> to vector<1x8x128xf32>
    tpu.vector_store %arg7[%c0_15, %c0_16, %c0_17], %31 {strides = array<i32>} : memref<1x8x128xf32, #tpu.memory_space<vmem>>, vector<1x8x128xf32>,
    return
  }
  func.func @transform_0(%arg0: i32, %arg1: i32) -> (i32, i32, i32) {
    %c0_i32 = arith.constant 0 : i32
    %c0_i32_0 = arith.constant 0 : i32
    return %arg0, %arg1, %c0_i32 : i32, i32, i32
  }
  func.func @transform_1(%arg0: i32, %arg1: i32) -> (i32, i32) {
    %c0_i32 = arith.constant 0 : i32
    %c0_i32_0 = arith.constant 0 : i32
    %c0_i32_1 = arith.constant 0 : i32
    return %c0_i32, %c0_i32_0 : i32, i32
  }
  func.func @transform_2(%arg0: i32, %arg1: i32) -> (i32, i32) {
    %c0_i32 = arith.constant 0 : i32
    %c0_i32_0 = arith.constant 0 : i32
    %c0_i32_1 = arith.constant 0 : i32
    return %c0_i32, %c0_i32_0 : i32, i32
  }
  func.func @transform_3(%arg0: i32, %arg1: i32) -> (i32, i32) {
    %c0_i32 = arith.constant 0 : i32
    %c0_i32_0 = arith.constant 0 : i32
    %c0_i32_1 = arith.constant 0 : i32
    return %c0_i32, %c0_i32_0 : i32, i32
  }
  func.func @transform_4(%arg0: i32, %arg1: i32) -> (i32, i32) {
    %c0_i32 = arith.constant 0 : i32
    %c0_i32_0 = arith.constant 0 : i32
    %c0_i32_1 = arith.constant 0 : i32
    return %c0_i32, %c0_i32_0 : i32, i32
  }
  func.func @transform_5(%arg0: i32, %arg1: i32) -> (i32, i32, i32) {
    %c0_i32 = arith.constant 0 : i32
    %c0_i32_0 = arith.constant 0 : i32
    return %arg0, %arg1, %c0_i32 : i32, i32, i32
  }
}

module attributes {stable_mosaic.version = 11 : i64} {
  func.func @_self_attn_kernel(%arg0: i32, %arg1: i32, %arg2: memref<1x8x128xf32, #tpu.memory_space<vmem>>, %arg3: memref<1x8x128xf32, #tpu.memory_space<vmem>>, %arg4: memref<1x8x4xf32, #tpu.memory_space<vmem>>, %arg5: memref<1x8x32xf32, #tpu.memory_space<vmem>>, %arg6: memref<32x32xf32, #tpu.memory_space<vmem>>, %arg7: memref<1x32xf32, #tpu.memory_space<vmem>>, %arg8: memref<1x32xf32, #tpu.memory_space<vmem>>, %arg9: memref<1x32xf32, #tpu.memory_space<vmem>>, %arg10: memref<32x32xf32, #tpu.memory_space<vmem>>, %arg11: memref<1x32xf32, #tpu.memory_space<vmem>>, %arg12: memref<1x8x32xf32, #tpu.memory_space<vmem>>, %arg13: memref<1x8x32xf32, #tpu.memory_space<vmem>>, %arg14: memref<4x4x8xf32, #tpu.memory_space<vmem>>, %arg15: memref<4x4x32xf32, #tpu.memory_space<vmem>>) attributes {dimension_semantics = [#tpu.dimension_semantics<parallel>, #tpu.dimension_semantics<arbitrary>], iteration_bounds = array<i64: 2, 1>, scalar_prefetch = 0 : i64, scratch_operands = 2 : i64, tpu.core_type = #tpu.core_type<tc>, window_params = [{transform_indices = @transform_0, window_bounds = array<i64: 1, 8, 128>}, {transform_indices = @transform_1, window_bounds = array<i64: 1, 8, 128>}, {transform_indices = @transform_2, window_bounds = array<i64: 1, 8, 4>}, {transform_indices = @transform_3, window_bounds = array<i64: 1, 8, 32>}, {pipeline_mode = #tpu.pipeline_mode<synchronous>, transform_indices = @transform_4, window_bounds = array<i64: 32, 32>}, {pipeline_mode = #tpu.pipeline_mode<synchronous>, transform_indices = @transform_5, window_bounds = array<i64: 1, 32>}, {pipeline_mode = #tpu.pipeline_mode<synchronous>, transform_indices = @transform_6, window_bounds = array<i64: 1, 32>}, {pipeline_mode = #tpu.pipeline_mode<synchronous>, transform_indices = @transform_7, window_bounds = array<i64: 1, 32>}, {pipeline_mode = #tpu.pipeline_mode<synchronous>, transform_indices = @transform_8, window_bounds = array<i64: 32, 32>}, {pipeline_mode = #tpu.pipeline_mode<synchronous>, transform_indices = @transform_9, window_bounds = array<i64: 1, 32>}, {transform_indices = @transform_10, window_bounds = array<i64: 1, 8, 32>}, {transform_indices = @transform_11, window_bounds = array<i64: 1, 8, 32>}]} {
    %c0_i32 = arith.constant 0 : i32
    %0 = arith.cmpi eq, %arg1, %c0_i32 : i32
    %1 = arith.extui %0 : i1 to i32
    %c0_i32_0 = arith.constant 0 : i32
    %2 = arith.cmpi ne, %1, %c0_i32_0 : i32
    scf.if %2 {
      %c0_68 = arith.constant 0 : index
      %c0_69 = arith.constant 0 : index
      %c0_70 = arith.constant 0 : index
      %120 = vector.load %arg3[%c0_68, %c0_69, %c0_70] : memref<1x8x128xf32, #tpu.memory_space<vmem>>, vector<1x8x128xf32>
      %121 = vector.shape_cast %120 : vector<1x8x128xf32> to vector<8x128xf32>
      %122 = vector.extract_strided_slice %121 {offsets = [0, 32], sizes = [8, 8], strides = [1, 1]} : vector<8x128xf32> to vector<8x8xf32>
      %123 = vector.extract_strided_slice %121 {offsets = [0, 64], sizes = [8, 8], strides = [1, 1]} : vector<8x128xf32> to vector<8x8xf32>
      %c0_71 = arith.constant 0 : index
      %c0_72 = arith.constant 0 : index
      %124 = vector.load %arg6[%c0_71, %c0_72] : memref<32x32xf32, #tpu.memory_space<vmem>>, vector<8x32xf32>
      %125 = vector.extract_strided_slice %121 {offsets = [0, 96], sizes = [8, 4], strides = [1, 1]} : vector<8x128xf32> to vector<8x4xf32>
      %126 = vector.extract_strided_slice %121 {offsets = [0, 112], sizes = [8, 4], strides = [1, 1]} : vector<8x128xf32> to vector<8x4xf32>
      "tpu.trace_start"() <{level = 10 : i32, message = "sl,sd->ld"}> : () -> ()
      %cst_73 = arith.constant dense<0.000000e+00> : vector<4x8xf32>
      %127 = tpu.matmul %125, %122, %cst_73 {dimension_numbers = #tpu.dot_dimension_numbers<[0], [0], [1], [1], [0, 1, 1, 1], [], []>} : vector<8x4xf32>, vector<8x8xf32>, vector<4x8xf32> -> vector<4x8xf32>
      "tpu.trace_stop"() : () -> ()
      %c0_74 = arith.constant 0 : index
      %c0_75 = arith.constant 0 : index
      %c0_76 = arith.constant 0 : index
      %128 = vector.load %arg14[%c0_74, %c0_75, %c0_76] : memref<4x4x8xf32, #tpu.memory_space<vmem>>, vector<1x4x8xf32>
      %129 = vector.shape_cast %128 : vector<1x4x8xf32> to vector<4x8xf32>
      %130 = vector.shape_cast %127 : vector<4x8xf32> to vector<1x4x8xf32>
      tpu.vector_store %arg14[%c0_74, %c0_75, %c0_76], %130 {strides = array<i32>} : memref<4x4x8xf32, #tpu.memory_space<vmem>>, vector<1x4x8xf32>,
      "tpu.trace_start"() <{level = 10 : i32, message = "sl,sd->ld"}> : () -> ()
      %cst_77 = arith.constant dense<0.000000e+00> : vector<4x8xf32>
      %131 = tpu.matmul %126, %123, %cst_77 {dimension_numbers = #tpu.dot_dimension_numbers<[0], [0], [1], [1], [0, 1, 1, 1], [], []>} : vector<8x4xf32>, vector<8x8xf32>, vector<4x8xf32> -> vector<4x8xf32>
      "tpu.trace_stop"() : () -> ()
      %cst_78 = arith.constant dense<0.000000e+00> : vector<4x32xf32>
      %132 = tpu.matmul %131, %124, %cst_78 {dimension_numbers = #tpu.dot_dimension_numbers<[1], [0], [0], [1], [0, 0, 1, 1], [], []>} : vector<4x8xf32>, vector<8x32xf32>, vector<4x32xf32> -> vector<4x32xf32>
      %c0_79 = arith.constant 0 : index
      %c0_80 = arith.constant 0 : index
      %c0_81 = arith.constant 0 : index
      %133 = vector.load %arg15[%c0_79, %c0_80, %c0_81] : memref<4x4x32xf32, #tpu.memory_space<vmem>>, vector<1x4x32xf32>
      %134 = vector.shape_cast %133 : vector<1x4x32xf32> to vector<4x32xf32>
      %135 = vector.shape_cast %132 : vector<4x32xf32> to vector<1x4x32xf32>
      tpu.vector_store %arg15[%c0_79, %c0_80, %c0_81], %135 {strides = array<i32>} : memref<4x4x32xf32, #tpu.memory_space<vmem>>, vector<1x4x32xf32>,
      %136 = vector.extract_strided_slice %121 {offsets = [0, 40], sizes = [8, 8], strides = [1, 1]} : vector<8x128xf32> to vector<8x8xf32>
      %137 = vector.extract_strided_slice %121 {offsets = [0, 72], sizes = [8, 8], strides = [1, 1]} : vector<8x128xf32> to vector<8x8xf32>
      %c8 = arith.constant 8 : index
      %c0_82 = arith.constant 0 : index
      %138 = vector.load %arg6[%c8, %c0_82] : memref<32x32xf32, #tpu.memory_space<vmem>>, vector<8x32xf32>
      %139 = vector.extract_strided_slice %121 {offsets = [0, 100], sizes = [8, 4], strides = [1, 1]} : vector<8x128xf32> to vector<8x4xf32>
      %140 = vector.extract_strided_slice %121 {offsets = [0, 116], sizes = [8, 4], strides = [1, 1]} : vector<8x128xf32> to vector<8x4xf32>
      "tpu.trace_start"() <{level = 10 : i32, message = "sl,sd->ld"}> : () -> ()
      %cst_83 = arith.constant dense<0.000000e+00> : vector<4x8xf32>
      %141 = tpu.matmul %139, %136, %cst_83 {dimension_numbers = #tpu.dot_dimension_numbers<[0], [0], [1], [1], [0, 1, 1, 1], [], []>} : vector<8x4xf32>, vector<8x8xf32>, vector<4x8xf32> -> vector<4x8xf32>
      "tpu.trace_stop"() : () -> ()
      %c1_84 = arith.constant 1 : index
      %c0_85 = arith.constant 0 : index
      %c0_86 = arith.constant 0 : index
      %142 = vector.load %arg14[%c1_84, %c0_85, %c0_86] : memref<4x4x8xf32, #tpu.memory_space<vmem>>, vector<1x4x8xf32>
      %143 = vector.shape_cast %142 : vector<1x4x8xf32> to vector<4x8xf32>
      %144 = vector.shape_cast %141 : vector<4x8xf32> to vector<1x4x8xf32>
      tpu.vector_store %arg14[%c1_84, %c0_85, %c0_86], %144 {strides = array<i32>} : memref<4x4x8xf32, #tpu.memory_space<vmem>>, vector<1x4x8xf32>,
      "tpu.trace_start"() <{level = 10 : i32, message = "sl,sd->ld"}> : () -> ()
      %cst_87 = arith.constant dense<0.000000e+00> : vector<4x8xf32>
      %145 = tpu.matmul %140, %137, %cst_87 {dimension_numbers = #tpu.dot_dimension_numbers<[0], [0], [1], [1], [0, 1, 1, 1], [], []>} : vector<8x4xf32>, vector<8x8xf32>, vector<4x8xf32> -> vector<4x8xf32>
      "tpu.trace_stop"() : () -> ()
      %cst_88 = arith.constant dense<0.000000e+00> : vector<4x32xf32>
      %146 = tpu.matmul %145, %138, %cst_88 {dimension_numbers = #tpu.dot_dimension_numbers<[1], [0], [0], [1], [0, 0, 1, 1], [], []>} : vector<4x8xf32>, vector<8x32xf32>, vector<4x32xf32> -> vector<4x32xf32>
      %c1_89 = arith.constant 1 : index
      %c0_90 = arith.constant 0 : index
      %c0_91 = arith.constant 0 : index
      %147 = vector.load %arg15[%c1_89, %c0_90, %c0_91] : memref<4x4x32xf32, #tpu.memory_space<vmem>>, vector<1x4x32xf32>
      %148 = vector.shape_cast %147 : vector<1x4x32xf32> to vector<4x32xf32>
      %149 = vector.shape_cast %146 : vector<4x32xf32> to vector<1x4x32xf32>
      tpu.vector_store %arg15[%c1_89, %c0_90, %c0_91], %149 {strides = array<i32>} : memref<4x4x32xf32, #tpu.memory_space<vmem>>, vector<1x4x32xf32>,
      %150 = vector.extract_strided_slice %121 {offsets = [0, 48], sizes = [8, 8], strides = [1, 1]} : vector<8x128xf32> to vector<8x8xf32>
      %151 = vector.extract_strided_slice %121 {offsets = [0, 80], sizes = [8, 8], strides = [1, 1]} : vector<8x128xf32> to vector<8x8xf32>
      %c16 = arith.constant 16 : index
      %c0_92 = arith.constant 0 : index
      %152 = vector.load %arg6[%c16, %c0_92] : memref<32x32xf32, #tpu.memory_space<vmem>>, vector<8x32xf32>
      %153 = vector.extract_strided_slice %121 {offsets = [0, 104], sizes = [8, 4], strides = [1, 1]} : vector<8x128xf32> to vector<8x4xf32>
      %154 = vector.extract_strided_slice %121 {offsets = [0, 120], sizes = [8, 4], strides = [1, 1]} : vector<8x128xf32> to vector<8x4xf32>
      "tpu.trace_start"() <{level = 10 : i32, message = "sl,sd->ld"}> : () -> ()
      %cst_93 = arith.constant dense<0.000000e+00> : vector<4x8xf32>
      %155 = tpu.matmul %153, %150, %cst_93 {dimension_numbers = #tpu.dot_dimension_numbers<[0], [0], [1], [1], [0, 1, 1, 1], [], []>} : vector<8x4xf32>, vector<8x8xf32>, vector<4x8xf32> -> vector<4x8xf32>
      "tpu.trace_stop"() : () -> ()
      %c2_94 = arith.constant 2 : index
      %c0_95 = arith.constant 0 : index
      %c0_96 = arith.constant 0 : index
      %156 = vector.load %arg14[%c2_94, %c0_95, %c0_96] : memref<4x4x8xf32, #tpu.memory_space<vmem>>, vector<1x4x8xf32>
      %157 = vector.shape_cast %156 : vector<1x4x8xf32> to vector<4x8xf32>
      %158 = vector.shape_cast %155 : vector<4x8xf32> to vector<1x4x8xf32>
      tpu.vector_store %arg14[%c2_94, %c0_95, %c0_96], %158 {strides = array<i32>} : memref<4x4x8xf32, #tpu.memory_space<vmem>>, vector<1x4x8xf32>,
      "tpu.trace_start"() <{level = 10 : i32, message = "sl,sd->ld"}> : () -> ()
      %cst_97 = arith.constant dense<0.000000e+00> : vector<4x8xf32>
      %159 = tpu.matmul %154, %151, %cst_97 {dimension_numbers = #tpu.dot_dimension_numbers<[0], [0], [1], [1], [0, 1, 1, 1], [], []>} : vector<8x4xf32>, vector<8x8xf32>, vector<4x8xf32> -> vector<4x8xf32>
      "tpu.trace_stop"() : () -> ()
      %cst_98 = arith.constant dense<0.000000e+00> : vector<4x32xf32>
      %160 = tpu.matmul %159, %152, %cst_98 {dimension_numbers = #tpu.dot_dimension_numbers<[1], [0], [0], [1], [0, 0, 1, 1], [], []>} : vector<4x8xf32>, vector<8x32xf32>, vector<4x32xf32> -> vector<4x32xf32>
      %c2_99 = arith.constant 2 : index
      %c0_100 = arith.constant 0 : index
      %c0_101 = arith.constant 0 : index
      %161 = vector.load %arg15[%c2_99, %c0_100, %c0_101] : memref<4x4x32xf32, #tpu.memory_space<vmem>>, vector<1x4x32xf32>
      %162 = vector.shape_cast %161 : vector<1x4x32xf32> to vector<4x32xf32>
      %163 = vector.shape_cast %160 : vector<4x32xf32> to vector<1x4x32xf32>
      tpu.vector_store %arg15[%c2_99, %c0_100, %c0_101], %163 {strides = array<i32>} : memref<4x4x32xf32, #tpu.memory_space<vmem>>, vector<1x4x32xf32>,
      %164 = vector.extract_strided_slice %121 {offsets = [0, 56], sizes = [8, 8], strides = [1, 1]} : vector<8x128xf32> to vector<8x8xf32>
      %165 = vector.extract_strided_slice %121 {offsets = [0, 88], sizes = [8, 8], strides = [1, 1]} : vector<8x128xf32> to vector<8x8xf32>
      %c24 = arith.constant 24 : index
      %c0_102 = arith.constant 0 : index
      %166 = vector.load %arg6[%c24, %c0_102] : memref<32x32xf32, #tpu.memory_space<vmem>>, vector<8x32xf32>
      %167 = vector.extract_strided_slice %121 {offsets = [0, 108], sizes = [8, 4], strides = [1, 1]} : vector<8x128xf32> to vector<8x4xf32>
      %168 = vector.extract_strided_slice %121 {offsets = [0, 124], sizes = [8, 4], strides = [1, 1]} : vector<8x128xf32> to vector<8x4xf32>
      "tpu.trace_start"() <{level = 10 : i32, message = "sl,sd->ld"}> : () -> ()
      %cst_103 = arith.constant dense<0.000000e+00> : vector<4x8xf32>
      %169 = tpu.matmul %167, %164, %cst_103 {dimension_numbers = #tpu.dot_dimension_numbers<[0], [0], [1], [1], [0, 1, 1, 1], [], []>} : vector<8x4xf32>, vector<8x8xf32>, vector<4x8xf32> -> vector<4x8xf32>
      "tpu.trace_stop"() : () -> ()
      %c3_104 = arith.constant 3 : index
      %c0_105 = arith.constant 0 : index
      %c0_106 = arith.constant 0 : index
      %170 = vector.load %arg14[%c3_104, %c0_105, %c0_106] : memref<4x4x8xf32, #tpu.memory_space<vmem>>, vector<1x4x8xf32>
      %171 = vector.shape_cast %170 : vector<1x4x8xf32> to vector<4x8xf32>
      %172 = vector.shape_cast %169 : vector<4x8xf32> to vector<1x4x8xf32>
      tpu.vector_store %arg14[%c3_104, %c0_105, %c0_106], %172 {strides = array<i32>} : memref<4x4x8xf32, #tpu.memory_space<vmem>>, vector<1x4x8xf32>,
      "tpu.trace_start"() <{level = 10 : i32, message = "sl,sd->ld"}> : () -> ()
      %cst_107 = arith.constant dense<0.000000e+00> : vector<4x8xf32>
      %173 = tpu.matmul %168, %165, %cst_107 {dimension_numbers = #tpu.dot_dimension_numbers<[0], [0], [1], [1], [0, 1, 1, 1], [], []>} : vector<8x4xf32>, vector<8x8xf32>, vector<4x8xf32> -> vector<4x8xf32>
      "tpu.trace_stop"() : () -> ()
      %cst_108 = arith.constant dense<0.000000e+00> : vector<4x32xf32>
      %174 = tpu.matmul %173, %166, %cst_108 {dimension_numbers = #tpu.dot_dimension_numbers<[1], [0], [0], [1], [0, 0, 1, 1], [], []>} : vector<4x8xf32>, vector<8x32xf32>, vector<4x32xf32> -> vector<4x32xf32>
      %c3_109 = arith.constant 3 : index
      %c0_110 = arith.constant 0 : index
      %c0_111 = arith.constant 0 : index
      %175 = vector.load %arg15[%c3_109, %c0_110, %c0_111] : memref<4x4x32xf32, #tpu.memory_space<vmem>>, vector<1x4x32xf32>
      %176 = vector.shape_cast %175 : vector<1x4x32xf32> to vector<4x32xf32>
      %177 = vector.shape_cast %174 : vector<4x32xf32> to vector<1x4x32xf32>
      tpu.vector_store %arg15[%c3_109, %c0_110, %c0_111], %177 {strides = array<i32>} : memref<4x4x32xf32, #tpu.memory_space<vmem>>, vector<1x4x32xf32>,
    } else {
    }
    %c0 = arith.constant 0 : index
    %c0_1 = arith.constant 0 : index
    %c0_2 = arith.constant 0 : index
    %3 = vector.load %arg2[%c0, %c0_1, %c0_2] : memref<1x8x128xf32, #tpu.memory_space<vmem>>, vector<1x8x128xf32>
    %4 = vector.shape_cast %3 : vector<1x8x128xf32> to vector<8x128xf32>
    %5 = vector.extract_strided_slice %4 {offsets = [0, 0], sizes = [8, 32], strides = [1, 1]} : vector<8x128xf32> to vector<8x32xf32>
    %c0_3 = arith.constant 0 : index
    %c0_4 = arith.constant 0 : index
    %c0_5 = arith.constant 0 : index
    %6 = vector.load %arg4[%c0_3, %c0_4, %c0_5] : memref<1x8x4xf32, #tpu.memory_space<vmem>>, vector<1x8x4xf32>
    %7 = vector.shape_cast %6 : vector<1x8x4xf32> to vector<8x4xf32>
    %cst = arith.constant 0.000000e+00 : f32
    %8 = vector.broadcast %cst : f32 to vector<8x32xf32>
    %9 = vector.extract_strided_slice %5 {offsets = [0, 0], sizes = [8, 8], strides = [1, 1]} : vector<8x32xf32> to vector<8x8xf32>
    %c0_6 = arith.constant 0 : index
    %c0_7 = arith.constant 0 : index
    %c0_8 = arith.constant 0 : index
    %10 = vector.load %arg14[%c0_6, %c0_7, %c0_8] : memref<4x4x8xf32, #tpu.memory_space<vmem>>, vector<1x4x8xf32>
    %11 = vector.shape_cast %10 : vector<1x4x8xf32> to vector<4x8xf32>
    "tpu.trace_start"() <{level = 10 : i32, message = "qd,nd->qn"}> : () -> ()
    %cst_9 = arith.constant dense<0.000000e+00> : vector<8x4xf32>
    %12 = tpu.matmul %9, %11, %cst_9 {dimension_numbers = #tpu.dot_dimension_numbers<[1], [1], [0], [0], [0, 0, 1, 0], [], []>} : vector<8x8xf32>, vector<4x8xf32>, vector<8x4xf32> -> vector<8x4xf32>
    "tpu.trace_stop"() : () -> ()
    %13 = arith.addf %12, %7 : vector<8x4xf32>
    %cst_10 = arith.constant dense<0xFF800000> : vector<8xf32>
    %14 = vector.multi_reduction <maximumf>, %13, %cst_10 [1] : vector<8x4xf32> to vector<8xf32>
    %15 = vector.shape_cast %14 : vector<8xf32> to vector<8x1xf32>
    %16 = vector.broadcast %15 : vector<8x1xf32> to vector<8x4xf32>
    %17 = arith.subf %13, %16 : vector<8x4xf32>
    %18 = math.exp %17 : vector<8x4xf32>
    %cst_11 = arith.constant dense<0.000000e+00> : vector<8xf32>
    %19 = vector.multi_reduction <add>, %18, %cst_11 [1] : vector<8x4xf32> to vector<8xf32>
    %20 = vector.shape_cast %19 : vector<8xf32> to vector<8x1xf32>
    %21 = vector.broadcast %20 : vector<8x1xf32> to vector<8x4xf32>
    %22 = arith.divf %18, %21 : vector<8x4xf32>
    %c0_12 = arith.constant 0 : index
    %c0_13 = arith.constant 0 : index
    %c0_14 = arith.constant 0 : index
    %23 = vector.load %arg15[%c0_12, %c0_13, %c0_14] : memref<4x4x32xf32, #tpu.memory_space<vmem>>, vector<1x4x32xf32>
    %24 = vector.shape_cast %23 : vector<1x4x32xf32> to vector<4x32xf32>
    %cst_15 = arith.constant dense<0.000000e+00> : vector<8x32xf32>
    %25 = tpu.matmul %22, %24, %cst_15 {dimension_numbers = #tpu.dot_dimension_numbers<[1], [0], [0], [1], [0, 0, 1, 1], [], []>} : vector<8x4xf32>, vector<4x32xf32>, vector<8x32xf32> -> vector<8x32xf32>
    %26 = arith.addf %8, %25 : vector<8x32xf32>
    %27 = vector.extract_strided_slice %5 {offsets = [0, 8], sizes = [8, 8], strides = [1, 1]} : vector<8x32xf32> to vector<8x8xf32>
    %c1 = arith.constant 1 : index
    %c0_16 = arith.constant 0 : index
    %c0_17 = arith.constant 0 : index
    %28 = vector.load %arg14[%c1, %c0_16, %c0_17] : memref<4x4x8xf32, #tpu.memory_space<vmem>>, vector<1x4x8xf32>
    %29 = vector.shape_cast %28 : vector<1x4x8xf32> to vector<4x8xf32>
    "tpu.trace_start"() <{level = 10 : i32, message = "qd,nd->qn"}> : () -> ()
    %cst_18 = arith.constant dense<0.000000e+00> : vector<8x4xf32>
    %30 = tpu.matmul %27, %29, %cst_18 {dimension_numbers = #tpu.dot_dimension_numbers<[1], [1], [0], [0], [0, 0, 1, 0], [], []>} : vector<8x8xf32>, vector<4x8xf32>, vector<8x4xf32> -> vector<8x4xf32>
    "tpu.trace_stop"() : () -> ()
    %31 = arith.addf %30, %7 : vector<8x4xf32>
    %cst_19 = arith.constant dense<0xFF800000> : vector<8xf32>
    %32 = vector.multi_reduction <maximumf>, %31, %cst_19 [1] : vector<8x4xf32> to vector<8xf32>
    %33 = vector.shape_cast %32 : vector<8xf32> to vector<8x1xf32>
    %34 = vector.broadcast %33 : vector<8x1xf32> to vector<8x4xf32>
    %35 = arith.subf %31, %34 : vector<8x4xf32>
    %36 = math.exp %35 : vector<8x4xf32>
    %cst_20 = arith.constant dense<0.000000e+00> : vector<8xf32>
    %37 = vector.multi_reduction <add>, %36, %cst_20 [1] : vector<8x4xf32> to vector<8xf32>
    %38 = vector.shape_cast %37 : vector<8xf32> to vector<8x1xf32>
    %39 = vector.broadcast %38 : vector<8x1xf32> to vector<8x4xf32>
    %40 = arith.divf %36, %39 : vector<8x4xf32>
    %c1_21 = arith.constant 1 : index
    %c0_22 = arith.constant 0 : index
    %c0_23 = arith.constant 0 : index
    %41 = vector.load %arg15[%c1_21, %c0_22, %c0_23] : memref<4x4x32xf32, #tpu.memory_space<vmem>>, vector<1x4x32xf32>
    %42 = vector.shape_cast %41 : vector<1x4x32xf32> to vector<4x32xf32>
    %cst_24 = arith.constant dense<0.000000e+00> : vector<8x32xf32>
    %43 = tpu.matmul %40, %42, %cst_24 {dimension_numbers = #tpu.dot_dimension_numbers<[1], [0], [0], [1], [0, 0, 1, 1], [], []>} : vector<8x4xf32>, vector<4x32xf32>, vector<8x32xf32> -> vector<8x32xf32>
    %44 = arith.addf %26, %43 : vector<8x32xf32>
    %45 = vector.extract_strided_slice %5 {offsets = [0, 16], sizes = [8, 8], strides = [1, 1]} : vector<8x32xf32> to vector<8x8xf32>
    %c2 = arith.constant 2 : index
    %c0_25 = arith.constant 0 : index
    %c0_26 = arith.constant 0 : index
    %46 = vector.load %arg14[%c2, %c0_25, %c0_26] : memref<4x4x8xf32, #tpu.memory_space<vmem>>, vector<1x4x8xf32>
    %47 = vector.shape_cast %46 : vector<1x4x8xf32> to vector<4x8xf32>
    "tpu.trace_start"() <{level = 10 : i32, message = "qd,nd->qn"}> : () -> ()
    %cst_27 = arith.constant dense<0.000000e+00> : vector<8x4xf32>
    %48 = tpu.matmul %45, %47, %cst_27 {dimension_numbers = #tpu.dot_dimension_numbers<[1], [1], [0], [0], [0, 0, 1, 0], [], []>} : vector<8x8xf32>, vector<4x8xf32>, vector<8x4xf32> -> vector<8x4xf32>
    "tpu.trace_stop"() : () -> ()
    %49 = arith.addf %48, %7 : vector<8x4xf32>
    %cst_28 = arith.constant dense<0xFF800000> : vector<8xf32>
    %50 = vector.multi_reduction <maximumf>, %49, %cst_28 [1] : vector<8x4xf32> to vector<8xf32>
    %51 = vector.shape_cast %50 : vector<8xf32> to vector<8x1xf32>
    %52 = vector.broadcast %51 : vector<8x1xf32> to vector<8x4xf32>
    %53 = arith.subf %49, %52 : vector<8x4xf32>
    %54 = math.exp %53 : vector<8x4xf32>
    %cst_29 = arith.constant dense<0.000000e+00> : vector<8xf32>
    %55 = vector.multi_reduction <add>, %54, %cst_29 [1] : vector<8x4xf32> to vector<8xf32>
    %56 = vector.shape_cast %55 : vector<8xf32> to vector<8x1xf32>
    %57 = vector.broadcast %56 : vector<8x1xf32> to vector<8x4xf32>
    %58 = arith.divf %54, %57 : vector<8x4xf32>
    %c2_30 = arith.constant 2 : index
    %c0_31 = arith.constant 0 : index
    %c0_32 = arith.constant 0 : index
    %59 = vector.load %arg15[%c2_30, %c0_31, %c0_32] : memref<4x4x32xf32, #tpu.memory_space<vmem>>, vector<1x4x32xf32>
    %60 = vector.shape_cast %59 : vector<1x4x32xf32> to vector<4x32xf32>
    %cst_33 = arith.constant dense<0.000000e+00> : vector<8x32xf32>
    %61 = tpu.matmul %58, %60, %cst_33 {dimension_numbers = #tpu.dot_dimension_numbers<[1], [0], [0], [1], [0, 0, 1, 1], [], []>} : vector<8x4xf32>, vector<4x32xf32>, vector<8x32xf32> -> vector<8x32xf32>
    %62 = arith.addf %44, %61 : vector<8x32xf32>
    %63 = vector.extract_strided_slice %5 {offsets = [0, 24], sizes = [8, 8], strides = [1, 1]} : vector<8x32xf32> to vector<8x8xf32>
    %c3 = arith.constant 3 : index
    %c0_34 = arith.constant 0 : index
    %c0_35 = arith.constant 0 : index
    %64 = vector.load %arg14[%c3, %c0_34, %c0_35] : memref<4x4x8xf32, #tpu.memory_space<vmem>>, vector<1x4x8xf32>
    %65 = vector.shape_cast %64 : vector<1x4x8xf32> to vector<4x8xf32>
    "tpu.trace_start"() <{level = 10 : i32, message = "qd,nd->qn"}> : () -> ()
    %cst_36 = arith.constant dense<0.000000e+00> : vector<8x4xf32>
    %66 = tpu.matmul %63, %65, %cst_36 {dimension_numbers = #tpu.dot_dimension_numbers<[1], [1], [0], [0], [0, 0, 1, 0], [], []>} : vector<8x8xf32>, vector<4x8xf32>, vector<8x4xf32> -> vector<8x4xf32>
    "tpu.trace_stop"() : () -> ()
    %67 = arith.addf %66, %7 : vector<8x4xf32>
    %cst_37 = arith.constant dense<0xFF800000> : vector<8xf32>
    %68 = vector.multi_reduction <maximumf>, %67, %cst_37 [1] : vector<8x4xf32> to vector<8xf32>
    %69 = vector.shape_cast %68 : vector<8xf32> to vector<8x1xf32>
    %70 = vector.broadcast %69 : vector<8x1xf32> to vector<8x4xf32>
    %71 = arith.subf %67, %70 : vector<8x4xf32>
    %72 = math.exp %71 : vector<8x4xf32>
    %cst_38 = arith.constant dense<0.000000e+00> : vector<8xf32>
    %73 = vector.multi_reduction <add>, %72, %cst_38 [1] : vector<8x4xf32> to vector<8xf32>
    %74 = vector.shape_cast %73 : vector<8xf32> to vector<8x1xf32>
    %75 = vector.broadcast %74 : vector<8x1xf32> to vector<8x4xf32>
    %76 = arith.divf %72, %75 : vector<8x4xf32>
    %c3_39 = arith.constant 3 : index
    %c0_40 = arith.constant 0 : index
    %c0_41 = arith.constant 0 : index
    %77 = vector.load %arg15[%c3_39, %c0_40, %c0_41] : memref<4x4x32xf32, #tpu.memory_space<vmem>>, vector<1x4x32xf32>
    %78 = vector.shape_cast %77 : vector<1x4x32xf32> to vector<4x32xf32>
    %cst_42 = arith.constant dense<0.000000e+00> : vector<8x32xf32>
    %79 = tpu.matmul %76, %78, %cst_42 {dimension_numbers = #tpu.dot_dimension_numbers<[1], [0], [0], [1], [0, 0, 1, 1], [], []>} : vector<8x4xf32>, vector<4x32xf32>, vector<8x32xf32> -> vector<8x32xf32>
    %80 = arith.addf %62, %79 : vector<8x32xf32>
    %c0_43 = arith.constant 0 : index
    %c0_44 = arith.constant 0 : index
    %c0_45 = arith.constant 0 : index
    %81 = vector.load %arg5[%c0_43, %c0_44, %c0_45] : memref<1x8x32xf32, #tpu.memory_space<vmem>>, vector<1x8x32xf32>
    %82 = vector.shape_cast %81 : vector<1x8x32xf32> to vector<8x32xf32>
    %83 = arith.addf %82, %80 : vector<8x32xf32>
    %c0_46 = arith.constant 0 : index
    %c0_47 = arith.constant 0 : index
    %84 = vector.load %arg7[%c0_46, %c0_47] : memref<1x32xf32, #tpu.memory_space<vmem>>, vector<1x32xf32>
    %85 = vector.broadcast %84 : vector<1x32xf32> to vector<8x32xf32>
    %86 = arith.addf %83, %85 : vector<8x32xf32>
    %c0_48 = arith.constant 0 : index
    %c0_49 = arith.constant 0 : index
    %c0_50 = arith.constant 0 : index
    %87 = vector.load %arg12[%c0_48, %c0_49, %c0_50] : memref<1x8x32xf32, #tpu.memory_space<vmem>>, vector<1x8x32xf32>
    %88 = vector.shape_cast %87 : vector<1x8x32xf32> to vector<8x32xf32>
    %89 = vector.shape_cast %86 : vector<8x32xf32> to vector<1x8x32xf32>
    tpu.vector_store %arg12[%c0_48, %c0_49, %c0_50], %89 {strides = array<i32>} : memref<1x8x32xf32, #tpu.memory_space<vmem>>, vector<1x8x32xf32>,
    %c0_51 = arith.constant 0 : index
    %c0_52 = arith.constant 0 : index
    %90 = vector.load %arg8[%c0_51, %c0_52] : memref<1x32xf32, #tpu.memory_space<vmem>>, vector<1x32xf32>
    %c0_53 = arith.constant 0 : index
    %c0_54 = arith.constant 0 : index
    %91 = vector.load %arg9[%c0_53, %c0_54] : memref<1x32xf32, #tpu.memory_space<vmem>>, vector<1x32xf32>
    %cst_55 = arith.constant dense<0.000000e+00> : vector<8xf32>
    %92 = vector.multi_reduction <add>, %86, %cst_55 [1] : vector<8x32xf32> to vector<8xf32>
    %93 = vector.shape_cast %92 : vector<8xf32> to vector<8x1xf32>
    %cst_56 = arith.constant 3.200000e+01 : f32
    %94 = vector.broadcast %cst_56 : f32 to vector<8x1xf32>
    %95 = arith.divf %93, %94 : vector<8x1xf32>
    %96 = vector.broadcast %95 : vector<8x1xf32> to vector<8x32xf32>
    %97 = arith.subf %86, %96 : vector<8x32xf32>
    %98 = arith.mulf %97, %97 : vector<8x32xf32>
    %cst_57 = arith.constant dense<0.000000e+00> : vector<8xf32>
    %99 = vector.multi_reduction <add>, %98, %cst_57 [1] : vector<8x32xf32> to vector<8xf32>
    %100 = vector.shape_cast %99 : vector<8xf32> to vector<8x1xf32>
    %cst_58 = arith.constant 3.100000e+01 : f32
    %101 = vector.broadcast %cst_58 : f32 to vector<8x1xf32>
    %102 = arith.divf %100, %101 : vector<8x1xf32>
    %103 = vector.broadcast %90 : vector<1x32xf32> to vector<8x32xf32>
    %104 = arith.mulf %103, %97 : vector<8x32xf32>
    %105 = math.sqrt %102 : vector<8x1xf32>
    %cst_59 = arith.constant 9.99999997E-7 : f32
    %106 = vector.broadcast %cst_59 : f32 to vector<8x1xf32>
    %107 = arith.addf %105, %106 : vector<8x1xf32>
    %108 = vector.broadcast %107 : vector<8x1xf32> to vector<8x32xf32>
    %109 = arith.divf %104, %108 : vector<8x32xf32>
    %110 = vector.broadcast %91 : vector<1x32xf32> to vector<8x32xf32>
    %111 = arith.addf %109, %110 : vector<8x32xf32>
    %c0_60 = arith.constant 0 : index
    %c0_61 = arith.constant 0 : index
    %112 = vector.load %arg10[%c0_60, %c0_61] : memref<32x32xf32, #tpu.memory_space<vmem>>, vector<32x32xf32>
    %cst_62 = arith.constant dense<0.000000e+00> : vector<8x32xf32>
    %113 = tpu.matmul %111, %112, %cst_62 {dimension_numbers = #tpu.dot_dimension_numbers<[1], [0], [0], [1], [0, 0, 1, 1], [], []>} : vector<8x32xf32>, vector<32x32xf32>, vector<8x32xf32> -> vector<8x32xf32>
    %c0_63 = arith.constant 0 : index
    %c0_64 = arith.constant 0 : index
    %114 = vector.load %arg11[%c0_63, %c0_64] : memref<1x32xf32, #tpu.memory_space<vmem>>, vector<1x32xf32>
    %115 = vector.broadcast %114 : vector<1x32xf32> to vector<8x32xf32>
    %116 = arith.addf %113, %115 : vector<8x32xf32>
    %c0_65 = arith.constant 0 : index
    %c0_66 = arith.constant 0 : index
    %c0_67 = arith.constant 0 : index
    %117 = vector.load %arg13[%c0_65, %c0_66, %c0_67] : memref<1x8x32xf32, #tpu.memory_space<vmem>>, vector<1x8x32xf32>
    %118 = vector.shape_cast %117 : vector<1x8x32xf32> to vector<8x32xf32>
    %119 = vector.shape_cast %116 : vector<8x32xf32> to vector<1x8x32xf32>
    tpu.vector_store %arg13[%c0_65, %c0_66, %c0_67], %119 {strides = array<i32>} : memref<1x8x32xf32, #tpu.memory_space<vmem>>, vector<1x8x32xf32>,
    return
  }
  func.func @transform_0(%arg0: i32, %arg1: i32) -> (i32, i32, i32) {
    %c0_i32 = arith.constant 0 : i32
    %c0_i32_0 = arith.constant 0 : i32
    return %arg0, %arg1, %c0_i32 : i32, i32, i32
  }
  func.func @transform_1(%arg0: i32, %arg1: i32) -> (i32, i32, i32) {
    %c0_i32 = arith.constant 0 : i32
    %c0_i32_0 = arith.constant 0 : i32
    %c0_i32_1 = arith.constant 0 : i32
    return %arg0, %c0_i32, %c0_i32_0 : i32, i32, i32
  }
  func.func @transform_2(%arg0: i32, %arg1: i32) -> (i32, i32, i32) {
    %c0_i32 = arith.constant 0 : i32
    %c0_i32_0 = arith.constant 0 : i32
    return %arg0, %arg1, %c0_i32 : i32, i32, i32
  }
  func.func @transform_3(%arg0: i32, %arg1: i32) -> (i32, i32, i32) {
    %c0_i32 = arith.constant 0 : i32
    %c0_i32_0 = arith.constant 0 : i32
    return %arg0, %arg1, %c0_i32 : i32, i32, i32
  }
  func.func @transform_4(%arg0: i32, %arg1: i32) -> (i32, i32) {
    %c0_i32 = arith.constant 0 : i32
    %c0_i32_0 = arith.constant 0 : i32
    %c0_i32_1 = arith.constant 0 : i32
    return %c0_i32, %c0_i32_0 : i32, i32
  }
  func.func @transform_5(%arg0: i32, %arg1: i32) -> (i32, i32) {
    %c0_i32 = arith.constant 0 : i32
    %c0_i32_0 = arith.constant 0 : i32
    %c0_i32_1 = arith.constant 0 : i32
    return %c0_i32, %c0_i32_0 : i32, i32
  }
  func.func @transform_6(%arg0: i32, %arg1: i32) -> (i32, i32) {
    %c0_i32 = arith.constant 0 : i32
    %c0_i32_0 = arith.constant 0 : i32
    %c0_i32_1 = arith.constant 0 : i32
    return %c0_i32, %c0_i32_0 : i32, i32
  }
  func.func @transform_7(%arg0: i32, %arg1: i32) -> (i32, i32) {
    %c0_i32 = arith.constant 0 : i32
    %c0_i32_0 = arith.constant 0 : i32
    %c0_i32_1 = arith.constant 0 : i32
    return %c0_i32, %c0_i32_0 : i32, i32
  }
  func.func @transform_8(%arg0: i32, %arg1: i32) -> (i32, i32) {
    %c0_i32 = arith.constant 0 : i32
    %c0_i32_0 = arith.constant 0 : i32
    %c0_i32_1 = arith.constant 0 : i32
    return %c0_i32, %c0_i32_0 : i32, i32
  }
  func.func @transform_9(%arg0: i32, %arg1: i32) -> (i32, i32) {
    %c0_i32 = arith.constant 0 : i32
    %c0_i32_0 = arith.constant 0 : i32
    %c0_i32_1 = arith.constant 0 : i32
    return %c0_i32, %c0_i32_0 : i32, i32
  }
  func.func @transform_10(%arg0: i32, %arg1: i32) -> (i32, i32, i32) {
    %c0_i32 = arith.constant 0 : i32
    %c0_i32_0 = arith.constant 0 : i32
    return %arg0, %arg1, %c0_i32 : i32, i32, i32
  }
  func.func @transform_11(%arg0: i32, %arg1: i32) -> (i32, i32, i32) {
    %c0_i32 = arith.constant 0 : i32
    %c0_i32_0 = arith.constant 0 : i32
    return %arg0, %arg1, %c0_i32 : i32, i32, i32
  }
}

module attributes {stable_mosaic.version = 11 : i64} {
  func.func @_cross_attn_kernel(%arg0: i32, %arg1: i32, %arg2: memref<1x8x32xf32, #tpu.memory_space<vmem>>, %arg3: memref<1x8x32xf32, #tpu.memory_space<vmem>>, %arg4: memref<32x96xf32, #tpu.memory_space<vmem>>, %arg5: memref<1x96xf32, #tpu.memory_space<vmem>>, %arg6: memref<1x1x4xf32, #tpu.memory_space<vmem>>, %arg7: memref<1x8x32xf32, #tpu.memory_space<vmem>>, %arg8: memref<32x32xf32, #tpu.memory_space<vmem>>, %arg9: memref<1x32xf32, #tpu.memory_space<vmem>>, %arg10: memref<1x8x32xf32, #tpu.memory_space<vmem>>, %arg11: memref<4x4x8xf32, #tpu.memory_space<vmem>>, %arg12: memref<4x4x32xf32, #tpu.memory_space<vmem>>) attributes {dimension_semantics = [#tpu.dimension_semantics<parallel>, #tpu.dimension_semantics<arbitrary>], iteration_bounds = array<i64: 2, 1>, scalar_prefetch = 0 : i64, scratch_operands = 2 : i64, tpu.core_type = #tpu.core_type<tc>, window_params = [{transform_indices = @transform_0, window_bounds = array<i64: 1, 8, 32>}, {transform_indices = @transform_1, window_bounds = array<i64: 1, 8, 32>}, {pipeline_mode = #tpu.pipeline_mode<synchronous>, transform_indices = @transform_2, window_bounds = array<i64: 32, 96>}, {pipeline_mode = #tpu.pipeline_mode<synchronous>, transform_indices = @transform_3, window_bounds = array<i64: 1, 96>}, {transform_indices = @transform_4, window_bounds = array<i64: 1, 1, 4>}, {transform_indices = @transform_5, window_bounds = array<i64: 1, 8, 32>}, {pipeline_mode = #tpu.pipeline_mode<synchronous>, transform_indices = @transform_6, window_bounds = array<i64: 32, 32>}, {pipeline_mode = #tpu.pipeline_mode<synchronous>, transform_indices = @transform_7, window_bounds = array<i64: 1, 32>}, {transform_indices = @transform_8, window_bounds = array<i64: 1, 8, 32>}]} {
    %c0_i32 = arith.constant 0 : i32
    %0 = arith.cmpi eq, %arg1, %c0_i32 : i32
    %1 = arith.extui %0 : i1 to i32
    %c0_i32_0 = arith.constant 0 : i32
    %2 = arith.cmpi ne, %1, %c0_i32_0 : i32
    scf.if %2 {
      %c0_51 = arith.constant 0 : index
      %c0_52 = arith.constant 0 : index
      %c0_53 = arith.constant 0 : index
      %93 = vector.load %arg3[%c0_51, %c0_52, %c0_53] : memref<1x8x32xf32, #tpu.memory_space<vmem>>, vector<1x8x32xf32>
      %94 = vector.shape_cast %93 : vector<1x8x32xf32> to vector<8x32xf32>
      %c0_54 = arith.constant 0 : index
      %c0_55 = arith.constant 0 : index
      %95 = vector.load %arg4[%c0_54, %c0_55] : memref<32x96xf32, #tpu.memory_space<vmem>>, vector<32x96xf32>
      %cst_56 = arith.constant dense<0.000000e+00> : vector<8x96xf32>
      %96 = tpu.matmul %94, %95, %cst_56 {dimension_numbers = #tpu.dot_dimension_numbers<[1], [0], [0], [1], [0, 0, 1, 1], [], []>} : vector<8x32xf32>, vector<32x96xf32>, vector<8x96xf32> -> vector<8x96xf32>
      %c0_57 = arith.constant 0 : index
      %c0_58 = arith.constant 0 : index
      %97 = vector.load %arg5[%c0_57, %c0_58] : memref<1x96xf32, #tpu.memory_space<vmem>>, vector<1x96xf32>
      %98 = vector.broadcast %97 : vector<1x96xf32> to vector<8x96xf32>
      %99 = arith.addf %96, %98 : vector<8x96xf32>
      %100 = vector.extract_strided_slice %99 {offsets = [0, 0], sizes = [8, 8], strides = [1, 1]} : vector<8x96xf32> to vector<8x8xf32>
      %101 = vector.extract_strided_slice %99 {offsets = [0, 32], sizes = [8, 8], strides = [1, 1]} : vector<8x96xf32> to vector<8x8xf32>
      %c0_59 = arith.constant 0 : index
      %c0_60 = arith.constant 0 : index
      %102 = vector.load %arg8[%c0_59, %c0_60] : memref<32x32xf32, #tpu.memory_space<vmem>>, vector<8x32xf32>
      %103 = vector.extract_strided_slice %99 {offsets = [0, 64], sizes = [8, 4], strides = [1, 1]} : vector<8x96xf32> to vector<8x4xf32>
      %104 = vector.extract_strided_slice %99 {offsets = [0, 80], sizes = [8, 4], strides = [1, 1]} : vector<8x96xf32> to vector<8x4xf32>
      "tpu.trace_start"() <{level = 10 : i32, message = "sl,sd->ld"}> : () -> ()
      %cst_61 = arith.constant dense<0.000000e+00> : vector<4x8xf32>
      %105 = tpu.matmul %103, %100, %cst_61 {dimension_numbers = #tpu.dot_dimension_numbers<[0], [0], [1], [1], [0, 1, 1, 1], [], []>} : vector<8x4xf32>, vector<8x8xf32>, vector<4x8xf32> -> vector<4x8xf32>
      "tpu.trace_stop"() : () -> ()
      %c0_62 = arith.constant 0 : index
      %c0_63 = arith.constant 0 : index
      %c0_64 = arith.constant 0 : index
      %106 = vector.load %arg11[%c0_62, %c0_63, %c0_64] : memref<4x4x8xf32, #tpu.memory_space<vmem>>, vector<1x4x8xf32>
      %107 = vector.shape_cast %106 : vector<1x4x8xf32> to vector<4x8xf32>
      %108 = vector.shape_cast %105 : vector<4x8xf32> to vector<1x4x8xf32>
      tpu.vector_store %arg11[%c0_62, %c0_63, %c0_64], %108 {strides = array<i32>} : memref<4x4x8xf32, #tpu.memory_space<vmem>>, vector<1x4x8xf32>,
      "tpu.trace_start"() <{level = 10 : i32, message = "sl,sd->ld"}> : () -> ()
      %cst_65 = arith.constant dense<0.000000e+00> : vector<4x8xf32>
      %109 = tpu.matmul %104, %101, %cst_65 {dimension_numbers = #tpu.dot_dimension_numbers<[0], [0], [1], [1], [0, 1, 1, 1], [], []>} : vector<8x4xf32>, vector<8x8xf32>, vector<4x8xf32> -> vector<4x8xf32>
      "tpu.trace_stop"() : () -> ()
      %cst_66 = arith.constant dense<0.000000e+00> : vector<4x32xf32>
      %110 = tpu.matmul %109, %102, %cst_66 {dimension_numbers = #tpu.dot_dimension_numbers<[1], [0], [0], [1], [0, 0, 1, 1], [], []>} : vector<4x8xf32>, vector<8x32xf32>, vector<4x32xf32> -> vector<4x32xf32>
      %c0_67 = arith.constant 0 : index
      %c0_68 = arith.constant 0 : index
      %c0_69 = arith.constant 0 : index
      %111 = vector.load %arg12[%c0_67, %c0_68, %c0_69] : memref<4x4x32xf32, #tpu.memory_space<vmem>>, vector<1x4x32xf32>
      %112 = vector.shape_cast %111 : vector<1x4x32xf32> to vector<4x32xf32>
      %113 = vector.shape_cast %110 : vector<4x32xf32> to vector<1x4x32xf32>
      tpu.vector_store %arg12[%c0_67, %c0_68, %c0_69], %113 {strides = array<i32>} : memref<4x4x32xf32, #tpu.memory_space<vmem>>, vector<1x4x32xf32>,
      %114 = vector.extract_strided_slice %99 {offsets = [0, 8], sizes = [8, 8], strides = [1, 1]} : vector<8x96xf32> to vector<8x8xf32>
      %115 = vector.extract_strided_slice %99 {offsets = [0, 40], sizes = [8, 8], strides = [1, 1]} : vector<8x96xf32> to vector<8x8xf32>
      %c8 = arith.constant 8 : index
      %c0_70 = arith.constant 0 : index
      %116 = vector.load %arg8[%c8, %c0_70] : memref<32x32xf32, #tpu.memory_space<vmem>>, vector<8x32xf32>
      %117 = vector.extract_strided_slice %99 {offsets = [0, 68], sizes = [8, 4], strides = [1, 1]} : vector<8x96xf32> to vector<8x4xf32>
      %118 = vector.extract_strided_slice %99 {offsets = [0, 84], sizes = [8, 4], strides = [1, 1]} : vector<8x96xf32> to vector<8x4xf32>
      "tpu.trace_start"() <{level = 10 : i32, message = "sl,sd->ld"}> : () -> ()
      %cst_71 = arith.constant dense<0.000000e+00> : vector<4x8xf32>
      %119 = tpu.matmul %117, %114, %cst_71 {dimension_numbers = #tpu.dot_dimension_numbers<[0], [0], [1], [1], [0, 1, 1, 1], [], []>} : vector<8x4xf32>, vector<8x8xf32>, vector<4x8xf32> -> vector<4x8xf32>
      "tpu.trace_stop"() : () -> ()
      %c1_72 = arith.constant 1 : index
      %c0_73 = arith.constant 0 : index
      %c0_74 = arith.constant 0 : index
      %120 = vector.load %arg11[%c1_72, %c0_73, %c0_74] : memref<4x4x8xf32, #tpu.memory_space<vmem>>, vector<1x4x8xf32>
      %121 = vector.shape_cast %120 : vector<1x4x8xf32> to vector<4x8xf32>
      %122 = vector.shape_cast %119 : vector<4x8xf32> to vector<1x4x8xf32>
      tpu.vector_store %arg11[%c1_72, %c0_73, %c0_74], %122 {strides = array<i32>} : memref<4x4x8xf32, #tpu.memory_space<vmem>>, vector<1x4x8xf32>,
      "tpu.trace_start"() <{level = 10 : i32, message = "sl,sd->ld"}> : () -> ()
      %cst_75 = arith.constant dense<0.000000e+00> : vector<4x8xf32>
      %123 = tpu.matmul %118, %115, %cst_75 {dimension_numbers = #tpu.dot_dimension_numbers<[0], [0], [1], [1], [0, 1, 1, 1], [], []>} : vector<8x4xf32>, vector<8x8xf32>, vector<4x8xf32> -> vector<4x8xf32>
      "tpu.trace_stop"() : () -> ()
      %cst_76 = arith.constant dense<0.000000e+00> : vector<4x32xf32>
      %124 = tpu.matmul %123, %116, %cst_76 {dimension_numbers = #tpu.dot_dimension_numbers<[1], [0], [0], [1], [0, 0, 1, 1], [], []>} : vector<4x8xf32>, vector<8x32xf32>, vector<4x32xf32> -> vector<4x32xf32>
      %c1_77 = arith.constant 1 : index
      %c0_78 = arith.constant 0 : index
      %c0_79 = arith.constant 0 : index
      %125 = vector.load %arg12[%c1_77, %c0_78, %c0_79] : memref<4x4x32xf32, #tpu.memory_space<vmem>>, vector<1x4x32xf32>
      %126 = vector.shape_cast %125 : vector<1x4x32xf32> to vector<4x32xf32>
      %127 = vector.shape_cast %124 : vector<4x32xf32> to vector<1x4x32xf32>
      tpu.vector_store %arg12[%c1_77, %c0_78, %c0_79], %127 {strides = array<i32>} : memref<4x4x32xf32, #tpu.memory_space<vmem>>, vector<1x4x32xf32>,
      %128 = vector.extract_strided_slice %99 {offsets = [0, 16], sizes = [8, 8], strides = [1, 1]} : vector<8x96xf32> to vector<8x8xf32>
      %129 = vector.extract_strided_slice %99 {offsets = [0, 48], sizes = [8, 8], strides = [1, 1]} : vector<8x96xf32> to vector<8x8xf32>
      %c16 = arith.constant 16 : index
      %c0_80 = arith.constant 0 : index
      %130 = vector.load %arg8[%c16, %c0_80] : memref<32x32xf32, #tpu.memory_space<vmem>>, vector<8x32xf32>
      %131 = vector.extract_strided_slice %99 {offsets = [0, 72], sizes = [8, 4], strides = [1, 1]} : vector<8x96xf32> to vector<8x4xf32>
      %132 = vector.extract_strided_slice %99 {offsets = [0, 88], sizes = [8, 4], strides = [1, 1]} : vector<8x96xf32> to vector<8x4xf32>
      "tpu.trace_start"() <{level = 10 : i32, message = "sl,sd->ld"}> : () -> ()
      %cst_81 = arith.constant dense<0.000000e+00> : vector<4x8xf32>
      %133 = tpu.matmul %131, %128, %cst_81 {dimension_numbers = #tpu.dot_dimension_numbers<[0], [0], [1], [1], [0, 1, 1, 1], [], []>} : vector<8x4xf32>, vector<8x8xf32>, vector<4x8xf32> -> vector<4x8xf32>
      "tpu.trace_stop"() : () -> ()
      %c2_82 = arith.constant 2 : index
      %c0_83 = arith.constant 0 : index
      %c0_84 = arith.constant 0 : index
      %134 = vector.load %arg11[%c2_82, %c0_83, %c0_84] : memref<4x4x8xf32, #tpu.memory_space<vmem>>, vector<1x4x8xf32>
      %135 = vector.shape_cast %134 : vector<1x4x8xf32> to vector<4x8xf32>
      %136 = vector.shape_cast %133 : vector<4x8xf32> to vector<1x4x8xf32>
      tpu.vector_store %arg11[%c2_82, %c0_83, %c0_84], %136 {strides = array<i32>} : memref<4x4x8xf32, #tpu.memory_space<vmem>>, vector<1x4x8xf32>,
      "tpu.trace_start"() <{level = 10 : i32, message = "sl,sd->ld"}> : () -> ()
      %cst_85 = arith.constant dense<0.000000e+00> : vector<4x8xf32>
      %137 = tpu.matmul %132, %129, %cst_85 {dimension_numbers = #tpu.dot_dimension_numbers<[0], [0], [1], [1], [0, 1, 1, 1], [], []>} : vector<8x4xf32>, vector<8x8xf32>, vector<4x8xf32> -> vector<4x8xf32>
      "tpu.trace_stop"() : () -> ()
      %cst_86 = arith.constant dense<0.000000e+00> : vector<4x32xf32>
      %138 = tpu.matmul %137, %130, %cst_86 {dimension_numbers = #tpu.dot_dimension_numbers<[1], [0], [0], [1], [0, 0, 1, 1], [], []>} : vector<4x8xf32>, vector<8x32xf32>, vector<4x32xf32> -> vector<4x32xf32>
      %c2_87 = arith.constant 2 : index
      %c0_88 = arith.constant 0 : index
      %c0_89 = arith.constant 0 : index
      %139 = vector.load %arg12[%c2_87, %c0_88, %c0_89] : memref<4x4x32xf32, #tpu.memory_space<vmem>>, vector<1x4x32xf32>
      %140 = vector.shape_cast %139 : vector<1x4x32xf32> to vector<4x32xf32>
      %141 = vector.shape_cast %138 : vector<4x32xf32> to vector<1x4x32xf32>
      tpu.vector_store %arg12[%c2_87, %c0_88, %c0_89], %141 {strides = array<i32>} : memref<4x4x32xf32, #tpu.memory_space<vmem>>, vector<1x4x32xf32>,
      %142 = vector.extract_strided_slice %99 {offsets = [0, 24], sizes = [8, 8], strides = [1, 1]} : vector<8x96xf32> to vector<8x8xf32>
      %143 = vector.extract_strided_slice %99 {offsets = [0, 56], sizes = [8, 8], strides = [1, 1]} : vector<8x96xf32> to vector<8x8xf32>
      %c24 = arith.constant 24 : index
      %c0_90 = arith.constant 0 : index
      %144 = vector.load %arg8[%c24, %c0_90] : memref<32x32xf32, #tpu.memory_space<vmem>>, vector<8x32xf32>
      %145 = vector.extract_strided_slice %99 {offsets = [0, 76], sizes = [8, 4], strides = [1, 1]} : vector<8x96xf32> to vector<8x4xf32>
      %146 = vector.extract_strided_slice %99 {offsets = [0, 92], sizes = [8, 4], strides = [1, 1]} : vector<8x96xf32> to vector<8x4xf32>
      "tpu.trace_start"() <{level = 10 : i32, message = "sl,sd->ld"}> : () -> ()
      %cst_91 = arith.constant dense<0.000000e+00> : vector<4x8xf32>
      %147 = tpu.matmul %145, %142, %cst_91 {dimension_numbers = #tpu.dot_dimension_numbers<[0], [0], [1], [1], [0, 1, 1, 1], [], []>} : vector<8x4xf32>, vector<8x8xf32>, vector<4x8xf32> -> vector<4x8xf32>
      "tpu.trace_stop"() : () -> ()
      %c3_92 = arith.constant 3 : index
      %c0_93 = arith.constant 0 : index
      %c0_94 = arith.constant 0 : index
      %148 = vector.load %arg11[%c3_92, %c0_93, %c0_94] : memref<4x4x8xf32, #tpu.memory_space<vmem>>, vector<1x4x8xf32>
      %149 = vector.shape_cast %148 : vector<1x4x8xf32> to vector<4x8xf32>
      %150 = vector.shape_cast %147 : vector<4x8xf32> to vector<1x4x8xf32>
      tpu.vector_store %arg11[%c3_92, %c0_93, %c0_94], %150 {strides = array<i32>} : memref<4x4x8xf32, #tpu.memory_space<vmem>>, vector<1x4x8xf32>,
      "tpu.trace_start"() <{level = 10 : i32, message = "sl,sd->ld"}> : () -> ()
      %cst_95 = arith.constant dense<0.000000e+00> : vector<4x8xf32>
      %151 = tpu.matmul %146, %143, %cst_95 {dimension_numbers = #tpu.dot_dimension_numbers<[0], [0], [1], [1], [0, 1, 1, 1], [], []>} : vector<8x4xf32>, vector<8x8xf32>, vector<4x8xf32> -> vector<4x8xf32>
      "tpu.trace_stop"() : () -> ()
      %cst_96 = arith.constant dense<0.000000e+00> : vector<4x32xf32>
      %152 = tpu.matmul %151, %144, %cst_96 {dimension_numbers = #tpu.dot_dimension_numbers<[1], [0], [0], [1], [0, 0, 1, 1], [], []>} : vector<4x8xf32>, vector<8x32xf32>, vector<4x32xf32> -> vector<4x32xf32>
      %c3_97 = arith.constant 3 : index
      %c0_98 = arith.constant 0 : index
      %c0_99 = arith.constant 0 : index
      %153 = vector.load %arg12[%c3_97, %c0_98, %c0_99] : memref<4x4x32xf32, #tpu.memory_space<vmem>>, vector<1x4x32xf32>
      %154 = vector.shape_cast %153 : vector<1x4x32xf32> to vector<4x32xf32>
      %155 = vector.shape_cast %152 : vector<4x32xf32> to vector<1x4x32xf32>
      tpu.vector_store %arg12[%c3_97, %c0_98, %c0_99], %155 {strides = array<i32>} : memref<4x4x32xf32, #tpu.memory_space<vmem>>, vector<1x4x32xf32>,
    } else {
    }
    %c0 = arith.constant 0 : index
    %c0_1 = arith.constant 0 : index
    %c0_2 = arith.constant 0 : index
    %3 = vector.load %arg2[%c0, %c0_1, %c0_2] : memref<1x8x32xf32, #tpu.memory_space<vmem>>, vector<1x8x32xf32>
    %4 = vector.shape_cast %3 : vector<1x8x32xf32> to vector<8x32xf32>
    %c0_3 = arith.constant 0 : index
    %c0_4 = arith.constant 0 : index
    %c0_5 = arith.constant 0 : index
    %5 = vector.load %arg6[%c0_3, %c0_4, %c0_5] : memref<1x1x4xf32, #tpu.memory_space<vmem>>, vector<1x1x4xf32>
    %6 = vector.shape_cast %5 : vector<1x1x4xf32> to vector<1x4xf32>
    %cst = arith.constant 0.000000e+00 : f32
    %7 = vector.broadcast %cst : f32 to vector<8x32xf32>
    %8 = vector.extract_strided_slice %4 {offsets = [0, 0], sizes = [8, 8], strides = [1, 1]} : vector<8x32xf32> to vector<8x8xf32>
    %c0_6 = arith.constant 0 : index
    %c0_7 = arith.constant 0 : index
    %c0_8 = arith.constant 0 : index
    %9 = vector.load %arg11[%c0_6, %c0_7, %c0_8] : memref<4x4x8xf32, #tpu.memory_space<vmem>>, vector<1x4x8xf32>
    %10 = vector.shape_cast %9 : vector<1x4x8xf32> to vector<4x8xf32>
    "tpu.trace_start"() <{level = 10 : i32, message = "qd,nd->qn"}> : () -> ()
    %cst_9 = arith.constant dense<0.000000e+00> : vector<8x4xf32>
    %11 = tpu.matmul %8, %10, %cst_9 {dimension_numbers = #tpu.dot_dimension_numbers<[1], [1], [0], [0], [0, 0, 1, 0], [], []>} : vector<8x8xf32>, vector<4x8xf32>, vector<8x4xf32> -> vector<8x4xf32>
    "tpu.trace_stop"() : () -> ()
    %12 = vector.broadcast %6 : vector<1x4xf32> to vector<8x4xf32>
    %13 = arith.addf %11, %12 : vector<8x4xf32>
    %cst_10 = arith.constant dense<0xFF800000> : vector<8xf32>
    %14 = vector.multi_reduction <maximumf>, %13, %cst_10 [1] : vector<8x4xf32> to vector<8xf32>
    %15 = vector.shape_cast %14 : vector<8xf32> to vector<8x1xf32>
    %16 = vector.broadcast %15 : vector<8x1xf32> to vector<8x4xf32>
    %17 = arith.subf %13, %16 : vector<8x4xf32>
    %18 = math.exp %17 : vector<8x4xf32>
    %cst_11 = arith.constant dense<0.000000e+00> : vector<8xf32>
    %19 = vector.multi_reduction <add>, %18, %cst_11 [1] : vector<8x4xf32> to vector<8xf32>
    %20 = vector.shape_cast %19 : vector<8xf32> to vector<8x1xf32>
    %21 = vector.broadcast %20 : vector<8x1xf32> to vector<8x4xf32>
    %22 = arith.divf %18, %21 : vector<8x4xf32>
    %c0_12 = arith.constant 0 : index
    %c0_13 = arith.constant 0 : index
    %c0_14 = arith.constant 0 : index
    %23 = vector.load %arg12[%c0_12, %c0_13, %c0_14] : memref<4x4x32xf32, #tpu.memory_space<vmem>>, vector<1x4x32xf32>
    %24 = vector.shape_cast %23 : vector<1x4x32xf32> to vector<4x32xf32>
    %cst_15 = arith.constant dense<0.000000e+00> : vector<8x32xf32>
    %25 = tpu.matmul %22, %24, %cst_15 {dimension_numbers = #tpu.dot_dimension_numbers<[1], [0], [0], [1], [0, 0, 1, 1], [], []>} : vector<8x4xf32>, vector<4x32xf32>, vector<8x32xf32> -> vector<8x32xf32>
    %26 = arith.addf %7, %25 : vector<8x32xf32>
    %27 = vector.extract_strided_slice %4 {offsets = [0, 8], sizes = [8, 8], strides = [1, 1]} : vector<8x32xf32> to vector<8x8xf32>
    %c1 = arith.constant 1 : index
    %c0_16 = arith.constant 0 : index
    %c0_17 = arith.constant 0 : index
    %28 = vector.load %arg11[%c1, %c0_16, %c0_17] : memref<4x4x8xf32, #tpu.memory_space<vmem>>, vector<1x4x8xf32>
    %29 = vector.shape_cast %28 : vector<1x4x8xf32> to vector<4x8xf32>
    "tpu.trace_start"() <{level = 10 : i32, message = "qd,nd->qn"}> : () -> ()
    %cst_18 = arith.constant dense<0.000000e+00> : vector<8x4xf32>
    %30 = tpu.matmul %27, %29, %cst_18 {dimension_numbers = #tpu.dot_dimension_numbers<[1], [1], [0], [0], [0, 0, 1, 0], [], []>} : vector<8x8xf32>, vector<4x8xf32>, vector<8x4xf32> -> vector<8x4xf32>
    "tpu.trace_stop"() : () -> ()
    %31 = vector.broadcast %6 : vector<1x4xf32> to vector<8x4xf32>
    %32 = arith.addf %30, %31 : vector<8x4xf32>
    %cst_19 = arith.constant dense<0xFF800000> : vector<8xf32>
    %33 = vector.multi_reduction <maximumf>, %32, %cst_19 [1] : vector<8x4xf32> to vector<8xf32>
    %34 = vector.shape_cast %33 : vector<8xf32> to vector<8x1xf32>
    %35 = vector.broadcast %34 : vector<8x1xf32> to vector<8x4xf32>
    %36 = arith.subf %32, %35 : vector<8x4xf32>
    %37 = math.exp %36 : vector<8x4xf32>
    %cst_20 = arith.constant dense<0.000000e+00> : vector<8xf32>
    %38 = vector.multi_reduction <add>, %37, %cst_20 [1] : vector<8x4xf32> to vector<8xf32>
    %39 = vector.shape_cast %38 : vector<8xf32> to vector<8x1xf32>
    %40 = vector.broadcast %39 : vector<8x1xf32> to vector<8x4xf32>
    %41 = arith.divf %37, %40 : vector<8x4xf32>
    %c1_21 = arith.constant 1 : index
    %c0_22 = arith.constant 0 : index
    %c0_23 = arith.constant 0 : index
    %42 = vector.load %arg12[%c1_21, %c0_22, %c0_23] : memref<4x4x32xf32, #tpu.memory_space<vmem>>, vector<1x4x32xf32>
    %43 = vector.shape_cast %42 : vector<1x4x32xf32> to vector<4x32xf32>
    %cst_24 = arith.constant dense<0.000000e+00> : vector<8x32xf32>
    %44 = tpu.matmul %41, %43, %cst_24 {dimension_numbers = #tpu.dot_dimension_numbers<[1], [0], [0], [1], [0, 0, 1, 1], [], []>} : vector<8x4xf32>, vector<4x32xf32>, vector<8x32xf32> -> vector<8x32xf32>
    %45 = arith.addf %26, %44 : vector<8x32xf32>
    %46 = vector.extract_strided_slice %4 {offsets = [0, 16], sizes = [8, 8], strides = [1, 1]} : vector<8x32xf32> to vector<8x8xf32>
    %c2 = arith.constant 2 : index
    %c0_25 = arith.constant 0 : index
    %c0_26 = arith.constant 0 : index
    %47 = vector.load %arg11[%c2, %c0_25, %c0_26] : memref<4x4x8xf32, #tpu.memory_space<vmem>>, vector<1x4x8xf32>
    %48 = vector.shape_cast %47 : vector<1x4x8xf32> to vector<4x8xf32>
    "tpu.trace_start"() <{level = 10 : i32, message = "qd,nd->qn"}> : () -> ()
    %cst_27 = arith.constant dense<0.000000e+00> : vector<8x4xf32>
    %49 = tpu.matmul %46, %48, %cst_27 {dimension_numbers = #tpu.dot_dimension_numbers<[1], [1], [0], [0], [0, 0, 1, 0], [], []>} : vector<8x8xf32>, vector<4x8xf32>, vector<8x4xf32> -> vector<8x4xf32>
    "tpu.trace_stop"() : () -> ()
    %50 = vector.broadcast %6 : vector<1x4xf32> to vector<8x4xf32>
    %51 = arith.addf %49, %50 : vector<8x4xf32>
    %cst_28 = arith.constant dense<0xFF800000> : vector<8xf32>
    %52 = vector.multi_reduction <maximumf>, %51, %cst_28 [1] : vector<8x4xf32> to vector<8xf32>
    %53 = vector.shape_cast %52 : vector<8xf32> to vector<8x1xf32>
    %54 = vector.broadcast %53 : vector<8x1xf32> to vector<8x4xf32>
    %55 = arith.subf %51, %54 : vector<8x4xf32>
    %56 = math.exp %55 : vector<8x4xf32>
    %cst_29 = arith.constant dense<0.000000e+00> : vector<8xf32>
    %57 = vector.multi_reduction <add>, %56, %cst_29 [1] : vector<8x4xf32> to vector<8xf32>
    %58 = vector.shape_cast %57 : vector<8xf32> to vector<8x1xf32>
    %59 = vector.broadcast %58 : vector<8x1xf32> to vector<8x4xf32>
    %60 = arith.divf %56, %59 : vector<8x4xf32>
    %c2_30 = arith.constant 2 : index
    %c0_31 = arith.constant 0 : index
    %c0_32 = arith.constant 0 : index
    %61 = vector.load %arg12[%c2_30, %c0_31, %c0_32] : memref<4x4x32xf32, #tpu.memory_space<vmem>>, vector<1x4x32xf32>
    %62 = vector.shape_cast %61 : vector<1x4x32xf32> to vector<4x32xf32>
    %cst_33 = arith.constant dense<0.000000e+00> : vector<8x32xf32>
    %63 = tpu.matmul %60, %62, %cst_33 {dimension_numbers = #tpu.dot_dimension_numbers<[1], [0], [0], [1], [0, 0, 1, 1], [], []>} : vector<8x4xf32>, vector<4x32xf32>, vector<8x32xf32> -> vector<8x32xf32>
    %64 = arith.addf %45, %63 : vector<8x32xf32>
    %65 = vector.extract_strided_slice %4 {offsets = [0, 24], sizes = [8, 8], strides = [1, 1]} : vector<8x32xf32> to vector<8x8xf32>
    %c3 = arith.constant 3 : index
    %c0_34 = arith.constant 0 : index
    %c0_35 = arith.constant 0 : index
    %66 = vector.load %arg11[%c3, %c0_34, %c0_35] : memref<4x4x8xf32, #tpu.memory_space<vmem>>, vector<1x4x8xf32>
    %67 = vector.shape_cast %66 : vector<1x4x8xf32> to vector<4x8xf32>
    "tpu.trace_start"() <{level = 10 : i32, message = "qd,nd->qn"}> : () -> ()
    %cst_36 = arith.constant dense<0.000000e+00> : vector<8x4xf32>
    %68 = tpu.matmul %65, %67, %cst_36 {dimension_numbers = #tpu.dot_dimension_numbers<[1], [1], [0], [0], [0, 0, 1, 0], [], []>} : vector<8x8xf32>, vector<4x8xf32>, vector<8x4xf32> -> vector<8x4xf32>
    "tpu.trace_stop"() : () -> ()
    %69 = vector.broadcast %6 : vector<1x4xf32> to vector<8x4xf32>
    %70 = arith.addf %68, %69 : vector<8x4xf32>
    %cst_37 = arith.constant dense<0xFF800000> : vector<8xf32>
    %71 = vector.multi_reduction <maximumf>, %70, %cst_37 [1] : vector<8x4xf32> to vector<8xf32>
    %72 = vector.shape_cast %71 : vector<8xf32> to vector<8x1xf32>
    %73 = vector.broadcast %72 : vector<8x1xf32> to vector<8x4xf32>
    %74 = arith.subf %70, %73 : vector<8x4xf32>
    %75 = math.exp %74 : vector<8x4xf32>
    %cst_38 = arith.constant dense<0.000000e+00> : vector<8xf32>
    %76 = vector.multi_reduction <add>, %75, %cst_38 [1] : vector<8x4xf32> to vector<8xf32>
    %77 = vector.shape_cast %76 : vector<8xf32> to vector<8x1xf32>
    %78 = vector.broadcast %77 : vector<8x1xf32> to vector<8x4xf32>
    %79 = arith.divf %75, %78 : vector<8x4xf32>
    %c3_39 = arith.constant 3 : index
    %c0_40 = arith.constant 0 : index
    %c0_41 = arith.constant 0 : index
    %80 = vector.load %arg12[%c3_39, %c0_40, %c0_41] : memref<4x4x32xf32, #tpu.memory_space<vmem>>, vector<1x4x32xf32>
    %81 = vector.shape_cast %80 : vector<1x4x32xf32> to vector<4x32xf32>
    %cst_42 = arith.constant dense<0.000000e+00> : vector<8x32xf32>
    %82 = tpu.matmul %79, %81, %cst_42 {dimension_numbers = #tpu.dot_dimension_numbers<[1], [0], [0], [1], [0, 0, 1, 1], [], []>} : vector<8x4xf32>, vector<4x32xf32>, vector<8x32xf32> -> vector<8x32xf32>
    %83 = arith.addf %64, %82 : vector<8x32xf32>
    %c0_43 = arith.constant 0 : index
    %c0_44 = arith.constant 0 : index
    %c0_45 = arith.constant 0 : index
    %84 = vector.load %arg7[%c0_43, %c0_44, %c0_45] : memref<1x8x32xf32, #tpu.memory_space<vmem>>, vector<1x8x32xf32>
    %85 = vector.shape_cast %84 : vector<1x8x32xf32> to vector<8x32xf32>
    %86 = arith.addf %85, %83 : vector<8x32xf32>
    %c0_46 = arith.constant 0 : index
    %c0_47 = arith.constant 0 : index
    %87 = vector.load %arg9[%c0_46, %c0_47] : memref<1x32xf32, #tpu.memory_space<vmem>>, vector<1x32xf32>
    %88 = vector.broadcast %87 : vector<1x32xf32> to vector<8x32xf32>
    %89 = arith.addf %86, %88 : vector<8x32xf32>
    %c0_48 = arith.constant 0 : index
    %c0_49 = arith.constant 0 : index
    %c0_50 = arith.constant 0 : index
    %90 = vector.load %arg10[%c0_48, %c0_49, %c0_50] : memref<1x8x32xf32, #tpu.memory_space<vmem>>, vector<1x8x32xf32>
    %91 = vector.shape_cast %90 : vector<1x8x32xf32> to vector<8x32xf32>
    %92 = vector.shape_cast %89 : vector<8x32xf32> to vector<1x8x32xf32>
    tpu.vector_store %arg10[%c0_48, %c0_49, %c0_50], %92 {strides = array<i32>} : memref<1x8x32xf32, #tpu.memory_space<vmem>>, vector<1x8x32xf32>,
    return
  }
  func.func @transform_0(%arg0: i32, %arg1: i32) -> (i32, i32, i32) {
    %c0_i32 = arith.constant 0 : i32
    %c0_i32_0 = arith.constant 0 : i32
    return %arg0, %arg1, %c0_i32 : i32, i32, i32
  }
  func.func @transform_1(%arg0: i32, %arg1: i32) -> (i32, i32, i32) {
    %c0_i32 = arith.constant 0 : i32
    %c0_i32_0 = arith.constant 0 : i32
    %c0_i32_1 = arith.constant 0 : i32
    return %arg0, %c0_i32, %c0_i32_0 : i32, i32, i32
  }
  func.func @transform_2(%arg0: i32, %arg1: i32) -> (i32, i32) {
    %c0_i32 = arith.constant 0 : i32
    %c0_i32_0 = arith.constant 0 : i32
    %c0_i32_1 = arith.constant 0 : i32
    return %c0_i32, %c0_i32_0 : i32, i32
  }
  func.func @transform_3(%arg0: i32, %arg1: i32) -> (i32, i32) {
    %c0_i32 = arith.constant 0 : i32
    %c0_i32_0 = arith.constant 0 : i32
    %c0_i32_1 = arith.constant 0 : i32
    return %c0_i32, %c0_i32_0 : i32, i32
  }
  func.func @transform_4(%arg0: i32, %arg1: i32) -> (i32, i32, i32) {
    %c0_i32 = arith.constant 0 : i32
    %c0_i32_0 = arith.constant 0 : i32
    %c0_i32_1 = arith.constant 0 : i32
    return %arg0, %c0_i32, %c0_i32_0 : i32, i32, i32
  }
  func.func @transform_5(%arg0: i32, %arg1: i32) -> (i32, i32, i32) {
    %c0_i32 = arith.constant 0 : i32
    %c0_i32_0 = arith.constant 0 : i32
    return %arg0, %arg1, %c0_i32 : i32, i32, i32
  }
  func.func @transform_6(%arg0: i32, %arg1: i32) -> (i32, i32) {
    %c0_i32 = arith.constant 0 : i32
    %c0_i32_0 = arith.constant 0 : i32
    %c0_i32_1 = arith.constant 0 : i32
    return %c0_i32, %c0_i32_0 : i32, i32
  }
  func.func @transform_7(%arg0: i32, %arg1: i32) -> (i32, i32) {
    %c0_i32 = arith.constant 0 : i32
    %c0_i32_0 = arith.constant 0 : i32
    %c0_i32_1 = arith.constant 0 : i32
    return %c0_i32, %c0_i32_0 : i32, i32
  }
  func.func @transform_8(%arg0: i32, %arg1: i32) -> (i32, i32, i32) {
    %c0_i32 = arith.constant 0 : i32
    %c0_i32_0 = arith.constant 0 : i32
    return %arg0, %arg1, %c0_i32 : i32, i32, i32
  }
}

module attributes {stable_mosaic.version = 11 : i64} {
  func.func @_ffn_kernel(%arg0: i32, %arg1: i32, %arg2: memref<1x8x32xf32, #tpu.memory_space<vmem>>, %arg3: memref<1x32xf32, #tpu.memory_space<vmem>>, %arg4: memref<1x32xf32, #tpu.memory_space<vmem>>, %arg5: memref<32x2048xf32, #tpu.memory_space<vmem>>, %arg6: memref<1x2048xf32, #tpu.memory_space<vmem>>, %arg7: memref<2048x32xf32, #tpu.memory_space<vmem>>, %arg8: memref<1x32xf32, #tpu.memory_space<vmem>>, %arg9: memref<1x8x32xf32, #tpu.memory_space<vmem>>) attributes {dimension_semantics = [#tpu.dimension_semantics<parallel>, #tpu.dimension_semantics<parallel>], iteration_bounds = array<i64: 2, 1>, scalar_prefetch = 0 : i64, scratch_operands = 0 : i64, tpu.core_type = #tpu.core_type<tc>, window_params = [{transform_indices = @transform_0, window_bounds = array<i64: 1, 8, 32>}, {pipeline_mode = #tpu.pipeline_mode<synchronous>, transform_indices = @transform_1, window_bounds = array<i64: 1, 32>}, {pipeline_mode = #tpu.pipeline_mode<synchronous>, transform_indices = @transform_2, window_bounds = array<i64: 1, 32>}, {pipeline_mode = #tpu.pipeline_mode<synchronous>, transform_indices = @transform_3, window_bounds = array<i64: 32, 2048>}, {pipeline_mode = #tpu.pipeline_mode<synchronous>, transform_indices = @transform_4, window_bounds = array<i64: 1, 2048>}, {pipeline_mode = #tpu.pipeline_mode<synchronous>, transform_indices = @transform_5, window_bounds = array<i64: 2048, 32>}, {pipeline_mode = #tpu.pipeline_mode<synchronous>, transform_indices = @transform_6, window_bounds = array<i64: 1, 32>}, {transform_indices = @transform_7, window_bounds = array<i64: 1, 8, 32>}]} {
    %c0 = arith.constant 0 : index
    %c0_0 = arith.constant 0 : index
    %c0_1 = arith.constant 0 : index
    %0 = vector.load %arg2[%c0, %c0_0, %c0_1] : memref<1x8x32xf32, #tpu.memory_space<vmem>>, vector<1x8x32xf32>
    %1 = vector.shape_cast %0 : vector<1x8x32xf32> to vector<8x32xf32>
    %c0_2 = arith.constant 0 : index
    %c0_3 = arith.constant 0 : index
    %2 = vector.load %arg3[%c0_2, %c0_3] : memref<1x32xf32, #tpu.memory_space<vmem>>, vector<1x32xf32>
    %c0_4 = arith.constant 0 : index
    %c0_5 = arith.constant 0 : index
    %3 = vector.load %arg4[%c0_4, %c0_5] : memref<1x32xf32, #tpu.memory_space<vmem>>, vector<1x32xf32>
    %cst = arith.constant dense<0.000000e+00> : vector<8xf32>
    %4 = vector.multi_reduction <add>, %1, %cst [1] : vector<8x32xf32> to vector<8xf32>
    %5 = vector.shape_cast %4 : vector<8xf32> to vector<8x1xf32>
    %cst_6 = arith.constant 3.200000e+01 : f32
    %6 = vector.broadcast %cst_6 : f32 to vector<8x1xf32>
    %7 = arith.divf %5, %6 : vector<8x1xf32>
    %8 = vector.broadcast %7 : vector<8x1xf32> to vector<8x32xf32>
    %9 = arith.subf %1, %8 : vector<8x32xf32>
    %10 = arith.mulf %9, %9 : vector<8x32xf32>
    %cst_7 = arith.constant dense<0.000000e+00> : vector<8xf32>
    %11 = vector.multi_reduction <add>, %10, %cst_7 [1] : vector<8x32xf32> to vector<8xf32>
    %12 = vector.shape_cast %11 : vector<8xf32> to vector<8x1xf32>
    %cst_8 = arith.constant 3.100000e+01 : f32
    %13 = vector.broadcast %cst_8 : f32 to vector<8x1xf32>
    %14 = arith.divf %12, %13 : vector<8x1xf32>
    %15 = vector.broadcast %2 : vector<1x32xf32> to vector<8x32xf32>
    %16 = arith.mulf %15, %9 : vector<8x32xf32>
    %17 = math.sqrt %14 : vector<8x1xf32>
    %cst_9 = arith.constant 9.99999997E-7 : f32
    %18 = vector.broadcast %cst_9 : f32 to vector<8x1xf32>
    %19 = arith.addf %17, %18 : vector<8x1xf32>
    %20 = vector.broadcast %19 : vector<8x1xf32> to vector<8x32xf32>
    %21 = arith.divf %16, %20 : vector<8x32xf32>
    %22 = vector.broadcast %3 : vector<1x32xf32> to vector<8x32xf32>
    %23 = arith.addf %21, %22 : vector<8x32xf32>
    %c0_10 = arith.constant 0 : index
    %c0_11 = arith.constant 0 : index
    %24 = vector.load %arg5[%c0_10, %c0_11] : memref<32x2048xf32, #tpu.memory_space<vmem>>, vector<32x2048xf32>
    %cst_12 = arith.constant dense<0.000000e+00> : vector<8x2048xf32>
    %25 = tpu.matmul %23, %24, %cst_12 {dimension_numbers = #tpu.dot_dimension_numbers<[1], [0], [0], [1], [0, 0, 1, 1], [], []>} : vector<8x32xf32>, vector<32x2048xf32>, vector<8x2048xf32> -> vector<8x2048xf32>
    %c0_13 = arith.constant 0 : index
    %c0_14 = arith.constant 0 : index
    %26 = vector.load %arg6[%c0_13, %c0_14] : memref<1x2048xf32, #tpu.memory_space<vmem>>, vector<1x2048xf32>
    %27 = vector.broadcast %26 : vector<1x2048xf32> to vector<8x2048xf32>
    %28 = arith.addf %25, %27 : vector<8x2048xf32>
    %cst_15 = arith.constant 0.000000e+00 : f32
    %29 = vector.broadcast %cst_15 : f32 to vector<8x2048xf32>
    %30 = arith.maximumf %28, %29 : vector<8x2048xf32>
    %c0_16 = arith.constant 0 : index
    %c0_17 = arith.constant 0 : index
    %31 = vector.load %arg7[%c0_16, %c0_17] : memref<2048x32xf32, #tpu.memory_space<vmem>>, vector<2048x32xf32>
    %cst_18 = arith.constant dense<0.000000e+00> : vector<8x32xf32>
    %32 = tpu.matmul %30, %31, %cst_18 {dimension_numbers = #tpu.dot_dimension_numbers<[1], [0], [0], [1], [0, 0, 1, 1], [], []>} : vector<8x2048xf32>, vector<2048x32xf32>, vector<8x32xf32> -> vector<8x32xf32>
    %33 = arith.addf %1, %32 : vector<8x32xf32>
    %c0_19 = arith.constant 0 : index
    %c0_20 = arith.constant 0 : index
    %34 = vector.load %arg8[%c0_19, %c0_20] : memref<1x32xf32, #tpu.memory_space<vmem>>, vector<1x32xf32>
    %35 = vector.broadcast %34 : vector<1x32xf32> to vector<8x32xf32>
    %36 = arith.addf %33, %35 : vector<8x32xf32>
    %c0_21 = arith.constant 0 : index
    %c0_22 = arith.constant 0 : index
    %c0_23 = arith.constant 0 : index
    %37 = vector.load %arg9[%c0_21, %c0_22, %c0_23] : memref<1x8x32xf32, #tpu.memory_space<vmem>>, vector<1x8x32xf32>
    %38 = vector.shape_cast %37 : vector<1x8x32xf32> to vector<8x32xf32>
    %39 = vector.shape_cast %36 : vector<8x32xf32> to vector<1x8x32xf32>
    tpu.vector_store %arg9[%c0_21, %c0_22, %c0_23], %39 {strides = array<i32>} : memref<1x8x32xf32, #tpu.memory_space<vmem>>, vector<1x8x32xf32>,
    return
  }
  func.func @transform_0(%arg0: i32, %arg1: i32) -> (i32, i32, i32) {
    %c0_i32 = arith.constant 0 : i32
    %c0_i32_0 = arith.constant 0 : i32
    return %arg0, %arg1, %c0_i32 : i32, i32, i32
  }
  func.func @transform_1(%arg0: i32, %arg1: i32) -> (i32, i32) {
    %c0_i32 = arith.constant 0 : i32
    %c0_i32_0 = arith.constant 0 : i32
    %c0_i32_1 = arith.constant 0 : i32
    return %c0_i32, %c0_i32_0 : i32, i32
  }
  func.func @transform_2(%arg0: i32, %arg1: i32) -> (i32, i32) {
    %c0_i32 = arith.constant 0 : i32
    %c0_i32_0 = arith.constant 0 : i32
    %c0_i32_1 = arith.constant 0 : i32
    return %c0_i32, %c0_i32_0 : i32, i32
  }
  func.func @transform_3(%arg0: i32, %arg1: i32) -> (i32, i32) {
    %c0_i32 = arith.constant 0 : i32
    %c0_i32_0 = arith.constant 0 : i32
    %c0_i32_1 = arith.constant 0 : i32
    return %c0_i32, %c0_i32_0 : i32, i32
  }
  func.func @transform_4(%arg0: i32, %arg1: i32) -> (i32, i32) {
    %c0_i32 = arith.constant 0 : i32
    %c0_i32_0 = arith.constant 0 : i32
    %c0_i32_1 = arith.constant 0 : i32
    return %c0_i32, %c0_i32_0 : i32, i32
  }
  func.func @transform_5(%arg0: i32, %arg1: i32) -> (i32, i32) {
    %c0_i32 = arith.constant 0 : i32
    %c0_i32_0 = arith.constant 0 : i32
    %c0_i32_1 = arith.constant 0 : i32
    return %c0_i32, %c0_i32_0 : i32, i32
  }
  func.func @transform_6(%arg0: i32, %arg1: i32) -> (i32, i32) {
    %c0_i32 = arith.constant 0 : i32
    %c0_i32_0 = arith.constant 0 : i32
    %c0_i32_1 = arith.constant 0 : i32
    return %c0_i32, %c0_i32_0 : i32, i32
  }
  func.func @transform_7(%arg0: i32, %arg1: i32) -> (i32, i32, i32) {
    %c0_i32 = arith.constant 0 : i32
    %c0_i32_0 = arith.constant 0 : i32
    return %arg0, %arg1, %c0_i32 : i32, i32, i32
  }
}

</mosaic_0001>

<bundles_post_ra>
// kernel: linformer_decoder_layer.4
= control target key start
LH: loop header
LB: loop body
LE: loop exit
PB: predicated region body
PF: predicated region fallthrough
CT: control target
= control target key end

     0   :  { %10 = vsyncpa [#allocation3], 0  ;;  %s844_s0 = inlined_call_operand.hbm [shape: f32[2,8,32], index: 0, kind: input, shape index: {}]   ;;  %s845_s1 = inlined_call_operand.vmem [shape: f32[1,32], index: 1, kind: input, shape index: {}]   ;;  %s846_s2 = inlined_call_operand.vmem [shape: f32[1,32], index: 2, kind: input, shape index: {}]   ;;  %s847_s3 = inlined_call_operand.hbm [shape: f32[32,128], index: 3, kind: input, shape index: {}]   ;;  %s848_s4 = inlined_call_operand.vmem [shape: f32[1,128], index: 4, kind: input, shape index: {}]   ;;  %s849_s5 = inlined_call_operand.vmem [shape: f32[2,8,128], index: 5, kind: output, shape index: {}]  }
   0x1   :  { %12 = vsyncpa [#allocation3 + $0x1], 0 }
   0x2   :  { %13 = vsyncpa [#allocation5], 0  ;;  %s718_s18 = smov 0   ;;  %s720_s19 = smov 0  }
   0x3   :  { %s722_s20 = smov 0   ;;  %s724_s21 = smov 0  }
   0x4   :  { %s726_s22 = smov 0   ;;  %s728_s23 = smov 0  }
   0x5 LB: > { %s472_s24 = sadd.s32 4294967295, %s681_s23   ;;  %p474_p0 = scmp.ge.s32.totalorder %s681_s23, 1  ;;  %s681_s23 = sphi %s728_s23, %s19_s23   ;;  %s677_s22 = sphi %s726_s22, %s858_s22   ;;  %s673_s21 = sphi %s724_s21, %s857_s21   ;;  %s669_s20 = sphi %s722_s20, %s856_s20   ;;  %s665_s19 = sphi %s720_s19, %s855_s19   ;;  %s661_s18 = sphi %s718_s18, %s854_s18  }
   0x6   : > { %p750_p1 = scmp.eq.s32.totalorder %s472_s24, 0  ;;  %p176_p2 = scmp.lt.s32.totalorder %s681_s23, 3 }
   0x7   : > { %s193_s28 = sshll.u32 %s847_s3, 4  ;;  %s683_s30 = smov [#allocation4]   ;;  %s194_s28 = int_to_ptr.hbm [resolvable:$true] %s193_s28 }
   0x8   : > { %p758_p3 = pnand %p474_p0, %p176_p2  ;;  %s195_s6 = sshll.u32 %s683_s30, 4  ;;  %s196_s6 = int_to_ptr.vmem [resolvable:$true] %s195_s6 }
   0x9   : > { %s684_s7 = smov 128   ;;  %s685_s8 = smov 8  }
   0xa   : > { %p492_p4 = pneg %p758_p3  ;;  %s31_s9 = sadd.s32 1, %s677_s22 }
   0xb   : > { %p33_p6 = scmp.ge.s32.totalorder %s31_s9, 2  ;;  %p47_p7 = scmp.ne.s32.totalorder %s669_s20, %s665_s19 }
   0xc   : > { %p493_p5 = pnand %p492_p4, %p750_p1  ;;  %p48_p8 = scmp.eq.s32.totalorder %s681_s23, 0 }
   0xd   : > { %s860_s9 = smov (%p33_p6, %s31_s9), 0  ;;  %s40_s10 = sadd.s32 1, %s669_s20 }
   0xe   : > { %495 = dma.hbm_to_vmem [thread:$0]  (!%p493_p5), %s194_s28, 512, %s196_s6, [#allocation5], %s684_s7, %s684_s7, %s685_s8  }
   0xf   : > { %p53_p9 = scmp.ne.s32.totalorder %s665_s19, %s661_s18  ;;  %s35_s11 = ssub.s32 %s677_s22, %s860_s9 }
  0x10   : > { %p777_p10 = por %p48_p8, %p47_p7  ;;  %p38_p11 = scmp.eq.s32.totalorder %s35_s11, 0 }
  0x11   : > { %p783_p12 = por %p750_p1, %p53_p9  ;;  %s212_s14 = sand.u32 1, %s669_s20  }
  0x12   : > { %s478_s15 = sshll.u32 %s677_s22, 3  ;;  %p501_p13 = scmp.lt.s32.totalorder %s681_s23, 2 }
  0x13   : > { %s790_s16 = scalar_select %p38_p11, %s669_s20, %s40_s10  }
  0x14   : > { %s477_s17 = sshll.u32 %s212_s14, 3  ;;  %s221_s26 = scalar_lea.hbm %s844_s0, %s478_s15 }
  0x15   : > { %s223_s27 = sshll.u32 %s221_s26, 4  ;;  %s216_s28 = scalar_lea.vmem [#allocation2], %s477_s17  ;;  %s224_s27 = int_to_ptr.hbm [resolvable:$true] %s223_s27 }
  0x16   : > { %s225_s30 = sshll.u32 %s216_s28, 4  ;;  %p497_p0 = pnand %p501_p13, %p777_p10  ;;  %s226_s30 = int_to_ptr.vmem [resolvable:$true] %s225_s30 }
  0x17   : > { %s213_s6 = scalar_lea.sflag [#allocation3], %s212_s14  ;;  %234 = sbr.rel (%p758_p3) target bundleno = 447 (0x1bf), region = 40 }
  0x18   : > { %499 = dma.hbm_to_vmem [thread:$0]  (!%p497_p0), %s224_s27, 128, %s226_s30, %s213_s6  }
  0x19   : > { %s236_s7 = sand.u32 (!%p758_p3), 1, %s665_s19  }
  0x1a   : > { %s480_s8 = sshll.u32 (!%p758_p3), %s236_s7, 3  ;;  %s237_s10 = scalar_lea.sflag (!%p758_p3), [#allocation3], %s236_s7 }
  0x1b   : > { %s240_s11 = scalar_lea.vmem (!%p758_p3), [#allocation2], %s480_s8 }
  0x1c   : > { %652 = dma.done.wait (%p783_p12), %s237_s10, 128  }
  0x1d   : > { %654 = vsyncadd (%p783_p12), %s237_s10, 4294967168 }
  0x1e   : > { %656 = dma.done.wait (%p750_p1), [#allocation5], 512  }
  0x1f   : > { %658 = vsyncadd (%p750_p1), [#allocation5], 4294966784  ;;  %vm285_vm0 = vcmask 261120   ;;  %v282_v0 = vld [vmem:[%s240_s11] sm:$0xff]  ;;  %v686_v2 = vmov 32.0   ;;  %v687_v14 = vmov 31.0  }
  0x20   : > { %v286_v1 = vsel %vm285_vm0, %v282_v0, 0.0  ;;  %559 = vrcp.f32 %v686_v2  ;;  %v349_v18 = vld [vmem:[#allocation4 + $0x18] sm:$0xff]  ;;  %v348_v19 = vld [vmem:[#allocation4 + $0x10] sm:$0xff]  ;;  %v347_v21 = vld [vmem:[#allocation4 + $0x8] sm:$0xff]  ;;  %p275_p1 = scmp.lt.s32.totalorder %s673_s21, 1 }
  0x21   : > { %287 = vadd.xlane.f32.xlu0 %v286_v1  ;;  %561 = vrcp.f32 %v687_v14  ;;  %369 = vmatpush.msra.mxu0 %v349_v18  ;;  %v346_v22 = vld [vmem:[#allocation4] sm:$0xff]  ;;  %v556_v42 = vld [vmem:[%s845_s1] ss:$0 sm:$0xff] }
  0x22   : > { %v557_v49 = vld [vmem:[%s846_s2] ss:$0 sm:$0xff]  ;;  %s862_s21 = smov (!%p275_p1, %s673_s21), 1 }
  0x23   : > { %370 = vmatpush.msra.mxu0 %v348_v19  ;;  %s482_s14 = sshll.u32 %s862_s21, 3  ;;  %v558_v53 = vld [vmem:[%s848_s4] ss:$0 sm:$0xff] }
  0x24   : > { %s281_s26 = scalar_lea.vmem %s849_s5, %s482_s14 }
  0x25   : > { %371 = vmatpush.msra.mxu0 %v347_v21 }
  0x26   : > { %v560_v3 = vpop.eup %559 }
  0x27   : > { %v290_v4 = vmul.f32 32.0, %v560_v3  ;;  %vm294_vm1 = vweird.f32 %v560_v3  ;;  %v562_v15 = vpop.eup %561  ;;  %372 = vmatpush.msra.mxu0 %v346_v22 }
  0x28   : > { %v303_v16 = vmul.f32 31.0, %v562_v15  ;;  %vm307_vm2 = vweird.f32 %v562_v15 }
  0x29   : > { %v291_v5 = vsub.f32 1.0, %v290_v4 }
  0x2a   : > { %v304_v17 = vsub.f32 1.0, %v303_v16 }
  0x2b   : > { %v292_v6 = vmul.f32 %v560_v3, %v291_v5 }
  0x2c   : > { %v305_v20 = vmul.f32 %v562_v15, %v304_v17 }
  0x2d   : > { %v293_v7 = vadd.f32 %v560_v3, %v292_v6 }
  0x2e   : > { %v306_v23 = vadd.f32 %v562_v15, %v305_v20 }
  0x2f   : > { %v295_v8 = vsel %vm294_vm1, %v560_v3, %v293_v7 }
  0x30   : > { %v308_v24 = vsel %vm307_vm2, %v562_v15, %v306_v23 }
  0x94   : > { %v288_v9 = vpop.xlane.xlu0 %287 }
  0x95   : > { %v296_v10 = vmul.f32 %v295_v8, %v288_v9 }
  0x97   : > { %v297_v11 = vsub.f32 %v282_v0, %v296_v10 }
  0x99   : > { %v298_v12 = vmul.f32 %v297_v11, %v297_v11  ;;  %v313_v47 = vmul.f32 %v556_v42, %v297_v11 }
  0x9b   : > { %v299_v13 = vsel %vm285_vm0, %v298_v12, 0.0 }
  0x9c   : > { %300 = vadd.xlane.f32.xlu0 %v299_v13 }
 0x10f   : > { %v301_v25 = vpop.xlane.xlu0 %300 }
 0x110   : > { %v309_v26 = vmul.f32 %v308_v24, %v301_v25 }
 0x112   : > { %563 = vrsqrt.f32 %v309_v26  ;;  %vm321_vm3 = vcmp.eq.f32.partialorder %v309_v26, inf  ;;  %v324_v34 = vand.u32 2147483648, %v309_v26  ;;  %vm323_vm4 = vcmp.eq.f32.partialorder %v309_v26, 0.0 }
 0x118   : > { %v564_v27 = vpop.eup %563 }
 0x119   : > { %v315_v28 = vmul.f32 %v564_v27, %v309_v26 }
 0x11b   : > { %v316_v29 = vmul.f32 %v564_v27, %v315_v28 }
 0x11d   : > { %v317_v30 = vmul.f32 0.5, %v316_v29 }
 0x11f   : > { %v318_v31 = vsub.f32 1.5, %v317_v30 }
 0x121   : > { %v319_v32 = vmul.f32 %v564_v27, %v318_v31 }
 0x123   : > { %v320_v33 = vmul.f32 %v319_v32, %v309_v26 }
 0x125   : > { %v322_v35 = vsel %vm321_vm3, %v309_v26, %v320_v33 }
 0x126   : > { %v325_v36 = vsel %vm323_vm4, %v324_v34, %v322_v35 }
 0x127   : > { %v326_v37 = vadd.f32 1e-06, %v325_v36 }
 0x129   : > { %565 = vrcp.f32 %v326_v37  ;;  %v338_v41 = vand.u32 2147483648, %v326_v37  ;;  %v336_v44 = vand.u32 2147483647, %v326_v37  ;;  %vm332_vm6 = vweird.f32 %v326_v37 }
 0x12b   : > { %v339_v46 = vor.u32 1.1754944e-38, %v338_v41  ;;  %vm337_vm8 = vcmp.eq.f32.partialorder %v336_v44, 8.507059e+37 }
 0x12f   : > { %v566_v38 = vpop.eup %565 }
 0x130   : > { %v328_v39 = vmul.f32 %v566_v38, %v326_v37  ;;  %vm333_vm5 = vweird.f32 %v566_v38 }
 0x131   : > { %vm334_vm7 = vmor %vm332_vm6, %vm333_vm5 }
 0x132   : > { %v329_v40 = vsub.f32 1.0, %v328_v39 }
 0x134   : > { %v330_v43 = vmul.f32 %v566_v38, %v329_v40 }
 0x136   : > { %v331_v45 = vadd.f32 %v566_v38, %v330_v43 }
 0x138   : > { %v335_v48 = vsel %vm334_vm7, %v566_v38, %v331_v45 }
 0x139   : > { %v340_v50 = vsel %vm337_vm8, %v339_v46, %v335_v48 }
 0x13a   : > { %v341_v51 = vmul.f32 %v340_v50, %v313_v47 }
 0x13c   : > { %v345_v52 = vadd.f32 %v557_v49, %v341_v51 }
 0x13e   : > { %483 = vmatmul.msk.f32.vlgmr.msra.gmra.mxu0 %vm285_vm0, %v345_v52 }
 0x1bb   : > { %v374_v54 = vpop.f32.mrf.mxu0 }
 0x1bc   : > { %v375_v55 = vadd.f32 %v558_v53, %v374_v54 }
 0x1be   : > { %377 = vst [vmem:[%s281_s26] sm:$0xff] %v375_v55 }
 0x1bf PF: > { %s19_s23 = sadd.s32 1, %s681_s23   ;;  %s854_s18 = smov %s665_s19 }
 0x1c0   : > { %p16_p2 = scmp.ge.s32.totalorder %s19_s23, 4   ;;  %s855_s19 = smov %s669_s20 }
 0x1c1   : > { %s856_s20 = smov %s790_s16  ;;  %s857_s21 = smov %s677_s22 }
 0x1c2   : > { %s858_s22 = smov %s860_s9  ;;  %18 = sbr.rel (!%p16_p2) target bundleno = 5 (0x5), region = 84 }
 0x1c7   :  { %403 = vsyncpa [#allocation3], 1 }
 0x1c8   :  { %405 = vsyncpa [#allocation3 + $0x1], 1 }
 0x1c9   :  { %406 = vsyncpa [#allocation5], 1 }

// kernel: linformer_decoder_layer.5
= control target key start
LH: loop header
LB: loop body
LE: loop exit
PB: predicated region body
PF: predicated region fallthrough
CT: control target
= control target key end

     0   :  { %s2359_s0 = inlined_call_operand.vmem [shape: f32[2,8,128], index: 0, kind: input, shape index: {}, may-alias: {0,1}]   ;;  %s2360_s1 = inlined_call_operand.vmem [shape: f32[2,8,128], index: 1, kind: input, shape index: {}, may-alias: {0,1}]   ;;  %s2361_s2 = inlined_call_operand.vmem [shape: f32[2,8,4], index: 2, kind: input, shape index: {}]   ;;  %s2362_s3 = inlined_call_operand.hbm [shape: f32[2,8,32], index: 3, kind: input, shape index: {}]   ;;  %s2363_s4 = inlined_call_operand.vmem [shape: f32[32,32], index: 4, kind: input, shape index: {}]   ;;  %s2364_s5 = inlined_call_operand.vmem [shape: f32[1,32], index: 5, kind: input, shape index: {}]   ;;  %s2365_s6 = inlined_call_operand.vmem [shape: f32[1,32], index: 6, kind: input, shape index: {}]   ;;  %s2366_s7 = inlined_call_operand.vmem [shape: f32[1,32], index: 7, kind: input, shape index: {}]   ;;  %s2367_s8 = inlined_call_operand.hbm [shape: f32[32,32], index: 8, kind: input, shape index: {}]   ;;  %s2368_s9 = inlined_call_operand.vmem [shape: f32[1,32], index: 9, kind: input, shape index: {}]   ;;  %s2369_s10 = inlined_call_operand.vmem [shape: f32[2,8,32], index: 10, kind: output, shape index: {0}]   ;;  %s2370_s11 = inlined_call_operand.vmem [shape: f32[2,8,32], index: 11, kind: output, shape index: {1}]  }
   0x1   :  { %2373 = sst [smem:[#allocation12_spill]] %s2367_s8 }
   0x2   :  { %2374 = sst [smem:[#allocation13_spill]] %s2370_s11 }
   0x3   :  { %17 = vsyncpa [#allocation5], 0 }
   0x4   :  { %19 = vsyncpa [#allocation5 + $0x1], 0 }
   0x5   :  { %20 = vsyncpa [#allocation7], 0  ;;  %s2115_s17 = smov 0   ;;  %s2117_s18 = smov 0  }
   0x6   :  { %s2119_s19 = smov 0   ;;  %s2121_s20 = smov 0  }
   0x7   :  { %s2123_s21 = smov 0   ;;  %s2125_s22 = smov 0  }
   0x8 LB: > { %2375 = sst [smem:[#allocation10_spill]] %s2025_s21  ;;  %s1751_s23 = sadd.s32 4294967295, %s2029_s22   ;;  %s2029_s22 = sphi %s2125_s22, %s26_s22   ;;  %s2025_s21 = sphi %s2123_s21, %s2384_s21   ;;  %s2021_s20 = sphi %s2121_s20, %s2383_s20   ;;  %s2017_s19 = sphi %s2119_s19, %s2387_s19   ;;  %s2013_s18 = sphi %s2117_s18, %s2386_s18   ;;  %s2009_s17 = sphi %s2115_s17, %s2385_s17  }
   0x9   : > { %p1753_p0 = scmp.ge.s32.totalorder %s2029_s22, 1  ;;  %p2147_p1 = scmp.eq.s32.totalorder %s1751_s23, 0 }
   0xa   : > { %p335_p2 = scmp.lt.s32.totalorder %s2029_s22, 3  ;;  %s2377_s8 = sld [smem:[#allocation12_spill]] }
   0xb   : > { %s2031_s29 = smov [#allocation6]   ;;  %s2032_s12 = smov 128  }
   0xc   : > { %p2155_p3 = pnand %p1753_p0, %p335_p2  ;;  %s360_s30 = sshll.u32 %s2031_s29, 4  ;;  %s361_s30 = int_to_ptr.vmem [resolvable:$true] %s360_s30 }
   0xd   : > { %s2033_s13 = smov 8   ;;  %s38_s14 = sadd.s32 1, %s2025_s21 }
   0xe   : > { %p1803_p4 = pneg %p2155_p3  ;;  %p40_p6 = scmp.ge.s32.totalorder %s38_s14, 2 }
   0xf   : > { %p136_p7 = scmp.ne.s32.totalorder %s2017_s19, %s2013_s18  ;;  %p137_p8 = scmp.eq.s32.totalorder %s2029_s22, 0 }
  0x10   : > { %s358_s27 = sshll.u32 %s2377_s8, 4  ;;  %p1804_p5 = pnand %p1803_p4, %p2147_p1  ;;  %s359_s27 = int_to_ptr.hbm [resolvable:$true] %s358_s27 }
  0x11   : > { %s2389_s14 = smov (%p40_p6, %s38_s14), 0  ;;  %s129_s15 = sadd.s32 1, %s2017_s19 }
  0x12   : > { %1806 = dma.hbm_to_vmem [thread:$0]  (!%p1804_p5), %s359_s27, 512, %s361_s30, [#allocation7], %s2032_s12, %s2032_s12, %s2033_s13  }
  0x13   : > { %2379 = sst [smem:[#allocation11_spill]] %s2389_s14  ;;  %p142_p9 = scmp.ne.s32.totalorder %s2013_s18, %s2009_s17 }
  0x14   : > { %s124_s16 = ssub.s32 %s2025_s21, %s2389_s14  ;;  %p2174_p10 = por %p137_p8, %p136_p7 }
  0x15   : > { %p127_p11 = scmp.eq.s32.totalorder %s124_s16, 0  ;;  %p2180_p12 = por %p2147_p1, %p142_p9 }
  0x16   : > { %s404_s26 = sand.u32 1, %s2017_s19   ;;  %s1757_s27 = sshll.u32 %s2025_s21, 3 }
  0x17   : > { %s2187_s29 = scalar_select %p127_p11, %s2017_s19, %s129_s15  }
  0x18   : > { %p1812_p13 = scmp.lt.s32.totalorder %s2029_s22, 2  ;;  %s1756_s30 = sshll.u32 %s404_s26, 3 }
  0x19   : > { %s413_s13 = scalar_lea.hbm %s2362_s3, %s1757_s27  ;;  %s408_s14 = scalar_lea.vmem [#allocation4], %s1756_s30 }
  0x1a   : > { %s415_s8 = sshll.u32 %s413_s13, 4  ;;  %s417_s11 = sshll.u32 %s408_s14, 4  ;;  %s416_s8 = int_to_ptr.hbm [resolvable:$true] %s415_s8  ;;  %s418_s11 = int_to_ptr.vmem [resolvable:$true] %s417_s11 }
  0x1b   : > { %p1808_p0 = pnand %p1812_p13, %p2174_p10  ;;  %s405_s16 = scalar_lea.sflag [#allocation5], %s404_s26 }
  0x1c   : > { %426 = sbr.rel (%p2155_p3) target bundleno = 1915 (0x77b), region = 60  ;;  %s428_s15 = sand.u32 (!%p2155_p3), 1, %s2013_s18  }
  0x1d   : > { %1810 = dma.hbm_to_vmem [thread:$0]  (!%p1808_p0), %s416_s8, 128, %s418_s11, %s405_s16  }
  0x1e   : > { %s2198_s21 = sshll.u32 (!%p2155_p3), %s428_s15, 3  ;;  %s429_s12 = scalar_lea.sflag (!%p2155_p3), [#allocation5], %s428_s15 }
  0x1f   : > { %s432_s27 = scalar_lea.vmem (!%p2155_p3), [#allocation4], %s2198_s21 }
  0x21   : > { %2000 = dma.done.wait (%p2180_p12), %s429_s12, 128  }
  0x22   : > { %2002 = vsyncadd (%p2180_p12), %s429_s12, 4294967168 }
  0x23   : > { %2004 = dma.done.wait (%p2147_p1), [#allocation7], 512  }
  0x24   : > { %2006 = vsyncadd (%p2147_p1), [#allocation7], 4294966784  ;;  %p504_p2 = scmp.lt.s32.totalorder %s2021_s20, 1  ;;  %s2034_s23 = smov 32   ;;  %vm581_vm0 = vcmask 64512   ;;  %v843_v17 = vld [vmem:[%s2363_s4 + $0x10] sm:$0xff] }
  0x25   : > { %s2035_s25 = smov 12   ;;  %s2036_s24 = smov 88   ;;  %v693_v18 = vld [vmem:[%s2363_s4 + $0x8] sm:$0xff]  ;;  %vm605_vm1 = vcmask 60416   ;;  %v541_v29 = vld [vmem:[%s2363_s4] sm:$0xff]  ;;  %vm691_vm2 = vcmask 257024  }
  0x26   : > { %s2391_s20 = smov (!%p504_p2, %s2021_s20), 1  ;;  %s2037_s26 = smov 28   ;;  %686 = vmatpush.msra.mxu2 %v541_v29  ;;  %vm1257_vm3 = vcmask 1043456   ;;  %vm1173_vm4 = vcmask 31744   ;;  %v993_v43 = vld [vmem:[%s2363_s4 + $0x18] sm:$0xff] }
  0x27   : > { %s2211_s8 = sshll.u32 %s2391_s20, 3  ;;  %s2038_s20 = smov 96  }
  0x28   : > { %s514_s14 = scalar_lea.vmem %s2360_s1, %s2211_s8  ;;  %s2039_s30 = smov 56  }
  0x29   : > { %v2217_v0 = vld [vmem:[%s514_s14] sm:$0xff]  ;;  %s2040_s17 = smov 20   ;;  %s2041_s13 = smov 64  }
  0x2a   : > { %543 = vrot.lane.b32.xlu0 %v2217_v0, %s2034_s23  ;;  %757 = vrot.lane.b32.xlu1 %v2217_v0, %s2035_s25  ;;  %s2042_s16 = smov 72   ;;  %s2043_s15 = smov 16  }
  0x2b   : > { %729 = vrot.lane.b32.xlu2 %v2217_v0, %s2036_s24  ;;  %s510_s28 = scalar_lea.vmem %s2359_s0, %s2211_s8  ;;  %s2044_s14 = smov 120  }
  0x2c   : > { %v2233_v7 = vld [vmem:[%s510_s28] sm:$0xff]  ;;  %s2045_s23 = smov 8   ;;  %s2046_s25 = smov 24  }
  0x2d   : > { %s2047_s24 = smov 48   ;;  %s2051_s12 = smov 104  }
  0x2e   : > { %s2052_s11 = smov 112  }
  0x32   : > { %694 = vrot.lane.b32.xlu0 %v2217_v0, %s2037_s26  ;;  %578 = vrot.lane.b32.xlu1 %v2217_v0, %s2038_s20  ;;  %s2048_s26 = smov 80  }
  0x33   : > { %792 = vrot.lane.b32.xlu2 %v2217_v0, %s2039_s30 }
  0x85   : > { %v730_v5 = vpop.permute.xlu2 %729 }
  0x86   : > { %750 = vmatpush.msra.mxu3 %v730_v5 }
  0x8d   : > { %v793_v6 = vpop.permute.xlu2 %792 }
  0x9c   : > { %v544_v1 = vpop.permute.xlu0 %543  ;;  %v758_v2 = vpop.permute.xlu1 %757 }
  0x9d   : > { %546 = vxpose.xlu0.b32.start.end [1/1] (short) (narrow) %v544_v1, 8  ;;  %760 = vxpose.xlu2.b32.start.end [1/1] (short) (narrow) %v758_v2, 8 }
  0xa4   : > { %v695_v3 = vpop.permute.xlu0 %694  ;;  %v579_v4 = vpop.permute.xlu1 %578 }
  0xa5   : > { %697 = vxpose.xlu1.b32.start.end [1/1] (short) (narrow) %v695_v3, 8  ;;  %600 = vmatpush.msra.mxu0 %v579_v4 }
  0xa7   : > { %813 = vmatpush.msrb.mxu0 %v793_v6 }
  0xff   : > { %994 = vrot.lane.b32.xlu1 %v2217_v0, %s2040_s17 }
 0x106   : > { %642 = vrot.lane.b32.xlu2 %v2217_v0, %s2041_s13 }
 0x107   : > { %1029 = vrot.lane.b32.xlu1 %v2217_v0, %s2042_s16  ;;  %s2049_s16 = smov 4  }
 0x10b   : > { %607 = vrot.lane.b32.xlu0 %v2217_v0, %s2043_s15  ;;  %s2050_s15 = smov 40  }
 0x113   : > { %1201 = vrot.lane.b32.xlu0 %v2233_v7, %s2044_s14 }
 0x11b   : > { %907 = vrot.lane.b32.xlu0 %v2217_v0, %s2045_s23 }
 0x123   : > { %844 = vrot.lane.b32.xlu0 %v2217_v0, %s2046_s25 }
 0x12b   : > { %942 = vrot.lane.b32.xlu0 %v2217_v0, %s2047_s24  ;;  %s521_s24 = scalar_lea.vmem %s2361_s2, %s2211_s8 }
 0x12c   : > { %v2274_v37 = vld [vmem:[%s521_s24] sm:$0xff]  ;;  %s2382_s24 = sld [smem:[#allocation13_spill]] }
 0x133   : > { %879 = vrot.lane.b32.xlu0 %v2217_v0, %s2048_s26  ;;  %s535_s26 = scalar_lea.vmem %s2382_s24, %s2211_s8 }
 0x136   : > { %v776_v10 = vpop.trf.xlu2 }
 0x141   : > { %v562_v8 = vpop.trf.xlu0 }
 0x142   : > { %1766 = vmatmul.msk.f32.vlgmr.msra.gmra.mxu0 %vm581_vm0, %v562_v8 }
 0x143   : > { %986 = vmatpush.msra.mxu0 %v843_v17 }
 0x149   : > { %v713_v9 = vpop.trf.xlu1 }
 0x14a   : > { %1769 = vmatmul.msk.f32.vlgmr.msra.gmra.mxu3 %vm581_vm0, %v713_v9  ;;  %1770 = vmatmul.msk.f32.vlgmr.msrb.gmra.mxu0 %vm581_vm0, %v776_v10 }
 0x160   : > { %v643_v12 = vpop.permute.xlu2 %642 }
 0x161   : > { %663 = vmatpush.msra.mxu1 %v643_v12 }
 0x163   : > { %836 = vmatpush.msrb.mxu1 %v693_v18 }
 0x171   : > { %v995_v11 = vpop.permute.xlu1 %994 }
 0x172   : > { %997 = vxpose.xlu1.b32.start.end [1/1] (short) (narrow) %v995_v11, 8 }
 0x179   : > { %v1030_v24 = vpop.permute.xlu1 %1029 }
 0x17d   : > { %v608_v13 = vpop.permute.xlu0 %607 }
 0x17e   : > { %610 = vxpose.xlu2.b32.start.end [1/1] (short) (narrow) %v608_v13, 8 }
 0x185   : > { %v1202_v14 = vpop.permute.xlu0 %1201 }
 0x18d   : > { %v908_v15 = vpop.permute.xlu0 %907 }
 0x18e   : > { %910 = vxpose.xlu2.b32.start.end [1/1] (short) (narrow) %v908_v15, 8 }
 0x195   : > { %v845_v16 = vpop.permute.xlu0 %844 }
 0x196   : > { %847 = vxpose.xlu0.b32.start.end [1/1] (short) (narrow) %v845_v16, 8 }
 0x19d   : > { %v943_v22 = vpop.permute.xlu0 %942 }
 0x19e   : > { %963 = vmatpush.msrb.mxu3 %v943_v22 }
 0x1a0   : > { %1136 = vmatpush.msra.mxu3 %v993_v43 }
 0x1a5   : > { %v880_v30 = vpop.permute.xlu0 %879 }
 0x1a6   : > { %900 = vmatpush.msrb.mxu2 %v880_v30 }
 0x1bf   : > { %v602_v19 = vpop.f32.mrf.mxu0 }
 0x1c0   : > { %606 = vst.msk [vmem:[#allocation2] sm:$0xf] %vm605_vm1, %v602_v19 }
 0x1c7   : > { %v1145_v20 = vld [vmem:[#allocation2] sm:$0xf]  ;;  %v815_v25 = vpop.f32.mrf.mxu0 }
 0x1c8   : > { %1778 = vmatpush.xpose.msk.msrb.mxu0 %vm581_vm0, %v1145_v20 }
 0x1cc   : > { %1057 = vrot.lane.b32.xlu1 %v2217_v0, %s2049_s16 }
 0x1cd   : > { %v752_v21 = vpop.f32.mrf.mxu3 }
 0x1ce   : > { %756 = vst.msk [vmem:[#allocation2 + $0x4] sm:$0xf] %vm605_vm1, %v752_v21 }
 0x1d5   : > { %v1200_v26 = vld [vmem:[#allocation2 + $0x4] sm:$0xf] }
 0x204   : > { %1092 = vrot.lane.b32.xlu0 %v2217_v0, %s2050_s15  ;;  %s528_s15 = scalar_lea.vmem %s2369_s10, %s2211_s8 }
 0x20c   : > { %1391 = vrot.lane.b32.xlu0 %v2233_v7, %s2051_s12 }
 0x214   : > { %1309 = vrot.lane.b32.xlu0 %v2233_v7, %s2052_s11 }
 0x216   : > { %v1013_v27 = vpop.trf.xlu1 }
 0x217   : > { %v626_v23 = vpop.trf.xlu2 }
 0x218   : > { %1767 = vmatmul.msk.f32.vlgmr.msra.gmra.mxu1 %vm581_vm0, %v626_v23 }
 0x219   : > { %1050 = vmatpush.msra.mxu1 %v1030_v24 }
 0x220   : > { %1771 = vmatmul.msk.f32.vlgmr.msrb.gmra.mxu1 %vm581_vm0, %v815_v25 }
 0x221   : > { %1780 = vmatpush.xpose.msk.msrb.mxu1 %vm581_vm0, %v1200_v26 }
 0x227   : > { %v926_v28 = vpop.trf.xlu2 }
 0x228   : > { %1775 = vmatmul.msk.f32.vlgmr.msra.gmra.mxu1 %vm581_vm0, %v1013_v27  ;;  %1773 = vmatmul.msk.f32.vlgmr.msrb.gmra.mxu3 %vm581_vm0, %v926_v28 }
 0x230   : > { %1781 = vmatmul.msk.f32.vlgmr.msrb.gmra.mxu1 %vm581_vm0, %v1202_v14 }
 0x23a   : > { %v863_v31 = vpop.trf.xlu0 }
 0x23e   : > { %v1058_v42 = vpop.permute.xlu1 %1057 }
 0x276   : > { %v1093_v32 = vpop.permute.xlu0 %1092 }
 0x27e   : > { %v1392_v45 = vpop.permute.xlu0 %1391 }
 0x286   : > { %v1310_v53 = vpop.permute.xlu0 %1309 }
 0x295   : > { %v665_v33 = vpop.f32.mrf.mxu1 }
 0x296   : > { %1768 = vmatmul.msk.f32.vlgmr.msra.gmra.mxu2 %vm581_vm0, %v665_v33 }
 0x297   : > { %1113 = vmatpush.msra.mxu2 %v1093_v32 }
 0x29d   : > { %v838_v34 = vpop.f32.mrf.mxu1 }
 0x29e   : > { %842 = vst.msk [vmem:[#allocation3 + $0x4] sm:$0xf] %vm691_vm2, %v838_v34  ;;  %1772 = vmatmul.msk.f32.vlgmr.msrb.gmra.mxu2 %vm581_vm0, %v863_v31 }
 0x2a5   : > { %v1052_v35 = vpop.f32.mrf.mxu1  ;;  %v1253_v36 = vld [vmem:[#allocation3 + $0x4] sm:$0xf] }
 0x2a6   : > { %1056 = vst.msk [vmem:[#allocation2 + $0xc] sm:$0xf] %vm605_vm1, %v1052_v35  ;;  %1782 = vmatpush.msk.msrb.mxu2 %vm1257_vm3, %v1253_v36 }
 0x2ab   : > { %v965_v38 = vpop.f32.mrf.mxu3 }
 0x2ac   : > { %1774 = vmatmul.msk.f32.vlgmr.msra.gmra.mxu0 %vm581_vm0, %v965_v38 }
 0x2ad   : > { %v1225_v39 = vpop.f32.mrf.mxu1  ;;  %v1390_v60 = vld [vmem:[#allocation2 + $0xc] sm:$0xf] }
 0x2ae   : > { %v1226_v40 = vadd.f32 %v1225_v39, %v2274_v37 }
 0x2b0   : > { %v1228_v41 = vsel %vm1173_vm4, %v1226_v40, -inf }
 0x2b1   : > { %1229 = vmax.xlane.f32.xlu2 %v1228_v41 }
 0x2b4   : > { %1779 = vmatmul.msk.f32.vlgmr.msrb.gmra.mxu0 %vm581_vm0, %v2233_v7 }
 0x2da   : > { %1060 = vxpose.xlu2.b32.start.end [1/1] (short) (narrow) %v1058_v42, 8 }
 0x319   : > { %v688_v44 = vpop.f32.mrf.mxu2 }
 0x31a   : > { %692 = vst.msk [vmem:[#allocation3] sm:$0xf] %vm691_vm2, %v688_v44 }
 0x321   : > { %v1198_v46 = vld [vmem:[#allocation3] sm:$0xf]  ;;  %v902_v47 = vpop.f32.mrf.mxu2 }
 0x322   : > { %1784 = vmatpush.msk.msrb.mxu3 %vm1257_vm3, %v1198_v46  ;;  %906 = vst.msk [vmem:[#allocation2 + $0x8] sm:$0xf] %vm605_vm1, %v902_v47 }
 0x324   : > { %v1230_v48 = vpop.xlane.xlu2 %1229 }
 0x325   : > { %v1231_v49 = vsub.f32 %v1226_v40, %v1230_v48 }
 0x327   : > { %v1232_v50 = vmul.f32 1.442695, %v1231_v49 }
 0x329   : > { %1891 = vpow2.f32 %v1232_v50  ;;  %v988_v51 = vpop.f32.mrf.mxu0  ;;  %v1308_v52 = vld [vmem:[#allocation2 + $0x8] sm:$0xf] }
 0x32a   : > { %992 = vst.msk [vmem:[#allocation3 + $0x8] sm:$0xf] %vm691_vm2, %v988_v51  ;;  %1786 = vmatpush.xpose.msk.msra.mxu0 %vm581_vm0, %v1308_v52 }
 0x32d   : > { %1787 = vmatmul.msk.f32.vlgmr.msra.gmra.mxu0 %vm581_vm0, %v1310_v53 }
 0x32f   : > { %v1892_v54 = vpop.eup %1891 }
 0x330   : > { %v1234_v55 = vsel %vm1173_vm4, %v1892_v54, 0.0 }
 0x331   : > { %1235 = vadd.xlane.f32.xlu1 %v1234_v55  ;;  %v1170_v56 = vpop.f32.mrf.mxu0  ;;  %v1361_v61 = vld [vmem:[#allocation3 + $0x8] sm:$0xf] }
 0x332   : > { %v1171_v57 = vadd.f32 %v1170_v56, %v2274_v37  ;;  %1788 = vmatpush.msk.msra.mxu1 %vm1257_vm3, %v1361_v61 }
 0x334   : > { %v1174_v58 = vsel %vm1173_vm4, %v1171_v57, -inf }
 0x339   : > { %1175 = vmax.xlane.f32.xlu1 %v1174_v58 }
 0x373   : > { %v1076_v59 = vpop.trf.xlu2 }
 0x374   : > { %1776 = vmatmul.msk.f32.vlgmr.msra.gmra.mxu2 %vm581_vm0, %v1076_v59 }
 0x375   : > { %1790 = vmatpush.xpose.msk.msra.mxu2 %vm581_vm0, %v1390_v60 }
 0x3a4   : > { %v1236_v62 = vpop.xlane.xlu1 %1235 }
 0x3a5   : > { %1893 = vrcp.f32 %v1236_v62  ;;  %v1248_v7 = vand.u32 2147483648, %v1236_v62  ;;  %v1246_v10 = vand.u32 2147483647, %v1236_v62  ;;  %vm1242_vm6 = vweird.f32 %v1236_v62 }
 0x3a7   : > { %v1249_v12 = vor.u32 1.1754944e-38, %v1248_v7  ;;  %vm1247_vm8 = vcmp.eq.f32.partialorder %v1246_v10, 8.507059e+37 }
 0x3aa   : > { %v1333_v63 = vpop.f32.mrf.mxu0 }
 0x3ab   : > { %v1894_v0 = vpop.eup %1893  ;;  %v1334_v1 = vadd.f32 %v1333_v63, %v2274_v37 }
 0x3ac   : > { %v1238_v2 = vmul.f32 %v1894_v0, %v1236_v62  ;;  %v1176_v3 = vpop.xlane.xlu1 %1175  ;;  %vm1243_vm5 = vweird.f32 %v1894_v0 }
 0x3ad   : > { %v1177_v4 = vsub.f32 %v1171_v57, %v1176_v3  ;;  %v1336_v5 = vsel %vm1173_vm4, %v1334_v1, -inf  ;;  %vm1244_vm7 = vmor %vm1242_vm6, %vm1243_vm5  ;;  %vm1478_vm6 = vcmask 261120  }
 0x3ae   : > { %v1239_v6 = vsub.f32 1.0, %v1238_v2  ;;  %1337 = vmax.xlane.f32.xlu0 %v1336_v5 }
 0x3af   : > { %v1178_v8 = vmul.f32 1.442695, %v1177_v4 }
 0x3b0   : > { %v1240_v9 = vmul.f32 %v1894_v0, %v1239_v6 }
 0x3b1   : > { %1895 = vpow2.f32 %v1178_v8 }
 0x3b2   : > { %v1241_v11 = vadd.f32 %v1894_v0, %v1240_v9 }
 0x3b4   : > { %v1245_v13 = vsel %vm1244_vm7, %v1894_v0, %v1241_v11 }
 0x3b5   : > { %v1250_v14 = vsel %vm1247_vm8, %v1249_v12, %v1245_v13  ;;  %v1471_v12 = vld [vmem:[%s432_s27] sm:$0xff] }
 0x3b6   : > { %v1251_v15 = vmul.f32 %v1892_v54, %v1250_v14  ;;  %v1887_v14 = vld [vmem:[%s2364_s5] ss:$0 sm:$0xff] }
 0x3b7   : > { %v1896_v16 = vpop.eup %1895 }
 0x3b8   : > { %1783 = vmatmul.msk.f32.vlgmr.msrb.gmra.mxu2 %vm1173_vm4, %v1251_v15  ;;  %v1180_v17 = vsel %vm1173_vm4, %v1896_v16, 0.0 }
 0x3b9   : > { %1181 = vadd.xlane.f32.xlu1 %v1180_v17 }
 0x3c0   : > { %1791 = vmatmul.msk.f32.vlgmr.msra.gmra.mxu2 %vm581_vm0, %v1392_v45 }
 0x3f7   : > { %v1115_v18 = vpop.f32.mrf.mxu2 }
 0x3f8   : > { %1777 = vmatmul.msk.f32.vlgmr.msra.gmra.mxu3 %vm581_vm0, %v1115_v18  ;;  %v2053_v18 = vmov 32.0  }
 0x421   : > { %v1338_v38 = vpop.xlane.xlu0 %1337 }
 0x422   : > { %v1339_v41 = vsub.f32 %v1334_v1, %v1338_v38  ;;  %v1544_v38 = vld [vmem:[#allocation6 + $0x10] sm:$0xff] }
 0x424   : > { %v1340_v43 = vmul.f32 1.442695, %v1339_v41  ;;  %v1542_v41 = vld [vmem:[#allocation6] sm:$0xff] }
 0x42c   : > { %v1182_v19 = vpop.xlane.xlu1 %1181 }
 0x42d   : > { %1897 = vrcp.f32 %v1182_v19  ;;  %v1194_v22 = vand.u32 2147483648, %v1182_v19  ;;  %vm1188_vm9 = vweird.f32 %v1182_v19  ;;  %v1192_v24 = vand.u32 2147483647, %v1182_v19 }
 0x42f   : > { %v1195_v26 = vor.u32 1.1754944e-38, %v1194_v22  ;;  %vm1193_vm12 = vcmp.eq.f32.partialorder %v1192_v24, 8.507059e+37 }
 0x433   : > { %v1898_v20 = vpop.eup %1897 }
 0x434   : > { %v1184_v21 = vmul.f32 %v1898_v20, %v1182_v19  ;;  %vm1189_vm10 = vweird.f32 %v1898_v20 }
 0x435   : > { %vm1190_vm11 = vmor %vm1188_vm9, %vm1189_vm10 }
 0x436   : > { %v1185_v23 = vsub.f32 1.0, %v1184_v21 }
 0x438   : > { %v1186_v25 = vmul.f32 %v1898_v20, %v1185_v23 }
 0x43a   : > { %v1187_v27 = vadd.f32 %v1898_v20, %v1186_v25 }
 0x43b   : > { %v2302_v28 = vpop.f32.mrf.mxu2 }
 0x43c   : > { %v1191_v29 = vsel %vm1190_vm11, %v1898_v20, %v1187_v27 }
 0x43d   : > { %v1196_v30 = vsel %vm1193_vm12, %v1195_v26, %v1191_v29 }
 0x43e   : > { %v1197_v31 = vmul.f32 %v1896_v16, %v1196_v30  ;;  %v2054_v30 = vmov 31.0  }
 0x440   : > { %1785 = vmatmul.msk.f32.vlgmr.msrb.gmra.mxu3 %vm1173_vm4, %v1197_v31 }
 0x443   : > { %v1415_v32 = vpop.f32.mrf.mxu2 }
 0x444   : > { %v1416_v33 = vadd.f32 %v1415_v32, %v2274_v37 }
 0x446   : > { %v1418_v34 = vsel %vm1173_vm4, %v1416_v33, -inf }
 0x447   : > { %1419 = vmax.xlane.f32.xlu2 %v1418_v34 }
 0x47b   : > { %v1138_v35 = vpop.f32.mrf.mxu3 }
 0x47c   : > { %1142 = vst.msk [vmem:[#allocation3 + $0xc] sm:$0xf] %vm691_vm2, %v1138_v35 }
 0x483   : > { %v1443_v36 = vld [vmem:[#allocation3 + $0xc] sm:$0xf] }
 0x484   : > { %1792 = vmatpush.msk.msra.mxu3 %vm1257_vm3, %v1443_v36  ;;  %v1545_v36 = vld [vmem:[#allocation6 + $0x18] sm:$0xff] }
 0x485   : > { %1565 = vmatpush.msrb.mxu0 %v1545_v36 }
 0x487   : > { %1566 = vmatpush.msrb.mxu0 %v1544_v38 }
 0x4ba   : > { %v1420_v39 = vpop.xlane.xlu2 %1419 }
 0x4bb   : > { %v1421_v40 = vsub.f32 %v1416_v33, %v1420_v39  ;;  %v1543_v39 = vld [vmem:[#allocation6 + $0x8] sm:$0xff] }
 0x4bc   : > { %1567 = vmatpush.msrb.mxu0 %v1543_v39 }
 0x4bd   : > { %v1422_v42 = vmul.f32 1.442695, %v1421_v40 }
 0x4be   : > { %1568 = vmatpush.msrb.mxu0 %v1542_v41 }
 0x4bf   : > { %1899 = vpow2.f32 %v1422_v42 }
 0x4c0   : > { %1901 = vpow2.f32 %v1340_v43 }
 0x4c3   : > { %v1304_v7 = vpop.f32.mrf.mxu3 }
 0x4c4   : > { %v1305_v8 = vadd.f32 %v1304_v7, %v2302_v28 }
 0x4c5   : > { %v1900_v44 = vpop.eup %1899 }
 0x4c6   : > { %v1424_v37 = vsel %vm1173_vm4, %v1900_v44, 0.0  ;;  %v1902_v45 = vpop.eup %1901 }
 0x4c7   : > { %1425 = vadd.xlane.f32.xlu1 %v1424_v37  ;;  %v1342_v46 = vsel %vm1173_vm4, %v1902_v45, 0.0 }
 0x4cf   : > { %1343 = vadd.xlane.f32.xlu1 %v1342_v46 }
 0x53a   : > { %v1426_v47 = vpop.xlane.xlu1 %1425 }
 0x53b   : > { %1903 = vrcp.f32 %v1426_v47  ;;  %v1438_v52 = vand.u32 2147483648, %v1426_v47  ;;  %v1436_v54 = vand.u32 2147483647, %v1426_v47  ;;  %vm1432_vm14 = vweird.f32 %v1426_v47 }
 0x53d   : > { %v1439_v57 = vor.u32 1.1754944e-38, %v1438_v52  ;;  %vm1437_vm0 = vcmp.eq.f32.partialorder %v1436_v54, 8.507059e+37 }
 0x541   : > { %v1904_v48 = vpop.eup %1903 }
 0x542   : > { %v1428_v49 = vmul.f32 %v1904_v48, %v1426_v47  ;;  %v1344_v50 = vpop.xlane.xlu1 %1343  ;;  %vm1433_vm13 = vweird.f32 %v1904_v48 }
 0x543   : > { %1905 = vrcp.f32 %v1344_v50  ;;  %vm1434_vm15 = vmor %vm1432_vm14, %vm1433_vm13  ;;  %v1356_v63 = vand.u32 2147483648, %v1344_v50  ;;  %v1354_v1 = vand.u32 2147483647, %v1344_v50  ;;  %vm1350_vm2 = vweird.f32 %v1344_v50 }
 0x544   : > { %v1429_v51 = vsub.f32 1.0, %v1428_v49  ;;  %1907 = vrcp.f32 %v2053_v18 }
 0x545   : > { %v1357_v3 = vor.u32 1.1754944e-38, %v1356_v63  ;;  %vm1355_vm5 = vcmp.eq.f32.partialorder %v1354_v1, 8.507059e+37  ;;  %1909 = vrcp.f32 %v2054_v30  ;;  %v1889_v1 = vld [vmem:[%s2366_s7] ss:$0 sm:$0xff] }
 0x546   : > { %v1430_v53 = vmul.f32 %v1904_v48, %v1429_v51 }
 0x548   : > { %v1431_v55 = vadd.f32 %v1904_v48, %v1430_v53 }
 0x549   : > { %v1906_v56 = vpop.eup %1905 }
 0x54a   : > { %v1435_v58 = vsel %vm1434_vm15, %v1904_v48, %v1431_v55  ;;  %v1346_v59 = vmul.f32 %v1906_v56, %v1344_v50  ;;  %vm1351_vm1 = vweird.f32 %v1906_v56  ;;  %v1908_v19 = vpop.eup %1907 }
 0x54b   : > { %v1440_v60 = vsel %vm1437_vm0, %v1439_v57, %v1435_v58  ;;  %vm1352_vm3 = vmor %vm1350_vm2, %vm1351_vm1  ;;  %v1486_v20 = vmul.f32 32.0, %v1908_v19  ;;  %v1910_v31 = vpop.eup %1909  ;;  %v1888_v58 = vld [vmem:[%s2365_s6] ss:$0 sm:$0xff] }
 0x54c   : > { %v1347_v61 = vsub.f32 1.0, %v1346_v59  ;;  %v1441_v62 = vmul.f32 %v1900_v44, %v1440_v60  ;;  %v1499_v32 = vmul.f32 31.0, %v1910_v31  ;;  %vm1503_vm7 = vweird.f32 %v1910_v31 }
 0x54d   : > { %v1487_v21 = vsub.f32 1.0, %v1486_v20 }
 0x54e   : > { %v1348_v0 = vmul.f32 %v1906_v56, %v1347_v61  ;;  %1793 = vmatmul.msk.f32.vlgmr.msra.gmra.mxu3 %vm1173_vm4, %v1441_v62  ;;  %v1500_v33 = vsub.f32 1.0, %v1499_v32 }
 0x54f   : > { %v1488_v22 = vmul.f32 %v1908_v19, %v1487_v21 }
 0x550   : > { %v1349_v2 = vadd.f32 %v1906_v56, %v1348_v0  ;;  %v1501_v34 = vmul.f32 %v1910_v31, %v1500_v33 }
 0x551   : > { %v1489_v23 = vadd.f32 %v1908_v19, %v1488_v22 }
 0x552   : > { %v1353_v4 = vsel %vm1352_vm3, %v1906_v56, %v1349_v2  ;;  %v1502_v35 = vadd.f32 %v1910_v31, %v1501_v34 }
 0x553   : > { %v1358_v5 = vsel %vm1355_vm5, %v1357_v3, %v1353_v4 }
 0x554   : > { %v1359_v6 = vmul.f32 %v1902_v45, %v1358_v5  ;;  %v1504_v40 = vsel %vm1503_vm7, %v1910_v31, %v1502_v35  ;;  %v1890_v5 = vld [vmem:[%s2368_s9] ss:$0 sm:$0xff] }
 0x556   : > { %1789 = vmatmul.msk.f32.vlgmr.msra.gmra.mxu1 %vm1173_vm4, %v1359_v6  ;;  %vm1490_vm4 = vweird.f32 %v1908_v19 }
 0x557   : > { %v1491_v24 = vsel %vm1490_vm4, %v1908_v19, %v1489_v23 }
 0x5d1   : > { %v1467_v11 = vpop.f32.mrf.mxu3 }
 0x5d3   : > { %v1385_v9 = vpop.f32.mrf.mxu1 }
 0x5d4   : > { %v1388_v10 = vadd.f32 %v1385_v9, %v1305_v8 }
 0x5d6   : > { %v1470_v13 = vadd.f32 %v1467_v11, %v1388_v10 }
 0x5d8   : > { %v1472_v15 = vadd.f32 %v1471_v12, %v1470_v13 }
 0x5da   : > { %v1477_v16 = vadd.f32 %v1887_v14, %v1472_v15 }
 0x5dc   : > { %v1482_v17 = vsel %vm1478_vm6, %v1477_v16, 0.0  ;;  %1479 = vst.msk [vmem:[%s528_s15] sm:$0xff] %vm1478_vm6, %v1477_v16 }
 0x5dd   : > { %1483 = vadd.xlane.f32.xlu1 %v1482_v17 }
 0x650   : > { %v1484_v25 = vpop.xlane.xlu1 %1483 }
 0x651   : > { %v1492_v26 = vmul.f32 %v1491_v24, %v1484_v25 }
 0x653   : > { %v1493_v27 = vsub.f32 %v1477_v16, %v1492_v26 }
 0x655   : > { %v1494_v28 = vmul.f32 %v1493_v27, %v1493_v27  ;;  %v1509_v63 = vmul.f32 %v1888_v58, %v1493_v27 }
 0x657   : > { %v1495_v29 = vsel %vm1478_vm6, %v1494_v28, 0.0 }
 0x658   : > { %1496 = vadd.xlane.f32.xlu1 %v1495_v29 }
 0x6cb   : > { %v1497_v42 = vpop.xlane.xlu1 %1496 }
 0x6cc   : > { %v1505_v43 = vmul.f32 %v1504_v40, %v1497_v42 }
 0x6ce   : > { %1911 = vrsqrt.f32 %v1505_v43  ;;  %vm1517_vm8 = vcmp.eq.f32.partialorder %v1505_v43, inf  ;;  %v1520_v50 = vand.u32 2147483648, %v1505_v43  ;;  %vm1519_vm9 = vcmp.eq.f32.partialorder %v1505_v43, 0.0 }
 0x6d4   : > { %v1912_v44 = vpop.eup %1911 }
 0x6d5   : > { %v1511_v37 = vmul.f32 %v1912_v44, %v1505_v43 }
 0x6d7   : > { %v1512_v45 = vmul.f32 %v1912_v44, %v1511_v37 }
 0x6d9   : > { %v1513_v46 = vmul.f32 0.5, %v1512_v45 }
 0x6db   : > { %v1514_v47 = vsub.f32 1.5, %v1513_v46 }
 0x6dd   : > { %v1515_v48 = vmul.f32 %v1912_v44, %v1514_v47 }
 0x6df   : > { %v1516_v49 = vmul.f32 %v1515_v48, %v1505_v43 }
 0x6e1   : > { %v1518_v51 = vsel %vm1517_vm8, %v1505_v43, %v1516_v49 }
 0x6e2   : > { %v1521_v52 = vsel %vm1519_vm9, %v1520_v50, %v1518_v51 }
 0x6e3   : > { %v1522_v53 = vadd.f32 1e-06, %v1521_v52 }
 0x6e5   : > { %1913 = vrcp.f32 %v1522_v53  ;;  %v1534_v57 = vand.u32 2147483648, %v1522_v53  ;;  %v1532_v60 = vand.u32 2147483647, %v1522_v53  ;;  %vm1528_vm11 = vweird.f32 %v1522_v53 }
 0x6e7   : > { %v1535_v62 = vor.u32 1.1754944e-38, %v1534_v57  ;;  %vm1533_vm13 = vcmp.eq.f32.partialorder %v1532_v60, 8.507059e+37 }
 0x6eb   : > { %v1914_v54 = vpop.eup %1913 }
 0x6ec   : > { %v1524_v55 = vmul.f32 %v1914_v54, %v1522_v53  ;;  %vm1529_vm10 = vweird.f32 %v1914_v54 }
 0x6ed   : > { %vm1530_vm12 = vmor %vm1528_vm11, %vm1529_vm10 }
 0x6ee   : > { %v1525_v56 = vsub.f32 1.0, %v1524_v55 }
 0x6f0   : > { %v1526_v59 = vmul.f32 %v1914_v54, %v1525_v56 }
 0x6f2   : > { %v1527_v61 = vadd.f32 %v1914_v54, %v1526_v59 }
 0x6f4   : > { %v1531_v0 = vsel %vm1530_vm12, %v1914_v54, %v1527_v61 }
 0x6f5   : > { %v1536_v2 = vsel %vm1533_vm13, %v1535_v62, %v1531_v0 }
 0x6f6   : > { %v1537_v3 = vmul.f32 %v1536_v2, %v1509_v63 }
 0x6f8   : > { %v1541_v4 = vadd.f32 %v1889_v1, %v1537_v3 }
 0x6fa   : > { %1794 = vmatmul.msk.f32.vlgmr.msrb.gmra.mxu0 %vm1478_vm6, %v1541_v4 }
 0x777   : > { %v1570_v6 = vpop.f32.mrf.mxu0 }
 0x778   : > { %v1571_v7 = vadd.f32 %v1890_v5, %v1570_v6 }
 0x77a   : > { %1573 = vst.msk [vmem:[%s535_s26] sm:$0xff] %vm1478_vm6, %v1571_v7 }
 0x77b PF: > { %s26_s22 = sadd.s32 1, %s2029_s22   ;;  %s2383_s20 = sld [smem:[#allocation10_spill]] }
 0x77c   : > { %p23_p1 = scmp.ge.s32.totalorder %s26_s22, 4   ;;  %s2384_s21 = sld [smem:[#allocation11_spill]] }
 0x77d   : > { %s2385_s17 = smov %s2013_s18  ;;  %s2386_s18 = smov %s2017_s19 }
 0x77e   : > { %s2387_s19 = smov %s2187_s29  ;;  %25 = sbr.rel (!%p23_p1) target bundleno = 8 (0x8), region = 141 }
 0x783   :  { %1619 = vsyncpa [#allocation5], 1 }
 0x784   :  { %1621 = vsyncpa [#allocation5 + $0x1], 1 }
 0x785   :  { %1622 = vsyncpa [#allocation7], 1 }

// kernel: linformer_decoder_layer.6
= control target key start
LH: loop header
LB: loop body
LE: loop exit
PB: predicated region body
PF: predicated region fallthrough
CT: control target
= control target key end

     0   :  { %s2159_s0 = inlined_call_operand.vmem [shape: f32[2,8,32], index: 0, kind: input, shape index: {}]   ;;  %s2160_s1 = inlined_call_operand.hbm [shape: f32[2,8,32], index: 1, kind: input, shape index: {}]   ;;  %s2161_s2 = inlined_call_operand.hbm [shape: f32[32,96], index: 2, kind: input, shape index: {}]   ;;  %s2162_s3 = inlined_call_operand.vmem [shape: f32[1,96], index: 3, kind: input, shape index: {}]   ;;  %s2163_s4 = inlined_call_operand.vmem [shape: f32[2,1,4], index: 4, kind: input, shape index: {}]   ;;  %s2164_s5 = inlined_call_operand.vmem [shape: f32[2,8,32], index: 5, kind: input, shape index: {}]   ;;  %s2165_s6 = inlined_call_operand.hbm [shape: f32[32,32], index: 6, kind: input, shape index: {}]   ;;  %s2166_s7 = inlined_call_operand.vmem [shape: f32[1,32], index: 7, kind: input, shape index: {}]   ;;  %s2167_s8 = inlined_call_operand.vmem [shape: f32[2,8,32], index: 8, kind: output, shape index: {}]  }
   0x1   :  { %2169 = sst [smem:[#allocation12_spill]] %s2161_s2 }
   0x2   :  { %2170 = sst [smem:[#allocation13_spill]] %s2165_s6 }
   0x3   :  { %13 = vsyncpa [#allocation5], 0 }
   0x4   :  { %15 = vsyncpa [#allocation5 + $0x1], 0 }
   0x5   :  { %16 = vsyncpa [#allocation7], 0  ;;  %s1932_s27 = smov 0   ;;  %s1934_s28 = smov 0  }
   0x6   :  { %s1936_s29 = smov 0   ;;  %s1938_s30 = smov 0  }
   0x7   :  { %s1940_s9 = smov 0   ;;  %s1942_s10 = smov 0  }
   0x8 LB: > { %s1563_s11 = sadd.s32 4294967295, %s1866_s10   ;;  %p1565_p0 = scmp.ge.s32.totalorder %s1866_s10, 1  ;;  %s1866_s10 = sphi %s1942_s10, %s22_s10   ;;  %s1862_s9 = sphi %s1940_s9, %s2183_s9   ;;  %s1858_s30 = sphi %s1938_s30, %s2182_s30   ;;  %s1854_s29 = sphi %s1936_s29, %s2181_s29   ;;  %s1850_s28 = sphi %s1934_s28, %s2180_s28   ;;  %s1846_s27 = sphi %s1932_s27, %s2179_s27  }
   0x9   : > { %p1964_p1 = scmp.eq.s32.totalorder %s1563_s11, 0  ;;  %p259_p2 = scmp.lt.s32.totalorder %s1866_s10, 3 }
   0xa   : > { %s2172_s2 = sld [smem:[#allocation12_spill]]  ;;  %s1868_s17 = smov [#allocation6]  }
   0xb   : > { %p1972_p3 = pnand %p1565_p0, %p259_p2  ;;  %s272_s18 = sshll.u32 %s1868_s17, 4  ;;  %s273_s18 = int_to_ptr.vmem [resolvable:$true] %s272_s18 }
   0xc   : > { %s2174_s6 = sld [smem:[#allocation13_spill]]  ;;  %s1869_s22 = smov 128  }
   0xd   : > { %p1619_p4 = pneg %p1972_p3  ;;  %s1870_s23 = smov 8  }
   0xe   : > { %s1871_s24 = smov [#allocation8]   ;;  %s34_s26 = sadd.s32 1, %s1862_s9 }
   0xf   : > { %p1620_p5 = pnand %p1619_p4, %p1964_p1  ;;  %s289_s25 = sshll.u32 %s1871_s24, 4  ;;  %s290_s25 = int_to_ptr.vmem [resolvable:$true] %s289_s25 }
  0x10   : > { %s270_s15 = sshll.u32 %s2172_s2, 4  ;;  %s69_s11 = sadd.s32 1, %s1854_s29  ;;  %s271_s15 = int_to_ptr.hbm [resolvable:$true] %s270_s15 }
  0x11   : > { %1622 = dma.hbm_to_vmem [thread:$0]  (!%p1620_p5), %s271_s15, 512, %s273_s18, [#allocation7], %s1869_s22, %s1869_s22, %s1870_s23  }
  0x12   : > { %s287_s21 = sshll.u32 %s2174_s6, 4  ;;  %p36_p6 = scmp.ge.s32.totalorder %s34_s26, 2  ;;  %s288_s21 = int_to_ptr.hbm [resolvable:$true] %s287_s21 }
  0x13   : > { %1625 = dma.hbm_to_vmem [thread:$0]  (!%p1620_p5), %s288_s21, 512, %s290_s25, [#allocation7], %s1869_s22, %s1869_s22, %s1870_s23  }
  0x14   : > { %p76_p7 = scmp.ne.s32.totalorder %s1854_s29, %s1850_s28  ;;  %p77_p8 = scmp.eq.s32.totalorder %s1866_s10, 0 }
  0x15   : > { %p82_p9 = scmp.ne.s32.totalorder %s1850_s28, %s1846_s27  ;;  %s2185_s26 = smov (%p36_p6, %s34_s26), 0 }
  0x16   : > { %2175 = sst [smem:[#allocation11_spill]] %s2185_s26  ;;  %p1992_p10 = por %p77_p8, %p76_p7 }
  0x17   : > { %p1998_p11 = por %p1964_p1, %p82_p9  ;;  %s66_s15 = ssub.s32 %s1862_s9, %s2185_s26 }
  0x18   : > { %p1632_p12 = scmp.lt.s32.totalorder %s1866_s10, 2  ;;  %p67_p13 = scmp.eq.s32.totalorder %s66_s15, 0 }
  0x19   : > { %s316_s17 = sand.u32 1, %s1854_s29   ;;  %s1570_s27 = sshll.u32 %s1862_s9, 3 }
  0x1a   : > { %s1569_s18 = sshll.u32 %s316_s17, 3  ;;  %s324_s22 = scalar_lea.hbm %s2160_s1, %s1570_s27 }
  0x1b   : > { %s2007_s19 = scalar_select %p67_p13, %s1854_s29, %s69_s11  }
  0x1c   : > { %s320_s23 = scalar_lea.vmem [#allocation4], %s1569_s18  ;;  %s326_s25 = sshll.u32 %s324_s22, 4  ;;  %s327_s25 = int_to_ptr.hbm [resolvable:$true] %s326_s25 }
  0x1d   : > { %s328_s24 = sshll.u32 %s320_s23, 4  ;;  %p1627_p0 = pnand %p1632_p12, %p1992_p10  ;;  %s329_s24 = int_to_ptr.vmem [resolvable:$true] %s328_s24 }
  0x1e   : > { %s317_s2 = scalar_lea.sflag [#allocation5], %s316_s17  ;;  %353 = sbr.rel (%p1972_p3) target bundleno = 1686 (0x696), region = 52 }
  0x1f   : > { %1629 = dma.hbm_to_vmem [thread:$0]  (!%p1627_p0), %s327_s25, 128, %s329_s24, %s317_s2  }
  0x20   : > { %s355_s11 = sand.u32 (!%p1972_p3), 1, %s1850_s28  }
  0x21   : > { %s1572_s15 = sshll.u32 (!%p1972_p3), %s355_s11, 3  ;;  %s356_s6 = scalar_lea.sflag (!%p1972_p3), [#allocation5], %s355_s11 }
  0x22   : > { %s359_s26 = scalar_lea.vmem (!%p1972_p3), [#allocation4], %s1572_s15 }
  0x23   : > { %1837 = dma.done.wait (%p1998_p11), %s356_s6, 128  }
  0x24   : > { %1839 = vsyncadd (%p1998_p11), %s356_s6, 4294967168 }
  0x25   : > { %1841 = dma.done.wait (%p1964_p1), [#allocation7], 1024  }
  0x26   : > { %1843 = vsyncadd (%p1964_p1), [#allocation7], 4294966272  ;;  %v454_v0 = vld [vmem:[#allocation6 + $0x18] sm:$0xff]  ;;  %v453_v1 = vld [vmem:[#allocation6 + $0x10] sm:$0xff]  ;;  %vm459_vm0 = vcmask 261120   ;;  %s1872_s12 = smov 60  }
  0x27   : > { %475 = vmatpush.msra.mxu0 %v454_v0  ;;  %v452_v2 = vld [vmem:[#allocation6 + $0x8] sm:$0xff]  ;;  %v451_v3 = vld [vmem:[#allocation6] sm:$0xff]  ;;  %v450_v4 = vld [vmem:[%s359_s26] sm:$0xff]  ;;  %s1873_s16 = smov 64   ;;  %s1874_s13 = smov 48   ;;  %vm520_vm1 = vcmask 64512  }
  0x28   : > { %v1703_v5 = vld [vmem:[%s2162_s3] ss:$0 sm:$0xff]  ;;  %s1875_s26 = smov 88   ;;  %s1876_s14 = smov 96   ;;  %v483_v21 = vld [vmem:[#allocation8] sm:$0xff]  ;;  %v632_v27 = vld [vmem:[#allocation8 + $0x8] sm:$0xff] }
  0x29   : > { %476 = vmatpush.msra.mxu0 %v453_v1  ;;  %s1877_s17 = smov 44   ;;  %s1878_s18 = smov 120   ;;  %625 = vmatpush.msra.mxu3 %v483_v21  ;;  %vm544_vm2 = vcmask 60416   ;;  %v782_v30 = vld [vmem:[#allocation8 + $0x10] sm:$0xff]  ;;  %v932_v39 = vld [vmem:[#allocation8 + $0x18] sm:$0xff]  ;;  %vm630_vm3 = vcmask 257024  }
  0x2a   : > { %s1879_s27 = smov 52   ;;  %s1880_s20 = smov 56   ;;  %vm1199_vm4 = vcmask 1043456   ;;  %vm1115_vm5 = vcmask 31744  }
  0x2b   : > { %477 = vmatpush.msra.mxu0 %v452_v2  ;;  %p422_p1 = scmp.lt.s32.totalorder %s1858_s30, 1  ;;  %s1881_s21 = smov 104   ;;  %775 = vmatpush.msrb.mxu3 %v632_v27 }
  0x2c   : > { %s1882_s22 = smov 112   ;;  %s1883_s24 = smov 40  }
  0x2d   : > { %478 = vmatpush.msra.mxu0 %v451_v3  ;;  %s2187_s30 = smov (!%p422_p1, %s1858_s30), 1  ;;  %s1884_s2 = smov 80  }
  0x2e   : > { %1578 = vmatmul.msk.f32.vlgmr.msra.gmra.mxu0 %vm459_vm0, %v450_v4  ;;  %s2052_s23 = sshll.u32 %s2187_s30, 3  ;;  %s1885_s6 = smov 36  }
  0x2f   : > { %s428_s15 = scalar_lea.vmem %s2159_s0, %s2052_s23 }
  0x30   : > { %v2059_v15 = vld [vmem:[%s428_s15] sm:$0xff] }
  0xab   : > { %v480_v6 = vpop.f32.mrf.mxu0 }
  0xac   : > { %v2030_v7 = vadd.f32 %v1703_v5, %v480_v6 }
  0xae   : > { %633 = vrot.lane.b32.xlu2 %v2030_v7, %s1872_s12  ;;  %485 = vrot.lane.b32.xlu1 %v2030_v7, %s1873_s16 }
  0xaf   : > { %546 = vrot.lane.b32.xlu0 %v2030_v7, %s1874_s13  ;;  %539 = vmatpush.msra.mxu1 %v2030_v7  ;;  %s431_s13 = scalar_lea.vmem %s2163_s4, %s2187_s30  ;;  %s1886_s30 = smov 72  }
  0xb0   : > { %v2089_v44 = vld [vmem:[%s431_s13] ss:$0 sm:$0xff] }
  0xb6   : > { %731 = vrot.lane.b32.xlu2 %v2030_v7, %s1875_s26  ;;  %581 = vrot.lane.b32.xlu1 %v2030_v7, %s1876_s14 }
  0xb7   : > { %696 = vrot.lane.b32.xlu0 %v2030_v7, %s1877_s17  ;;  %s438_s17 = scalar_lea.vmem %s2164_s5, %s2052_s23 }
  0xbf   : > { %668 = vrot.lane.b32.xlu0 %v2030_v7, %s1878_s18 }
 0x108   : > { %v634_v8 = vpop.permute.xlu2 %633 }
 0x110   : > { %v732_v12 = vpop.permute.xlu2 %731 }
 0x120   : > { %v486_v9 = vpop.permute.xlu1 %485 }
 0x121   : > { %v547_v10 = vpop.permute.xlu0 %546  ;;  %488 = vxpose.xlu0.b32.start.end [1/1] (short) (narrow) %v486_v9, 8 }
 0x122   : > { %549 = vxpose.xlu1.b32.start.end [1/1] (short) (narrow) %v547_v10, 8 }
 0x128   : > { %v582_v11 = vpop.permute.xlu1 %581 }
 0x129   : > { %v697_v13 = vpop.permute.xlu0 %696  ;;  %602 = vmatpush.msra.mxu2 %v582_v11 }
 0x12a   : > { %699 = vxpose.xlu2.b32.start.end [1/1] (short) (narrow) %v697_v13, 8 }
 0x12b   : > { %752 = vmatpush.msrb.mxu2 %v732_v12 }
 0x131   : > { %v669_v14 = vpop.permute.xlu0 %668 }
 0x132   : > { %636 = vxpose.xlu2.b32.start.end [1/1] (short) (narrow) %v634_v8, 8  ;;  %689 = vmatpush.msrb.mxu1 %v669_v14 }
 0x17c   : > { %1143 = vrot.lane.b32.xlu1 %v2059_v15, %s1878_s18 }
 0x18f   : > { %933 = vrot.lane.b32.xlu0 %v2030_v7, %s1879_s27 }
 0x197   : > { %783 = vrot.lane.b32.xlu0 %v2030_v7, %s1880_s20 }
 0x19b   : > { %968 = vrot.lane.b32.xlu2 %v2030_v7, %s1881_s21 }
 0x19f   : > { %818 = vrot.lane.b32.xlu0 %v2030_v7, %s1882_s22 }
 0x1a3   : > { %846 = vrot.lane.b32.xlu2 %v2030_v7, %s1883_s24 }
 0x1ab   : > { %881 = vrot.lane.b32.xlu2 %v2030_v7, %s1884_s2 }
 0x1c3   : > { %v715_v17 = vpop.trf.xlu2 }
 0x1c5   : > { %v504_v18 = vpop.trf.xlu0 }
 0x1c6   : > { %v565_v16 = vpop.trf.xlu1  ;;  %1579 = vmatmul.msk.f32.vlgmr.msra.gmra.mxu1 %vm520_vm1, %v504_v18 }
 0x1c7   : > { %1580 = vmatmul.msk.f32.vlgmr.msra.gmra.mxu2 %vm520_vm1, %v565_v16 }
 0x1c8   : > { %925 = vmatpush.msra.mxu2 %v782_v30 }
 0x1cb   : > { %v652_v19 = vpop.trf.xlu2 }
 0x1ce   : > { %1582 = vmatmul.msk.f32.vlgmr.msrb.gmra.mxu1 %vm520_vm1, %v652_v19 }
 0x1cf   : > { %1583 = vmatmul.msk.f32.vlgmr.msrb.gmra.mxu2 %vm520_vm1, %v715_v17 }
 0x1ee   : > { %v1144_v36 = vpop.permute.xlu1 %1143 }
 0x1f5   : > { %v969_v20 = vpop.permute.xlu2 %968 }
 0x1fd   : > { %v847_v22 = vpop.permute.xlu2 %846 }
 0x1fe   : > { %849 = vxpose.xlu2.b32.start.end [1/1] (short) (narrow) %v847_v22, 8 }
 0x201   : > { %v934_v23 = vpop.permute.xlu0 %933 }
 0x202   : > { %936 = vxpose.xlu1.b32.start.end [1/1] (short) (narrow) %v934_v23, 8 }
 0x205   : > { %v882_v24 = vpop.permute.xlu2 %881 }
 0x206   : > { %902 = vmatpush.msra.mxu1 %v882_v24 }
 0x208   : > { %1075 = vmatpush.msrb.mxu1 %v932_v39 }
 0x209   : > { %v784_v25 = vpop.permute.xlu0 %783 }
 0x20a   : > { %786 = vxpose.xlu0.b32.start.end [1/1] (short) (narrow) %v784_v25, 8 }
 0x211   : > { %v819_v26 = vpop.permute.xlu0 %818 }
 0x212   : > { %839 = vmatpush.msrb.mxu0 %v819_v26 }
 0x243   : > { %v541_v29 = vpop.f32.mrf.mxu1 }
 0x244   : > { %545 = vst.msk [vmem:[#allocation2] sm:$0xf] %vm544_vm2, %v541_v29 }
 0x24a   : > { %v604_v28 = vpop.f32.mrf.mxu2 }
 0x24b   : > { %1581 = vmatmul.msk.f32.vlgmr.msra.gmra.mxu3 %vm520_vm1, %v604_v28  ;;  %v1084_v32 = vld [vmem:[#allocation2] sm:$0xf]  ;;  %v691_v33 = vpop.f32.mrf.mxu1 }
 0x24c   : > { %989 = vmatpush.msra.mxu3 %v969_v20  ;;  %1591 = vmatpush.xpose.msk.msrb.mxu2 %vm520_vm1, %v1084_v32  ;;  %695 = vst.msk [vmem:[#allocation2 + $0x4] sm:$0xf] %vm544_vm2, %v691_v33 }
 0x252   : > { %v754_v31 = vpop.f32.mrf.mxu2 }
 0x253   : > { %1584 = vmatmul.msk.f32.vlgmr.msrb.gmra.mxu3 %vm520_vm1, %v754_v31  ;;  %v1142_v34 = vld [vmem:[#allocation2 + $0x4] sm:$0xf] }
 0x254   : > { %1593 = vmatpush.xpose.msk.msrb.mxu3 %vm520_vm1, %v1142_v34 }
 0x278   : > { %996 = vrot.lane.b32.xlu0 %v2030_v7, %s1885_s6 }
 0x280   : > { %1251 = vrot.lane.b32.xlu0 %v2059_v15, %s1882_s22  ;;  %s445_s22 = scalar_lea.vmem %s2167_s8, %s2052_s23 }
 0x297   : > { %v865_v35 = vpop.trf.xlu2 }
 0x298   : > { %1586 = vmatmul.msk.f32.vlgmr.msra.gmra.mxu1 %vm520_vm1, %v865_v35 }
 0x2a6   : > { %v952_v37 = vpop.trf.xlu1 }
 0x2a7   : > { %1588 = vmatmul.msk.f32.vlgmr.msra.gmra.mxu3 %vm520_vm1, %v952_v37 }
 0x2ae   : > { %v802_v38 = vpop.trf.xlu0 }
 0x2af   : > { %1594 = vmatmul.msk.f32.vlgmr.msrb.gmra.mxu3 %vm520_vm1, %v1144_v36  ;;  %1585 = vmatmul.msk.f32.vlgmr.msrb.gmra.mxu0 %vm520_vm1, %v802_v38 }
 0x2ce   : > { %v627_v40 = vpop.f32.mrf.mxu3 }
 0x2cf   : > { %631 = vst.msk [vmem:[#allocation3] sm:$0xf] %vm630_vm3, %v627_v40 }
 0x2d6   : > { %v1140_v41 = vld [vmem:[#allocation3] sm:$0xf]  ;;  %v777_v42 = vpop.f32.mrf.mxu3 }
 0x2d7   : > { %1597 = vmatpush.msk.msra.mxu1 %vm1199_vm4, %v1140_v41  ;;  %781 = vst.msk [vmem:[#allocation3 + $0x4] sm:$0xf] %vm630_vm3, %v777_v42 }
 0x2de   : > { %v1195_v60 = vld [vmem:[#allocation3 + $0x4] sm:$0xf] }
 0x2ea   : > { %v997_v49 = vpop.permute.xlu0 %996 }
 0x2f2   : > { %v1252_v52 = vpop.permute.xlu0 %1251 }
 0x315   : > { %v904_v45 = vpop.f32.mrf.mxu1 }
 0x316   : > { %1587 = vmatmul.msk.f32.vlgmr.msra.gmra.mxu2 %vm520_vm1, %v904_v45 }
 0x31e   : > { %1592 = vmatmul.msk.f32.vlgmr.msrb.gmra.mxu2 %vm520_vm1, %v2059_v15 }
 0x32a   : > { %v991_v43 = vpop.f32.mrf.mxu3 }
 0x32b   : > { %995 = vst.msk [vmem:[#allocation2 + $0xc] sm:$0xf] %vm544_vm2, %v991_v43 }
 0x32c   : > { %v841_v46 = vpop.f32.mrf.mxu0 }
 0x32d   : > { %845 = vst.msk [vmem:[#allocation2 + $0x8] sm:$0xf] %vm544_vm2, %v841_v46 }
 0x332   : > { %v1167_v47 = vpop.f32.mrf.mxu3  ;;  %v1332_v24 = vld [vmem:[#allocation2 + $0xc] sm:$0xf] }
 0x333   : > { %v1168_v48 = vadd.f32 %v2089_v44, %v1167_v47 }
 0x334   : > { %v1250_v51 = vld [vmem:[#allocation2 + $0x8] sm:$0xf] }
 0x335   : > { %v1170_v50 = vsel %vm1115_vm5, %v1168_v48, -inf  ;;  %1599 = vmatpush.xpose.msk.msra.mxu2 %vm520_vm1, %v1250_v51 }
 0x336   : > { %1171 = vmax.xlane.f32.xlu1 %v1170_v50 }
 0x338   : > { %1600 = vmatmul.msk.f32.vlgmr.msra.gmra.mxu2 %vm520_vm1, %v1252_v52 }
 0x34f   : > { %1031 = vrot.lane.b32.xlu1 %v2030_v7, %s1886_s30 }
 0x357   : > { %1333 = vrot.lane.b32.xlu1 %v2059_v15, %s1881_s21 }
 0x399   : > { %v927_v58 = vpop.f32.mrf.mxu2 }
 0x39a   : > { %931 = vst.msk [vmem:[#allocation3 + $0x8] sm:$0xf] %vm630_vm3, %v927_v58 }
 0x3a1   : > { %v1112_v61 = vpop.f32.mrf.mxu2  ;;  %v1303_v39 = vld [vmem:[#allocation3 + $0x8] sm:$0xf] }
 0x3a2   : > { %v1113_v62 = vadd.f32 %v2089_v44, %v1112_v61  ;;  %1601 = vmatpush.msk.msra.mxu3 %vm1199_vm4, %v1303_v39 }
 0x3a4   : > { %v1116_v63 = vsel %vm1115_vm5, %v1113_v62, -inf }
 0x3a5   : > { %1117 = vmax.xlane.f32.xlu0 %v1116_v63 }
 0x3a9   : > { %v1172_v53 = vpop.xlane.xlu1 %1171 }
 0x3aa   : > { %v1173_v54 = vsub.f32 %v1168_v48, %v1172_v53 }
 0x3ac   : > { %v1174_v55 = vmul.f32 1.442695, %v1173_v54 }
 0x3ae   : > { %1706 = vpow2.f32 %v1174_v55 }
 0x3b4   : > { %v1707_v56 = vpop.eup %1706 }
 0x3b5   : > { %v1176_v57 = vsel %vm1115_vm5, %v1707_v56, 0.0 }
 0x3b6   : > { %1177 = vadd.xlane.f32.xlu2 %v1176_v57 }
 0x3bb   : > { %v1275_v0 = vpop.f32.mrf.mxu2 }
 0x3bc   : > { %v1276_v1 = vadd.f32 %v2089_v44, %v1275_v0 }
 0x3be   : > { %v1278_v2 = vsel %vm1115_vm5, %v1276_v1, -inf }
 0x3bf   : > { %1279 = vmax.xlane.f32.xlu1 %v1278_v2 }
 0x3c1   : > { %v1032_v59 = vpop.permute.xlu1 %1031 }
 0x3c2   : > { %1052 = vmatpush.msra.mxu0 %v1032_v59 }
 0x3c4   : > { %1595 = vmatpush.msk.msrb.mxu0 %vm1199_vm4, %v1195_v60 }
 0x3c9   : > { %v1334_v3 = vpop.permute.xlu1 %1333 }
 0x3df   : > { %999 = vxpose.xlu2.b32.start.end [1/1] (short) (narrow) %v997_v49, 8 }
 0x418   : > { %v1118_v4 = vpop.xlane.xlu0 %1117 }
 0x419   : > { %v1119_v7 = vsub.f32 %v1113_v62, %v1118_v4 }
 0x41b   : > { %v1120_v9 = vmul.f32 1.442695, %v1119_v7 }
 0x429   : > { %v1178_v14 = vpop.xlane.xlu2 %1177 }
 0x42a   : > { %v1190_v20 = vand.u32 2147483648, %v1178_v14  ;;  %vm1184_vm7 = vweird.f32 %v1178_v14  ;;  %v1188_v21 = vand.u32 2147483647, %v1178_v14 }
 0x42c   : > { %v1191_v25 = vor.u32 1.1754944e-38, %v1190_v20  ;;  %vm1189_vm9 = vcmp.eq.f32.partialorder %v1188_v21, 8.507059e+37  ;;  %v1705_v20 = vld [vmem:[%s2166_s7] ss:$0 sm:$0xff] }
 0x432   : > { %v1280_v5 = vpop.xlane.xlu1 %1279 }
 0x433   : > { %v1281_v6 = vsub.f32 %v1276_v1, %v1280_v5 }
 0x435   : > { %v1282_v8 = vmul.f32 1.442695, %v1281_v6 }
 0x437   : > { %1708 = vpow2.f32 %v1282_v8 }
 0x438   : > { %1710 = vpow2.f32 %v1120_v9 }
 0x439   : > { %1712 = vrcp.f32 %v1178_v14 }
 0x43d   : > { %v1709_v10 = vpop.eup %1708 }
 0x43e   : > { %v1284_v11 = vsel %vm1115_vm5, %v1709_v10, 0.0  ;;  %v2110_v12 = vpop.eup %1710 }
 0x43f   : > { %1285 = vadd.xlane.f32.xlu1 %v1284_v11  ;;  %v1122_v13 = vsel %vm1115_vm5, %v2110_v12, 0.0  ;;  %v1713_v15 = vpop.eup %1712 }
 0x440   : > { %1123 = vadd.xlane.f32.xlu0 %v1122_v13  ;;  %v1180_v16 = vmul.f32 %v1713_v15, %v1178_v14  ;;  %vm1185_vm6 = vweird.f32 %v1713_v15 }
 0x441   : > { %vm1186_vm8 = vmor %vm1184_vm7, %vm1185_vm6 }
 0x442   : > { %v1181_v17 = vsub.f32 1.0, %v1180_v16 }
 0x444   : > { %v1182_v18 = vmul.f32 %v1713_v15, %v1181_v17 }
 0x446   : > { %v1183_v19 = vadd.f32 %v1713_v15, %v1182_v18  ;;  %v1413_v18 = vld [vmem:[%s438_s17] sm:$0xff] }
 0x448   : > { %v1187_v23 = vsel %vm1186_vm8, %v1713_v15, %v1183_v19 }
 0x449   : > { %v1192_v26 = vsel %vm1189_vm9, %v1191_v25, %v1187_v23 }
 0x44a   : > { %v1193_v27 = vmul.f32 %v1707_v56, %v1192_v26 }
 0x478   : > { %v1015_v22 = vpop.trf.xlu2 }
 0x479   : > { %1589 = vmatmul.msk.f32.vlgmr.msra.gmra.mxu0 %vm520_vm1, %v1015_v22 }
 0x47a   : > { %1603 = vmatpush.xpose.msk.msra.mxu0 %vm520_vm1, %v1332_v24 }
 0x481   : > { %1596 = vmatmul.msk.f32.vlgmr.msrb.gmra.mxu0 %vm1115_vm5, %v1193_v27 }
 0x489   : > { %1604 = vmatmul.msk.f32.vlgmr.msra.gmra.mxu0 %vm520_vm1, %v1334_v3 }
 0x4b2   : > { %v1286_v28 = vpop.xlane.xlu1 %1285 }
 0x4b3   : > { %1714 = vrcp.f32 %v1286_v28  ;;  %v1298_v31 = vand.u32 2147483648, %v1286_v28  ;;  %vm1292_vm10 = vweird.f32 %v1286_v28  ;;  %v1296_v33 = vand.u32 2147483647, %v1286_v28  ;;  %v1124_v41 = vpop.xlane.xlu0 %1123 }
 0x4b4   : > { %1716 = vrcp.f32 %v1124_v41  ;;  %vm1130_vm14 = vweird.f32 %v1124_v41  ;;  %v1136_v47 = vand.u32 2147483648, %v1124_v41  ;;  %v1134_v49 = vand.u32 2147483647, %v1124_v41 }
 0x4b5   : > { %v1299_v35 = vor.u32 1.1754944e-38, %v1298_v31  ;;  %vm1297_vm13 = vcmp.eq.f32.partialorder %v1296_v33, 8.507059e+37 }
 0x4b6   : > { %v1137_v50 = vor.u32 1.1754944e-38, %v1136_v47  ;;  %vm1135_vm6 = vcmp.eq.f32.partialorder %v1134_v49, 8.507059e+37 }
 0x4b9   : > { %v1715_v29 = vpop.eup %1714 }
 0x4ba   : > { %v1288_v30 = vmul.f32 %v1715_v29, %v1286_v28  ;;  %vm1293_vm11 = vweird.f32 %v1715_v29  ;;  %v1717_v42 = vpop.eup %1716 }
 0x4bb   : > { %vm1294_vm12 = vmor %vm1292_vm10, %vm1293_vm11  ;;  %v1126_v43 = vmul.f32 %v1717_v42, %v1124_v41  ;;  %vm1131_vm15 = vweird.f32 %v1717_v42 }
 0x4bc   : > { %v1289_v32 = vsub.f32 1.0, %v1288_v30  ;;  %vm1132_vm2 = vmor %vm1130_vm14, %vm1131_vm15 }
 0x4bd   : > { %v1127_v45 = vsub.f32 1.0, %v1126_v43 }
 0x4be   : > { %v1290_v34 = vmul.f32 %v1715_v29, %v1289_v32 }
 0x4bf   : > { %v1128_v46 = vmul.f32 %v1717_v42, %v1127_v45 }
 0x4c0   : > { %v1291_v36 = vadd.f32 %v1715_v29, %v1290_v34 }
 0x4c1   : > { %v1129_v48 = vadd.f32 %v1717_v42, %v1128_v46 }
 0x4c2   : > { %v1295_v37 = vsel %vm1294_vm12, %v1715_v29, %v1291_v36 }
 0x4c3   : > { %v1300_v38 = vsel %vm1297_vm13, %v1299_v35, %v1295_v37  ;;  %v1133_v51 = vsel %vm1132_vm2, %v1717_v42, %v1129_v48 }
 0x4c4   : > { %v1301_v40 = vmul.f32 %v1709_v10, %v1300_v38  ;;  %v1138_v53 = vsel %vm1135_vm6, %v1137_v50, %v1133_v51 }
 0x4c5   : > { %v1139_v54 = vmul.f32 %v2110_v12, %v1138_v53 }
 0x4c6   : > { %1602 = vmatmul.msk.f32.vlgmr.msra.gmra.mxu3 %vm1115_vm5, %v1301_v40 }
 0x4f6   : > { %v1054_v52 = vpop.f32.mrf.mxu0 }
 0x4f7   : > { %1590 = vmatmul.msk.f32.vlgmr.msrb.gmra.mxu1 %vm520_vm1, %v1054_v52 }
 0x4fe   : > { %v1220_v55 = vpop.f32.mrf.mxu0 }
 0x4ff   : > { %1598 = vmatmul.msk.f32.vlgmr.msra.gmra.mxu1 %vm1115_vm5, %v1139_v54 }
 0x506   : > { %v1357_v56 = vpop.f32.mrf.mxu0 }
 0x507   : > { %v1358_v57 = vadd.f32 %v2089_v44, %v1357_v56 }
 0x509   : > { %v1360_v58 = vsel %vm1115_vm5, %v1358_v57, -inf }
 0x50a   : > { %1361 = vmax.xlane.f32.xlu2 %v1360_v58 }
 0x549   : > { %v1327_v15 = vpop.f32.mrf.mxu3 }
 0x574   : > { %v1077_v59 = vpop.f32.mrf.mxu1 }
 0x575   : > { %1081 = vst.msk [vmem:[#allocation3 + $0xc] sm:$0xf] %vm630_vm3, %v1077_v59 }
 0x57c   : > { %v1385_v60 = vld [vmem:[#allocation3 + $0xc] sm:$0xf]  ;;  %v1246_v13 = vpop.f32.mrf.mxu1 }
 0x57d   : > { %1605 = vmatpush.msk.msrb.mxu1 %vm1199_vm4, %v1385_v60  ;;  %v1362_v61 = vpop.xlane.xlu2 %1361  ;;  %v1247_v14 = vadd.f32 %v1246_v13, %v1220_v55 }
 0x57e   : > { %v1363_v62 = vsub.f32 %v1358_v57, %v1362_v61 }
 0x57f   : > { %v1330_v16 = vadd.f32 %v1327_v15, %v1247_v14 }
 0x580   : > { %v1364_v63 = vmul.f32 1.442695, %v1363_v62 }
 0x582   : > { %1718 = vpow2.f32 %v1364_v63 }
 0x588   : > { %v1719_v0 = vpop.eup %1718 }
 0x589   : > { %v1366_v1 = vsel %vm1115_vm5, %v1719_v0, 0.0 }
 0x58a   : > { %1367 = vadd.xlane.f32.xlu0 %v1366_v1 }
 0x5fd   : > { %v1368_v2 = vpop.xlane.xlu0 %1367 }
 0x5fe   : > { %1720 = vrcp.f32 %v1368_v2  ;;  %v1380_v5 = vand.u32 2147483648, %v1368_v2  ;;  %v1378_v7 = vand.u32 2147483647, %v1368_v2  ;;  %vm1374_vm3 = vweird.f32 %v1368_v2 }
 0x600   : > { %v1381_v9 = vor.u32 1.1754944e-38, %v1380_v5  ;;  %vm1379_vm7 = vcmp.eq.f32.partialorder %v1378_v7, 8.507059e+37 }
 0x604   : > { %v1721_v44 = vpop.eup %1720 }
 0x605   : > { %v1370_v3 = vmul.f32 %v1721_v44, %v1368_v2  ;;  %vm1375_vm1 = vweird.f32 %v1721_v44 }
 0x606   : > { %vm1376_vm4 = vmor %vm1374_vm3, %vm1375_vm1 }
 0x607   : > { %v1371_v4 = vsub.f32 1.0, %v1370_v3 }
 0x609   : > { %v1372_v6 = vmul.f32 %v1721_v44, %v1371_v4 }
 0x60b   : > { %v1373_v8 = vadd.f32 %v1721_v44, %v1372_v6 }
 0x60d   : > { %v1377_v10 = vsel %vm1376_vm4, %v1721_v44, %v1373_v8 }
 0x60e   : > { %v1382_v11 = vsel %vm1379_vm7, %v1381_v9, %v1377_v10 }
 0x60f   : > { %v1383_v12 = vmul.f32 %v1719_v0, %v1382_v11 }
 0x611   : > { %1606 = vmatmul.msk.f32.vlgmr.msrb.gmra.mxu1 %vm1115_vm5, %v1383_v12 }
 0x68e   : > { %v1409_v17 = vpop.f32.mrf.mxu1 }
 0x68f   : > { %v1412_v19 = vadd.f32 %v1409_v17, %v1330_v16 }
 0x691   : > { %v1414_v21 = vadd.f32 %v1413_v18, %v1412_v19 }
 0x693   : > { %v1419_v22 = vadd.f32 %v1705_v20, %v1414_v21 }
 0x695   : > { %1421 = vst.msk [vmem:[%s445_s22] sm:$0xff] %vm459_vm0, %v1419_v22 }
 0x696 PF: > { %s22_s10 = sadd.s32 1, %s1866_s10   ;;  %s2178_s24 = sld [smem:[#allocation11_spill]] }
 0x697   : > { %p19_p2 = scmp.ge.s32.totalorder %s22_s10, 4   ;;  %s2179_s27 = smov %s1850_s28 }
 0x698   : > { %s2180_s28 = smov %s1854_s29  ;;  %s2181_s29 = smov %s2007_s19 }
 0x699   : > { %s2182_s30 = smov %s1862_s9  ;;  %21 = sbr.rel (!%p19_p2) target bundleno = 8 (0x8), region = 125 }
 0x69c   : > { %s2183_s9 = smov %s2178_s24 }
 0x69e   :  { %1447 = vsyncpa [#allocation5], 1 }
 0x69f   :  { %1449 = vsyncpa [#allocation5 + $0x1], 1 }
 0x6a0   :  { %1450 = vsyncpa [#allocation7], 1 }

// kernel: linformer_decoder_layer.7
= control target key start
LH: loop header
LB: loop body
LE: loop exit
PB: predicated region body
PF: predicated region fallthrough
CT: control target
= control target key end

     0   :  { %12 = vsyncpa [#allocation3], 0  ;;  %s2838_s0 = inlined_call_operand.vmem [shape: f32[2,8,32], index: 0, kind: input, shape index: {}]   ;;  %s2839_s1 = inlined_call_operand.vmem [shape: f32[1,32], index: 1, kind: input, shape index: {}]   ;;  %s2840_s2 = inlined_call_operand.vmem [shape: f32[1,32], index: 2, kind: input, shape index: {}]   ;;  %s2841_s3 = inlined_call_operand.vmem [shape: f32[32,2048], index: 3, kind: input, shape index: {}]   ;;  %s2842_s4 = inlined_call_operand.vmem [shape: f32[1,2048], index: 4, kind: input, shape index: {}]   ;;  %s2843_s5 = inlined_call_operand.vmem [shape: f32[2048,32], index: 5, kind: input, shape index: {}]   ;;  %s2844_s6 = inlined_call_operand.vmem [shape: f32[1,32], index: 6, kind: input, shape index: {}]   ;;  %s2845_s7 = inlined_call_operand.hbm [shape: f32[2,8,32], index: 7, kind: output, shape index: {}]  }
   0x1   :  { %14 = vsyncpa [#allocation3 + $0x1], 0  ;;  %s1691_s24 = smov 0   ;;  %s1693_s25 = smov 0  }
   0x2   :  { %s1695_s26 = smov 0   ;;  %s1697_s27 = smov 0  }
   0x3   :  { %s1699_s28 = smov 0   ;;  %s1701_s29 = smov 0  }
   0x4 LB: > { %s1473_s30 = sadd.s32 4294967295, %s1647_s29   ;;  %s1474_s8 = sadd.s32 4294967294, %s1647_s29   ;;  %s1647_s29 = sphi %s1701_s29, %s20_s29   ;;  %s1643_s28 = sphi %s1699_s28, %s2852_s28   ;;  %s1639_s27 = sphi %s1697_s27, %s2851_s27   ;;  %s1635_s26 = sphi %s1695_s26, %s2850_s26   ;;  %s1631_s25 = sphi %s1693_s25, %s2849_s25   ;;  %s1627_s24 = sphi %s1691_s24, %s2848_s24  }
   0x5   : > { %s32_s9 = sadd.s32 1, %s1643_s28  ;;  %s195_s10 = sadd.s32 1, %s1635_s26 }
   0x6   : > { %p34_p0 = scmp.ge.s32.totalorder %s32_s9, 2  ;;  %p205_p1 = scmp.ne.s32.totalorder %s1635_s26, %s1631_s25 }
   0x7   : > { %p206_p2 = scmp.eq.s32.totalorder %s1473_s30, 1  ;;  %p211_p3 = scmp.ne.s32.totalorder %s1631_s25, %s1627_s24 }
   0x8   : > { %s2854_s9 = smov (%p34_p0, %s32_s9), 0  ;;  %p212_p5 = scmp.eq.s32.totalorder %s1474_s8, 1 }
   0x9   : > { %p1731_p4 = por %p206_p2, %p205_p1  ;;  %s190_s12 = ssub.s32 %s1643_s28, %s2854_s9 }
   0xa   : > { %p1477_p6 = scmp.ge.s32.totalorder %s1647_s29, 1  ;;  %p193_p7 = scmp.eq.s32.totalorder %s190_s12, 0 }
   0xb   : > { %p1738_p8 = por %p212_p5, %p211_p3  ;;  %p258_p9 = scmp.lt.s32.totalorder %s1647_s29, 3 }
   0xc   : > { %s1744_s14 = scalar_select %p193_p7, %s1635_s26, %s195_s10  }
   0xd   : > { %p259_p10 = pnand %p1477_p6, %p258_p9 }
   0xe   : > { %p292_p11 = scmp.lt.s32.totalorder (!%p259_p10), %s1639_s27, 1  ;;  %s289_s20 = sand.u32 (!%p259_p10), 1, %s1631_s25  }
   0xf   : > { %262 = sbr.rel (%p259_p10) target bundleno = 660 (0x294), region = 48  ;;  %s1478_s21 = sshll.u32 (!%p259_p10), %s289_s20, 3 }
  0x10   : > { %s1497_s22 = sshll.u32 (!%p259_p10), %s1639_s27, 3 }
  0x11   : > { %s1397_s8 = scalar_lea.hbm (!%p259_p10), %s2845_s7, %s1497_s22 }
  0x12   : > { %s1401_s17 = sshll.u32 (!%p259_p10), %s1397_s8, 4  ;;  %s1402_s17 = int_to_ptr.hbm [resolvable:$true] %s1401_s17 }
  0x13   : > { %s1583_s18 = sshra.s32 (!%p259_p10), %s1402_s17, 4  ;;  %s1584_s18 = int_to_ptr.hbm [resolvable:$true] %s1583_s18 }
  0x14   : > { %s293_s15 = scalar_select %p292_p11, %s1639_s27, 1  ;;  %vm302_vm0 = vcmask 261120   ;;  %v1649_v2 = vmov 32.0   ;;  %v1650_v14 = vmov 31.0   ;;  %v411_v23 = vld [vmem:[%s2841_s3 + $0x180] sm:$0xff]  ;;  %v412_v24 = vld [vmem:[%s2841_s3 + $0x188] sm:$0xff] }
  0x15   : > { %1560 = vrcp.f32 %v1649_v2  ;;  %v413_v25 = vld [vmem:[%s2841_s3 + $0x190] sm:$0xff]  ;;  %478 = vmatpush.msra.mxu0 %v411_v23  ;;  %498 = vmatpush.msra.mxu1 %v412_v24  ;;  %v414_v26 = vld [vmem:[%s2841_s3 + $0x198] sm:$0xff]  ;;  %v395_v28 = vld [vmem:[%s2841_s3 + $0x100] sm:$0xff]  ;;  %s1386_s27 = scalar_lea.sflag [#allocation3], %s289_s20  ;;  %s1585_s22 = scalar_lea.hbm %s1584_s18, 8 }
  0x16   : > { %s1479_s16 = sshll.u32 %s293_s15, 3  ;;  %1562 = vrcp.f32 %v1650_v14  ;;  %518 = vmatpush.msra.mxu2 %v413_v25  ;;  %538 = vmatpush.msra.mxu3 %v414_v26  ;;  %v396_v29 = vld [vmem:[%s2841_s3 + $0x108] sm:$0xff]  ;;  %v397_v30 = vld [vmem:[%s2841_s3 + $0x110] sm:$0xff]  ;;  %v398_v32 = vld [vmem:[%s2841_s3 + $0x118] sm:$0xff]  ;;  %s291_s15 = scalar_lea.vmem [#allocation2], %s1478_s21 }
  0x17   : > { %s1751_s19 = scalar_lea.vmem %s2838_s0, %s1479_s16  ;;  %479 = vmatpush.msra.mxu0 %v395_v28  ;;  %499 = vmatpush.msra.mxu1 %v396_v29  ;;  %v379_v33 = vld [vmem:[%s2841_s3 + $0x80] sm:$0xff]  ;;  %v380_v34 = vld [vmem:[%s2841_s3 + $0x88] sm:$0xff]  ;;  %v381_v35 = vld [vmem:[%s2841_s3 + $0x90] sm:$0xff]  ;;  %s1399_s16 = sshll.u32 %s291_s15, 4  ;;  %s1400_s16 = int_to_ptr.vmem [resolvable:$true] %s1399_s16 }
  0x18   : > { %v299_v0 = vld [vmem:[%s1751_s19] sm:$0xff]  ;;  %519 = vmatpush.msra.mxu2 %v397_v30  ;;  %539 = vmatpush.msra.mxu3 %v398_v32  ;;  %v382_v37 = vld [vmem:[%s2841_s3 + $0x98] sm:$0xff]  ;;  %v364_v39 = vld [vmem:[%s2841_s3 + $0x8] sm:$0xff]  ;;  %p1586_p12 = scmp.ne.s32.totalorder %s1584_s18, %s1585_s22  ;;  %s1589_s21 = scalar_lea.hbm %s2845_s7, 16 }
  0x19   : > { %v303_v1 = vsel %vm302_vm0, %v299_v0, 0.0  ;;  %480 = vmatpush.msra.mxu0 %v379_v33  ;;  %500 = vmatpush.msra.mxu1 %v380_v34  ;;  %v363_v38 = vld [vmem:[%s2841_s3] sm:$0xff]  ;;  %v365_v40 = vld [vmem:[%s2841_s3 + $0x10] sm:$0xff]  ;;  %v366_v42 = vld [vmem:[%s2841_s3 + $0x18] sm:$0xff]  ;;  %p1590_p1 = scmp.lt.s32.totalorder %s1584_s18, %s2845_s7  ;;  %p1591_p2 = scmp.lt.s32.totalorder %s1589_s21, %s1585_s22 }
  0x1a   : > { %304 = vadd.xlane.f32.xlu0 %v303_v1  ;;  %520 = vmatpush.msra.mxu2 %v381_v35  ;;  %v415_v44 = vld [vmem:[%s2841_s3 + $0x1a0] sm:$0xff]  ;;  %v416_v45 = vld [vmem:[%s2841_s3 + $0x1a8] sm:$0xff]  ;;  %v417_v46 = vld [vmem:[%s2841_s3 + $0x1b0] sm:$0xff]  ;;  %p1587_p13 = pnand %p1586_p12, %p1731_p4 }
  0x1b   : > { %v1561_v3 = vpop.eup %1560  ;;  %540 = vmatpush.msra.mxu3 %v382_v37  ;;  %481 = vmatpush.msra.mxu0 %v363_v38  ;;  %v418_v47 = vld [vmem:[%s2841_s3 + $0x1b8] sm:$0xff]  ;;  %v399_v48 = vld [vmem:[%s2841_s3 + $0x120] sm:$0xff]  ;;  %v400_v49 = vld [vmem:[%s2841_s3 + $0x128] sm:$0xff]  ;;  %p1592_p3 = por %p1591_p2, %p1590_p1 }
  0x1c   : > { %v307_v4 = vmul.f32 32.0, %v1561_v3  ;;  %vm311_vm1 = vweird.f32 %v1561_v3  ;;  %v1563_v15 = vpop.eup %1562  ;;  %501 = vmatpush.msra.mxu1 %v364_v39  ;;  %521 = vmatpush.msra.mxu2 %v365_v40  ;;  %v401_v51 = vld [vmem:[%s2841_s3 + $0x130] sm:$0xff]  ;;  %v402_v52 = vld [vmem:[%s2841_s3 + $0x138] sm:$0xff]  ;;  %v383_v53 = vld [vmem:[%s2841_s3 + $0xa0] sm:$0xff]  ;;  %p1588_p0 = pneg %p1587_p13 }
  0x1d   : > { %v320_v16 = vmul.f32 31.0, %v1563_v15  ;;  %vm324_vm2 = vweird.f32 %v1563_v15  ;;  %541 = vmatpush.msra.mxu3 %v366_v42  ;;  %558 = vmatpush.msrb.mxu0 %v415_v44  ;;  %v384_v54 = vld [vmem:[%s2841_s3 + $0xa8] sm:$0xff]  ;;  %v385_v55 = vld [vmem:[%s2841_s3 + $0xb0] sm:$0xff]  ;;  %v386_v56 = vld [vmem:[%s2841_s3 + $0xb8] sm:$0xff] }
  0x1e   : > { %v308_v5 = vsub.f32 1.0, %v307_v4  ;;  %578 = vmatpush.msrb.mxu1 %v416_v45  ;;  %598 = vmatpush.msrb.mxu2 %v417_v46  ;;  %v367_v58 = vld [vmem:[%s2841_s3 + $0x20] sm:$0xff]  ;;  %v368_v59 = vld [vmem:[%s2841_s3 + $0x28] sm:$0xff]  ;;  %v369_v61 = vld [vmem:[%s2841_s3 + $0x30] sm:$0xff]  ;;  %p1593_p5 = pnand %p1592_p3, %p1588_p0 }
  0x1f   : > { %v321_v17 = vsub.f32 1.0, %v320_v16  ;;  %618 = vmatpush.msrb.mxu3 %v418_v47  ;;  %559 = vmatpush.msrb.mxu0 %v399_v48  ;;  %v370_v62 = vld [vmem:[%s2841_s3 + $0x38] sm:$0xff]  ;;  %v405_v23 = vld [vmem:[%s2841_s3 + $0x150] sm:$0xff]  ;;  %v387_v25 = vld [vmem:[%s2841_s3 + $0xc0] sm:$0xff] }
  0x20   : > { %v309_v6 = vmul.f32 %v1561_v3, %v308_v5  ;;  %579 = vmatpush.msrb.mxu1 %v400_v49  ;;  %599 = vmatpush.msrb.mxu2 %v401_v51  ;;  %v406_v24 = vld [vmem:[%s2841_s3 + $0x158] sm:$0xff]  ;;  %v388_v26 = vld [vmem:[%s2841_s3 + $0xc8] sm:$0xff]  ;;  %v371_v29 = vld [vmem:[%s2841_s3 + $0x40] sm:$0xff] }
  0x21   : > { %v322_v18 = vmul.f32 %v1563_v15, %v321_v17  ;;  %619 = vmatpush.msrb.mxu3 %v402_v52  ;;  %560 = vmatpush.msrb.mxu0 %v383_v53  ;;  %v390_v28 = vld [vmem:[%s2841_s3 + $0xd8] sm:$0xff]  ;;  %v372_v30 = vld [vmem:[%s2841_s3 + $0x48] sm:$0xff]  ;;  %v423_v33 = vld [vmem:[%s2841_s3 + $0x1e0] sm:$0xff] }
  0x22   : > { %v310_v7 = vadd.f32 %v1561_v3, %v309_v6  ;;  %580 = vmatpush.msrb.mxu1 %v384_v54  ;;  %600 = vmatpush.msrb.mxu2 %v385_v55  ;;  %v1557_v6 = vld [vmem:[%s2839_s1] ss:$0 sm:$0xff]  ;;  %v374_v32 = vld [vmem:[%s2841_s3 + $0x58] sm:$0xff]  ;;  %v424_v34 = vld [vmem:[%s2841_s3 + $0x1e8] sm:$0xff] }
  0x23   : > { %v323_v19 = vadd.f32 %v1563_v15, %v322_v18  ;;  %620 = vmatpush.msrb.mxu3 %v386_v56  ;;  %561 = vmatpush.msrb.mxu0 %v367_v58  ;;  %v419_v18 = vld [vmem:[%s2841_s3 + $0x1c0] sm:$0xff]  ;;  %v425_v35 = vld [vmem:[%s2841_s3 + $0x1f0] sm:$0xff]  ;;  %v408_v38 = vld [vmem:[%s2841_s3 + $0x168] sm:$0xff] }
  0x24   : > { %v312_v8 = vsel %vm311_vm1, %v1561_v3, %v310_v7  ;;  %581 = vmatpush.msrb.mxu1 %v368_v59  ;;  %601 = vmatpush.msrb.mxu2 %v369_v61  ;;  %v407_v37 = vld [vmem:[%s2841_s3 + $0x160] sm:$0xff]  ;;  %v409_v39 = vld [vmem:[%s2841_s3 + $0x170] sm:$0xff]  ;;  %v410_v40 = vld [vmem:[%s2841_s3 + $0x178] sm:$0xff] }
  0x25   : > { %v325_v20 = vsel %vm324_vm2, %v1563_v15, %v323_v19  ;;  %621 = vmatpush.msrb.mxu3 %v370_v62  ;;  %v420_v19 = vld [vmem:[%s2841_s3 + $0x1c8] sm:$0xff]  ;;  %v394_v44 = vld [vmem:[%s2841_s3 + $0xf8] sm:$0xff]  ;;  %v375_v45 = vld [vmem:[%s2841_s3 + $0x60] sm:$0xff] }
  0x26   : > { %v392_v42 = vld [vmem:[%s2841_s3 + $0xe8] sm:$0xff]  ;;  %v377_v47 = vld [vmem:[%s2841_s3 + $0x70] sm:$0xff]  ;;  %v378_v48 = vld [vmem:[%s2841_s3 + $0x78] sm:$0xff] }
  0x27   : > { %v376_v46 = vld [vmem:[%s2841_s3 + $0x68] sm:$0xff]  ;;  %v817_v49 = vld [vmem:[%s2843_s5 + $0x78] sm:$0xff]  ;;  %v816_v53 = vld [vmem:[%s2843_s5 + $0x70] sm:$0xff] }
  0x28   : > { %v849_v51 = vld [vmem:[%s2843_s5 + $0x178] sm:$0xff]  ;;  %v832_v54 = vld [vmem:[%s2843_s5 + $0xf0] sm:$0xff]  ;;  %v831_v58 = vld [vmem:[%s2843_s5 + $0xe8] sm:$0xff] }
  0x29   : > { %v865_v52 = vld [vmem:[%s2843_s5 + $0x1f8] sm:$0xff]  ;;  %v848_v55 = vld [vmem:[%s2843_s5 + $0x170] sm:$0xff]  ;;  %v847_v59 = vld [vmem:[%s2843_s5 + $0x168] sm:$0xff] }
  0x2a   : > { %v864_v56 = vld [vmem:[%s2843_s5 + $0x1f0] sm:$0xff]  ;;  %v814_v61 = vld [vmem:[%s2843_s5 + $0x60] sm:$0xff] }
  0x2b   : > { %v830_v62 = vld [vmem:[%s2843_s5 + $0xe0] sm:$0xff] }
  0x8d   : > { %v305_v9 = vpop.xlane.xlu0 %304 }
  0x8e   : > { %v313_v10 = vmul.f32 %v312_v8, %v305_v9 }
  0x90   : > { %v1755_v11 = vsub.f32 %v299_v0, %v313_v10 }
  0x92   : > { %v315_v12 = vmul.f32 %v1755_v11, %v1755_v11 }
  0x94   : > { %v316_v13 = vsel %vm302_vm0, %v315_v12, 0.0  ;;  %v330_v12 = vmul.f32 %v1557_v6, %v1755_v11  ;;  %v421_v11 = vld [vmem:[%s2841_s3 + $0x1d0] sm:$0xff] }
  0x95   : > { %317 = vadd.xlane.f32.xlu0 %v316_v13  ;;  %v1558_v13 = vld [vmem:[%s2840_s2] ss:$0 sm:$0xff]  ;;  %v828_v6 = vld [vmem:[%s2843_s5 + $0xd0] sm:$0xff] }
 0x108   : > { %v318_v21 = vpop.xlane.xlu0 %317 }
 0x109   : > { %v1760_v22 = vmul.f32 %v325_v20, %v318_v21  ;;  %v422_v20 = vld [vmem:[%s2841_s3 + $0x1d8] sm:$0xff]  ;;  %v403_v21 = vld [vmem:[%s2841_s3 + $0x140] sm:$0xff] }
 0x10b   : > { %1564 = vrsqrt.f32 %v1760_v22  ;;  %vm338_vm3 = vcmp.eq.f32.partialorder %v1760_v22, inf  ;;  %v341_v60 = vand.u32 2147483648, %v1760_v22  ;;  %vm340_vm4 = vcmp.eq.f32.partialorder %v1760_v22, 0.0 }
 0x111   : > { %v1565_v27 = vpop.eup %1564 }
 0x112   : > { %v332_v31 = vmul.f32 %v1565_v27, %v1760_v22 }
 0x114   : > { %v333_v36 = vmul.f32 %v1565_v27, %v332_v31  ;;  %v373_v31 = vld [vmem:[%s2841_s3 + $0x50] sm:$0xff] }
 0x116   : > { %v334_v41 = vmul.f32 0.5, %v333_v36  ;;  %v426_v36 = vld [vmem:[%s2841_s3 + $0x1f8] sm:$0xff] }
 0x118   : > { %v335_v43 = vsub.f32 1.5, %v334_v41  ;;  %v391_v41 = vld [vmem:[%s2841_s3 + $0xe0] sm:$0xff] }
 0x11a   : > { %v336_v50 = vmul.f32 %v1565_v27, %v335_v43  ;;  %v389_v27 = vld [vmem:[%s2841_s3 + $0xd0] sm:$0xff] }
 0x11b   : > { %v393_v43 = vld [vmem:[%s2841_s3 + $0xf0] sm:$0xff] }
 0x11c   : > { %v337_v57 = vmul.f32 %v336_v50, %v1760_v22  ;;  %v833_v50 = vld [vmem:[%s2843_s5 + $0xf8] sm:$0xff] }
 0x11e   : > { %v339_v63 = vsel %vm338_vm3, %v1760_v22, %v337_v57  ;;  %v404_v22 = vld [vmem:[%s2841_s3 + $0x148] sm:$0xff] }
 0x11f   : > { %v342_v0 = vsel %vm340_vm4, %v341_v60, %v339_v63  ;;  %v815_v57 = vld [vmem:[%s2843_s5 + $0x68] sm:$0xff]  ;;  %v846_v63 = vld [vmem:[%s2843_s5 + $0x160] sm:$0xff] }
 0x120   : > { %v343_v1 = vadd.f32 1e-06, %v342_v0  ;;  %v863_v60 = vld [vmem:[%s2843_s5 + $0x1e8] sm:$0xff]  ;;  %v862_v0 = vld [vmem:[%s2843_s5 + $0x1e0] sm:$0xff] }
 0x122   : > { %1566 = vrcp.f32 %v343_v1  ;;  %v355_v5 = vand.u32 2147483648, %v343_v1  ;;  %v353_v8 = vand.u32 2147483647, %v343_v1  ;;  %vm349_vm6 = vweird.f32 %v343_v1 }
 0x124   : > { %v356_v10 = vor.u32 1.1754944e-38, %v355_v5  ;;  %vm354_vm8 = vcmp.eq.f32.partialorder %v353_v8, 8.507059e+37  ;;  %v812_v5 = vld [vmem:[%s2843_s5 + $0x50] sm:$0xff] }
 0x125   : > { %v860_v8 = vld [vmem:[%s2843_s5 + $0x1d0] sm:$0xff] }
 0x128   : > { %v1567_v2 = vpop.eup %1566 }
 0x129   : > { %v345_v3 = vmul.f32 %v1567_v2, %v343_v1  ;;  %vm350_vm5 = vweird.f32 %v1567_v2  ;;  %v813_v1 = vld [vmem:[%s2843_s5 + $0x58] sm:$0xff] }
 0x12a   : > { %vm351_vm7 = vmor %vm349_vm6, %vm350_vm5 }
 0x12b   : > { %v346_v4 = vsub.f32 1.0, %v345_v3  ;;  %v845_v3 = vld [vmem:[%s2843_s5 + $0x158] sm:$0xff] }
 0x12d   : > { %v347_v7 = vmul.f32 %v1567_v2, %v346_v4  ;;  %v861_v4 = vld [vmem:[%s2843_s5 + $0x1d8] sm:$0xff] }
 0x12f   : > { %v348_v9 = vadd.f32 %v1567_v2, %v347_v7  ;;  %v844_v7 = vld [vmem:[%s2843_s5 + $0x150] sm:$0xff] }
 0x131   : > { %v352_v14 = vsel %vm351_vm7, %v1567_v2, %v348_v9  ;;  %v829_v2 = vld [vmem:[%s2843_s5 + $0xd8] sm:$0xff]  ;;  %v811_v9 = vld [vmem:[%s2843_s5 + $0x48] sm:$0xff] }
 0x132   : > { %v357_v15 = vsel %vm354_vm8, %v356_v10, %v352_v14  ;;  %v827_v10 = vld [vmem:[%s2843_s5 + $0xc8] sm:$0xff]  ;;  %v810_v14 = vld [vmem:[%s2843_s5 + $0x40] sm:$0xff] }
 0x133   : > { %v358_v16 = vmul.f32 %v357_v15, %v330_v12  ;;  %v843_v12 = vld [vmem:[%s2843_s5 + $0x148] sm:$0xff]  ;;  %v826_v15 = vld [vmem:[%s2843_s5 + $0xc0] sm:$0xff] }
 0x135   : > { %v1872_v17 = vadd.f32 %v1558_v13, %v358_v16  ;;  %v859_v13 = vld [vmem:[%s2843_s5 + $0x1c8] sm:$0xff]  ;;  %v842_v16 = vld [vmem:[%s2843_s5 + $0x140] sm:$0xff] }
 0x137   : > { %1480 = vmatmul.msk.f32.vlgmr.msra.gmra.mxu0 %vm302_vm0, %v1872_v17  ;;  %1481 = vmatmul.msk.f32.vlgmr.msra.gmra.mxu1 %vm302_vm0, %v1872_v17 }
 0x138   : > { %1482 = vmatmul.msk.f32.vlgmr.msra.gmra.mxu2 %vm302_vm0, %v1872_v17  ;;  %1483 = vmatmul.msk.f32.vlgmr.msra.gmra.mxu3 %vm302_vm0, %v1872_v17 }
 0x139   : > { %638 = vmatpush.msra.mxu0 %v419_v18  ;;  %658 = vmatpush.msra.mxu1 %v420_v19  ;;  %v809_v18 = vld [vmem:[%s2843_s5 + $0x38] sm:$0xff] }
 0x13a   : > { %678 = vmatpush.msra.mxu2 %v421_v11  ;;  %698 = vmatpush.msra.mxu3 %v422_v20  ;;  %v825_v19 = vld [vmem:[%s2843_s5 + $0xb8] sm:$0xff] }
 0x13b   : > { %639 = vmatpush.msra.mxu0 %v403_v21  ;;  %659 = vmatpush.msra.mxu1 %v404_v22  ;;  %v841_v11 = vld [vmem:[%s2843_s5 + $0x138] sm:$0xff]  ;;  %v808_v21 = vld [vmem:[%s2843_s5 + $0x30] sm:$0xff] }
 0x13c   : > { %679 = vmatpush.msra.mxu2 %v405_v23  ;;  %699 = vmatpush.msra.mxu3 %v406_v24  ;;  %v857_v20 = vld [vmem:[%s2843_s5 + $0x1b8] sm:$0xff]  ;;  %v824_v22 = vld [vmem:[%s2843_s5 + $0xb0] sm:$0xff] }
 0x13d   : > { %640 = vmatpush.msra.mxu0 %v387_v25  ;;  %660 = vmatpush.msra.mxu1 %v388_v26  ;;  %v840_v23 = vld [vmem:[%s2843_s5 + $0x130] sm:$0xff]  ;;  %v807_v25 = vld [vmem:[%s2843_s5 + $0x28] sm:$0xff] }
 0x13e   : > { %680 = vmatpush.msra.mxu2 %v389_v27  ;;  %700 = vmatpush.msra.mxu3 %v390_v28  ;;  %v856_v24 = vld [vmem:[%s2843_s5 + $0x1b0] sm:$0xff]  ;;  %v823_v26 = vld [vmem:[%s2843_s5 + $0xa8] sm:$0xff] }
 0x13f   : > { %1484 = vmatmul.msk.f32.vlgmr.msrb.gmra.mxu0 %vm302_vm0, %v1872_v17  ;;  %1485 = vmatmul.msk.f32.vlgmr.msrb.gmra.mxu1 %vm302_vm0, %v1872_v17  ;;  %v839_v27 = vld [vmem:[%s2843_s5 + $0x128] sm:$0xff] }
 0x140   : > { %1486 = vmatmul.msk.f32.vlgmr.msrb.gmra.mxu2 %vm302_vm0, %v1872_v17  ;;  %1487 = vmatmul.msk.f32.vlgmr.msrb.gmra.mxu3 %vm302_vm0, %v1872_v17  ;;  %v855_v28 = vld [vmem:[%s2843_s5 + $0x1a8] sm:$0xff] }
 0x141   : > { %641 = vmatpush.msra.mxu0 %v371_v29  ;;  %661 = vmatpush.msra.mxu1 %v372_v30  ;;  %v806_v29 = vld [vmem:[%s2843_s5 + $0x20] sm:$0xff] }
 0x142   : > { %681 = vmatpush.msra.mxu2 %v373_v31  ;;  %701 = vmatpush.msra.mxu3 %v374_v32  ;;  %v822_v30 = vld [vmem:[%s2843_s5 + $0xa0] sm:$0xff] }
 0x143   : > { %718 = vmatpush.msrb.mxu0 %v423_v33  ;;  %738 = vmatpush.msrb.mxu1 %v424_v34  ;;  %v838_v31 = vld [vmem:[%s2843_s5 + $0x120] sm:$0xff]  ;;  %v805_v33 = vld [vmem:[%s2843_s5 + $0x18] sm:$0xff] }
 0x144   : > { %758 = vmatpush.msrb.mxu2 %v425_v35  ;;  %778 = vmatpush.msrb.mxu3 %v426_v36  ;;  %v854_v32 = vld [vmem:[%s2843_s5 + $0x1a0] sm:$0xff]  ;;  %v821_v34 = vld [vmem:[%s2843_s5 + $0x98] sm:$0xff] }
 0x145   : > { %719 = vmatpush.msrb.mxu0 %v407_v37  ;;  %739 = vmatpush.msrb.mxu1 %v408_v38  ;;  %v837_v35 = vld [vmem:[%s2843_s5 + $0x118] sm:$0xff]  ;;  %v804_v37 = vld [vmem:[%s2843_s5 + $0x10] sm:$0xff] }
 0x146   : > { %759 = vmatpush.msrb.mxu2 %v409_v39  ;;  %779 = vmatpush.msrb.mxu3 %v410_v40  ;;  %v853_v36 = vld [vmem:[%s2843_s5 + $0x198] sm:$0xff]  ;;  %v820_v38 = vld [vmem:[%s2843_s5 + $0x90] sm:$0xff] }
 0x147   : > { %1488 = vmatmul.msk.f32.vlgmr.msra.gmra.mxu0 %vm302_vm0, %v1872_v17  ;;  %1489 = vmatmul.msk.f32.vlgmr.msra.gmra.mxu1 %vm302_vm0, %v1872_v17  ;;  %v836_v39 = vld [vmem:[%s2843_s5 + $0x110] sm:$0xff] }
 0x148   : > { %1490 = vmatmul.msk.f32.vlgmr.msra.gmra.mxu2 %vm302_vm0, %v1872_v17  ;;  %1491 = vmatmul.msk.f32.vlgmr.msra.gmra.mxu3 %vm302_vm0, %v1872_v17  ;;  %v852_v40 = vld [vmem:[%s2843_s5 + $0x190] sm:$0xff] }
 0x149   : > { %720 = vmatpush.msrb.mxu0 %v391_v41  ;;  %740 = vmatpush.msrb.mxu1 %v392_v42  ;;  %v803_v41 = vld [vmem:[%s2843_s5 + $0x8] sm:$0xff] }
 0x14a   : > { %760 = vmatpush.msrb.mxu2 %v393_v43  ;;  %780 = vmatpush.msrb.mxu3 %v394_v44  ;;  %v819_v42 = vld [vmem:[%s2843_s5 + $0x88] sm:$0xff] }
 0x14b   : > { %721 = vmatpush.msrb.mxu0 %v375_v45  ;;  %741 = vmatpush.msrb.mxu1 %v376_v46  ;;  %v835_v43 = vld [vmem:[%s2843_s5 + $0x108] sm:$0xff]  ;;  %v802_v45 = vld [vmem:[%s2843_s5] sm:$0xff] }
 0x14c   : > { %761 = vmatpush.msrb.mxu2 %v377_v47  ;;  %781 = vmatpush.msrb.mxu3 %v378_v48  ;;  %v851_v44 = vld [vmem:[%s2843_s5 + $0x188] sm:$0xff]  ;;  %v818_v46 = vld [vmem:[%s2843_s5 + $0x80] sm:$0xff]  ;;  %v881_v47 = vld [vmem:[%s2843_s5 + $0x278] sm:$0xff] }
 0x14d   : > { %1058 = vmatpush.msra.mxu0 %v817_v49  ;;  %1078 = vmatpush.msra.mxu1 %v833_v50  ;;  %v897_v48 = vld [vmem:[%s2843_s5 + $0x2f8] sm:$0xff]  ;;  %v834_v49 = vld [vmem:[%s2843_s5 + $0x100] sm:$0xff] }
 0x14e   : > { %1098 = vmatpush.msra.mxu2 %v849_v51  ;;  %1118 = vmatpush.msra.mxu3 %v865_v52  ;;  %v850_v50 = vld [vmem:[%s2843_s5 + $0x180] sm:$0xff]  ;;  %v880_v51 = vld [vmem:[%s2843_s5 + $0x270] sm:$0xff] }
 0x14f   : > { %1492 = vmatmul.msk.f32.vlgmr.msrb.gmra.mxu0 %vm302_vm0, %v1872_v17  ;;  %1493 = vmatmul.msk.f32.vlgmr.msrb.gmra.mxu1 %vm302_vm0, %v1872_v17  ;;  %v896_v52 = vld [vmem:[%s2843_s5 + $0x2f0] sm:$0xff] }
 0x150   : > { %1494 = vmatmul.msk.f32.vlgmr.msrb.gmra.mxu2 %vm302_vm0, %v1872_v17  ;;  %1495 = vmatmul.msk.f32.vlgmr.msrb.gmra.mxu3 %vm302_vm0, %v1872_v17  ;;  %v858_v17 = vld [vmem:[%s2843_s5 + $0x1c0] sm:$0xff] }
 0x151   : > { %1059 = vmatpush.msra.mxu0 %v816_v53  ;;  %1079 = vmatpush.msra.mxu1 %v832_v54  ;;  %v913_v53 = vld [vmem:[%s2843_s5 + $0x378] sm:$0xff] }
 0x152   : > { %1099 = vmatpush.msra.mxu2 %v848_v55  ;;  %1119 = vmatpush.msra.mxu3 %v864_v56  ;;  %v929_v54 = vld [vmem:[%s2843_s5 + $0x3f8] sm:$0xff]  ;;  %v879_v55 = vld [vmem:[%s2843_s5 + $0x268] sm:$0xff] }
 0x153   : > { %1060 = vmatpush.msra.mxu0 %v815_v57  ;;  %1080 = vmatpush.msra.mxu1 %v831_v58  ;;  %v895_v56 = vld [vmem:[%s2843_s5 + $0x2e8] sm:$0xff]  ;;  %v912_v57 = vld [vmem:[%s2843_s5 + $0x370] sm:$0xff] }
 0x154   : > { %1100 = vmatpush.msra.mxu2 %v847_v59  ;;  %1120 = vmatpush.msra.mxu3 %v863_v60  ;;  %v928_v58 = vld [vmem:[%s2843_s5 + $0x3f0] sm:$0xff]  ;;  %v878_v59 = vld [vmem:[%s2843_s5 + $0x260] sm:$0xff] }
 0x155   : > { %1061 = vmatpush.msra.mxu0 %v814_v61  ;;  %1081 = vmatpush.msra.mxu1 %v830_v62  ;;  %v894_v60 = vld [vmem:[%s2843_s5 + $0x2e0] sm:$0xff]  ;;  %v911_v61 = vld [vmem:[%s2843_s5 + $0x368] sm:$0xff] }
 0x156   : > { %1101 = vmatpush.msra.mxu2 %v846_v63  ;;  %1121 = vmatpush.msra.mxu3 %v862_v0  ;;  %v927_v62 = vld [vmem:[%s2843_s5 + $0x3e8] sm:$0xff]  ;;  %v877_v63 = vld [vmem:[%s2843_s5 + $0x258] sm:$0xff] }
 0x157   : > { %1062 = vmatpush.msra.mxu0 %v813_v1  ;;  %1082 = vmatpush.msra.mxu1 %v829_v2  ;;  %v893_v0 = vld [vmem:[%s2843_s5 + $0x2d8] sm:$0xff]  ;;  %v910_v1 = vld [vmem:[%s2843_s5 + $0x360] sm:$0xff] }
 0x158   : > { %1102 = vmatpush.msra.mxu2 %v845_v3  ;;  %1122 = vmatpush.msra.mxu3 %v861_v4  ;;  %v926_v2 = vld [vmem:[%s2843_s5 + $0x3e0] sm:$0xff]  ;;  %v876_v3 = vld [vmem:[%s2843_s5 + $0x250] sm:$0xff] }
 0x159   : > { %1063 = vmatpush.msra.mxu0 %v812_v5  ;;  %1083 = vmatpush.msra.mxu1 %v828_v6  ;;  %v892_v4 = vld [vmem:[%s2843_s5 + $0x2d0] sm:$0xff]  ;;  %v909_v5 = vld [vmem:[%s2843_s5 + $0x358] sm:$0xff] }
 0x15a   : > { %1103 = vmatpush.msra.mxu2 %v844_v7  ;;  %1123 = vmatpush.msra.mxu3 %v860_v8  ;;  %v925_v6 = vld [vmem:[%s2843_s5 + $0x3d8] sm:$0xff]  ;;  %v875_v7 = vld [vmem:[%s2843_s5 + $0x248] sm:$0xff] }
 0x15b   : > { %1064 = vmatpush.msra.mxu0 %v811_v9  ;;  %1084 = vmatpush.msra.mxu1 %v827_v10  ;;  %v891_v8 = vld [vmem:[%s2843_s5 + $0x2c8] sm:$0xff]  ;;  %v908_v9 = vld [vmem:[%s2843_s5 + $0x350] sm:$0xff] }
 0x15c   : > { %1104 = vmatpush.msra.mxu2 %v843_v12  ;;  %1124 = vmatpush.msra.mxu3 %v859_v13  ;;  %v924_v10 = vld [vmem:[%s2843_s5 + $0x3d0] sm:$0xff]  ;;  %v874_v12 = vld [vmem:[%s2843_s5 + $0x240] sm:$0xff] }
 0x15d   : > { %1065 = vmatpush.msra.mxu0 %v810_v14  ;;  %1085 = vmatpush.msra.mxu1 %v826_v15  ;;  %v890_v13 = vld [vmem:[%s2843_s5 + $0x2c0] sm:$0xff]  ;;  %v907_v14 = vld [vmem:[%s2843_s5 + $0x348] sm:$0xff] }
 0x15e   : > { %1105 = vmatpush.msra.mxu2 %v842_v16  ;;  %1125 = vmatpush.msra.mxu3 %v858_v17  ;;  %v923_v15 = vld [vmem:[%s2843_s5 + $0x3c8] sm:$0xff]  ;;  %v873_v16 = vld [vmem:[%s2843_s5 + $0x238] sm:$0xff] }
 0x15f   : > { %1066 = vmatpush.msra.mxu0 %v809_v18  ;;  %1086 = vmatpush.msra.mxu1 %v825_v19  ;;  %v889_v17 = vld [vmem:[%s2843_s5 + $0x2b8] sm:$0xff]  ;;  %v906_v18 = vld [vmem:[%s2843_s5 + $0x340] sm:$0xff] }
 0x160   : > { %1106 = vmatpush.msra.mxu2 %v841_v11  ;;  %1126 = vmatpush.msra.mxu3 %v857_v20  ;;  %v922_v19 = vld [vmem:[%s2843_s5 + $0x3c0] sm:$0xff]  ;;  %v872_v11 = vld [vmem:[%s2843_s5 + $0x230] sm:$0xff] }
 0x161   : > { %1067 = vmatpush.msra.mxu0 %v808_v21  ;;  %1087 = vmatpush.msra.mxu1 %v824_v22  ;;  %v888_v20 = vld [vmem:[%s2843_s5 + $0x2b0] sm:$0xff]  ;;  %v905_v21 = vld [vmem:[%s2843_s5 + $0x338] sm:$0xff] }
 0x162   : > { %1107 = vmatpush.msra.mxu2 %v840_v23  ;;  %1127 = vmatpush.msra.mxu3 %v856_v24  ;;  %v921_v22 = vld [vmem:[%s2843_s5 + $0x3b8] sm:$0xff]  ;;  %v871_v23 = vld [vmem:[%s2843_s5 + $0x228] sm:$0xff] }
 0x163   : > { %1068 = vmatpush.msra.mxu0 %v807_v25  ;;  %1088 = vmatpush.msra.mxu1 %v823_v26  ;;  %v887_v24 = vld [vmem:[%s2843_s5 + $0x2a8] sm:$0xff]  ;;  %v904_v25 = vld [vmem:[%s2843_s5 + $0x330] sm:$0xff] }
 0x164   : > { %1108 = vmatpush.msra.mxu2 %v839_v27  ;;  %1128 = vmatpush.msra.mxu3 %v855_v28  ;;  %v920_v26 = vld [vmem:[%s2843_s5 + $0x3b0] sm:$0xff]  ;;  %v870_v27 = vld [vmem:[%s2843_s5 + $0x220] sm:$0xff] }
 0x165   : > { %1069 = vmatpush.msra.mxu0 %v806_v29  ;;  %1089 = vmatpush.msra.mxu1 %v822_v30  ;;  %v886_v28 = vld [vmem:[%s2843_s5 + $0x2a0] sm:$0xff]  ;;  %v869_v29 = vld [vmem:[%s2843_s5 + $0x218] sm:$0xff] }
 0x166   : > { %1109 = vmatpush.msra.mxu2 %v838_v31  ;;  %1129 = vmatpush.msra.mxu3 %v854_v32  ;;  %v885_v30 = vld [vmem:[%s2843_s5 + $0x298] sm:$0xff]  ;;  %v868_v31 = vld [vmem:[%s2843_s5 + $0x210] sm:$0xff] }
 0x167   : > { %1070 = vmatpush.msra.mxu0 %v805_v33  ;;  %1090 = vmatpush.msra.mxu1 %v821_v34  ;;  %v884_v32 = vld [vmem:[%s2843_s5 + $0x290] sm:$0xff]  ;;  %v903_v33 = vld [vmem:[%s2843_s5 + $0x328] sm:$0xff] }
 0x168   : > { %1110 = vmatpush.msra.mxu2 %v837_v35  ;;  %1130 = vmatpush.msra.mxu3 %v853_v36  ;;  %v919_v34 = vld [vmem:[%s2843_s5 + $0x3a8] sm:$0xff] }
 0x169   : > { %1071 = vmatpush.msra.mxu0 %v804_v37  ;;  %1091 = vmatpush.msra.mxu1 %v820_v38  ;;  %v867_v35 = vld [vmem:[%s2843_s5 + $0x208] sm:$0xff]  ;;  %v902_v37 = vld [vmem:[%s2843_s5 + $0x320] sm:$0xff] }
 0x16a   : > { %1111 = vmatpush.msra.mxu2 %v836_v39  ;;  %1131 = vmatpush.msra.mxu3 %v852_v40  ;;  %v883_v36 = vld [vmem:[%s2843_s5 + $0x288] sm:$0xff]  ;;  %v918_v38 = vld [vmem:[%s2843_s5 + $0x3a0] sm:$0xff] }
 0x16b   : > { %1072 = vmatpush.msra.mxu0 %v803_v41  ;;  %1092 = vmatpush.msra.mxu1 %v819_v42  ;;  %v866_v39 = vld [vmem:[%s2843_s5 + $0x200] sm:$0xff]  ;;  %v901_v41 = vld [vmem:[%s2843_s5 + $0x318] sm:$0xff] }
 0x16c   : > { %1112 = vmatpush.msra.mxu2 %v835_v43  ;;  %1132 = vmatpush.msra.mxu3 %v851_v44  ;;  %v882_v40 = vld [vmem:[%s2843_s5 + $0x280] sm:$0xff]  ;;  %v917_v42 = vld [vmem:[%s2843_s5 + $0x398] sm:$0xff]  ;;  %v900_v43 = vld [vmem:[%s2843_s5 + $0x310] sm:$0xff] }
 0x16d   : > { %1073 = vmatpush.msra.mxu0 %v802_v45  ;;  %1093 = vmatpush.msra.mxu1 %v818_v46  ;;  %v916_v44 = vld [vmem:[%s2843_s5 + $0x390] sm:$0xff]  ;;  %v899_v45 = vld [vmem:[%s2843_s5 + $0x308] sm:$0xff] }
 0x16e   : > { %1113 = vmatpush.msra.mxu2 %v834_v49  ;;  %1133 = vmatpush.msra.mxu3 %v850_v50  ;;  %v915_v46 = vld [vmem:[%s2843_s5 + $0x388] sm:$0xff]  ;;  %v2389_v49 = vld [vmem:[%s2842_s4] sm:$0xff] }
 0x16f   : > { %1138 = vmatpush.msrb.mxu0 %v881_v47  ;;  %1158 = vmatpush.msrb.mxu1 %v897_v48  ;;  %v898_v47 = vld [vmem:[%s2843_s5 + $0x300] sm:$0xff]  ;;  %v431_v50 = vperm.slane %v2389_v49, 0 }
 0x170   : > { %1178 = vmatpush.msrb.mxu2 %v913_v53  ;;  %1198 = vmatpush.msrb.mxu3 %v929_v54  ;;  %v914_v48 = vld [vmem:[%s2843_s5 + $0x380] sm:$0xff] }
 0x171   : > { %1139 = vmatpush.msrb.mxu0 %v880_v51  ;;  %1159 = vmatpush.msrb.mxu1 %v896_v52  ;;  %v432_v51 = vperm.slane %v2389_v49, 1 }
 0x172   : > { %1179 = vmatpush.msrb.mxu2 %v912_v57  ;;  %1199 = vmatpush.msrb.mxu3 %v928_v58  ;;  %v945_v58 = vld [vmem:[%s2843_s5 + $0x478] sm:$0xff] }
 0x173   : > { %1140 = vmatpush.msrb.mxu0 %v879_v55  ;;  %1160 = vmatpush.msrb.mxu1 %v895_v56 }
 0x174   : > { %1180 = vmatpush.msrb.mxu2 %v911_v61  ;;  %1200 = vmatpush.msrb.mxu3 %v927_v62  ;;  %v434_v61 = vperm.slane %v2389_v49, 3  ;;  %v944_v62 = vld [vmem:[%s2843_s5 + $0x470] sm:$0xff] }
 0x175   : > { %1141 = vmatpush.msrb.mxu0 %v878_v59  ;;  %1161 = vmatpush.msrb.mxu1 %v894_v60  ;;  %v961_v59 = vld [vmem:[%s2843_s5 + $0x4f8] sm:$0xff]  ;;  %v433_v60 = vperm.slane %v2389_v49, 2 }
 0x176   : > { %1181 = vmatpush.msrb.mxu2 %v910_v1  ;;  %1201 = vmatpush.msrb.mxu3 %v926_v2  ;;  %v436_v1 = vperm.slane %v2389_v49, 5 }
 0x177   : > { %1142 = vmatpush.msrb.mxu0 %v877_v63  ;;  %1162 = vmatpush.msrb.mxu1 %v893_v0  ;;  %v960_v63 = vld [vmem:[%s2843_s5 + $0x4f0] sm:$0xff]  ;;  %v435_v0 = vperm.slane %v2389_v49, 4 }
 0x178   : > { %1182 = vmatpush.msrb.mxu2 %v909_v5  ;;  %1202 = vmatpush.msrb.mxu3 %v925_v6  ;;  %v959_v5 = vld [vmem:[%s2843_s5 + $0x4e8] sm:$0xff] }
 0x179   : > { %1143 = vmatpush.msrb.mxu0 %v876_v3  ;;  %1163 = vmatpush.msrb.mxu1 %v892_v4  ;;  %v943_v4 = vld [vmem:[%s2843_s5 + $0x468] sm:$0xff] }
 0x17a   : > { %1183 = vmatpush.msrb.mxu2 %v908_v9  ;;  %1203 = vmatpush.msrb.mxu3 %v924_v10 }
 0x17b   : > { %1144 = vmatpush.msrb.mxu0 %v875_v7  ;;  %1164 = vmatpush.msrb.mxu1 %v891_v8 }
 0x17c   : > { %1184 = vmatpush.msrb.mxu2 %v907_v14  ;;  %1204 = vmatpush.msrb.mxu3 %v923_v15  ;;  %v942_v15 = vld [vmem:[%s2843_s5 + $0x460] sm:$0xff] }
 0x17d   : > { %1145 = vmatpush.msrb.mxu0 %v874_v12  ;;  %1165 = vmatpush.msrb.mxu1 %v890_v13 }
 0x17e   : > { %1185 = vmatpush.msrb.mxu2 %v906_v18  ;;  %1205 = vmatpush.msrb.mxu3 %v922_v19  ;;  %v977_v19 = vld [vmem:[%s2843_s5 + $0x578] sm:$0xff] }
 0x17f   : > { %1146 = vmatpush.msrb.mxu0 %v873_v16  ;;  %1166 = vmatpush.msrb.mxu1 %v889_v17  ;;  %v958_v16 = vld [vmem:[%s2843_s5 + $0x4e0] sm:$0xff] }
 0x180   : > { %1186 = vmatpush.msrb.mxu2 %v905_v21  ;;  %1206 = vmatpush.msrb.mxu3 %v921_v22  ;;  %v438_v21 = vperm.slane %v2389_v49, 7  ;;  %v941_v22 = vld [vmem:[%s2843_s5 + $0x458] sm:$0xff] }
 0x181   : > { %1147 = vmatpush.msrb.mxu0 %v872_v11  ;;  %1167 = vmatpush.msrb.mxu1 %v888_v20  ;;  %v993_v11 = vld [vmem:[%s2843_s5 + $0x5f8] sm:$0xff]  ;;  %v437_v20 = vperm.slane %v2389_v49, 6  ;;  %v952_v49 = vld [vmem:[%s2843_s5 + $0x4b0] sm:$0xff] }
 0x182   : > { %1187 = vmatpush.msrb.mxu2 %v904_v25  ;;  %1207 = vmatpush.msrb.mxu3 %v920_v26  ;;  %v992_v25 = vld [vmem:[%s2843_s5 + $0x5f0] sm:$0xff] }
 0x183   : > { %1148 = vmatpush.msrb.mxu0 %v871_v23  ;;  %1168 = vmatpush.msrb.mxu1 %v887_v24  ;;  %v957_v23 = vld [vmem:[%s2843_s5 + $0x4d8] sm:$0xff]  ;;  %v976_v24 = vld [vmem:[%s2843_s5 + $0x570] sm:$0xff] }
 0x184   : > { %1188 = vmatpush.msrb.mxu2 %v903_v33  ;;  %1208 = vmatpush.msrb.mxu3 %v919_v34  ;;  %v991_v33 = vld [vmem:[%s2843_s5 + $0x5e8] sm:$0xff] }
 0x185   : > { %1149 = vmatpush.msrb.mxu0 %v870_v27  ;;  %1169 = vmatpush.msrb.mxu1 %v886_v28  ;;  %v940_v28 = vld [vmem:[%s2843_s5 + $0x450] sm:$0xff]  ;;  %v939_v34 = vld [vmem:[%s2843_s5 + $0x448] sm:$0xff] }
 0x186   : > { %1189 = vmatpush.msrb.mxu2 %v902_v37  ;;  %1209 = vmatpush.msrb.mxu3 %v918_v38  ;;  %v974_v38 = vld [vmem:[%s2843_s5 + $0x560] sm:$0xff] }
 0x187   : > { %1150 = vmatpush.msrb.mxu0 %v869_v29  ;;  %1170 = vmatpush.msrb.mxu1 %v885_v30  ;;  %v956_v29 = vld [vmem:[%s2843_s5 + $0x4d0] sm:$0xff] }
 0x188   : > { %1190 = vmatpush.msrb.mxu2 %v901_v41  ;;  %1210 = vmatpush.msrb.mxu3 %v917_v42  ;;  %v954_v41 = vld [vmem:[%s2843_s5 + $0x4c0] sm:$0xff]  ;;  %v973_v42 = vld [vmem:[%s2843_s5 + $0x558] sm:$0xff] }
 0x189   : > { %1151 = vmatpush.msrb.mxu0 %v868_v31  ;;  %1171 = vmatpush.msrb.mxu1 %v884_v32  ;;  %v975_v32 = vld [vmem:[%s2843_s5 + $0x568] sm:$0xff] }
 0x18a   : > { %1191 = vmatpush.msrb.mxu2 %v900_v43  ;;  %1211 = vmatpush.msrb.mxu3 %v916_v44  ;;  %v989_v43 = vld [vmem:[%s2843_s5 + $0x5d8] sm:$0xff] }
 0x18b   : > { %1152 = vmatpush.msrb.mxu0 %v867_v35  ;;  %1172 = vmatpush.msrb.mxu1 %v883_v36  ;;  %v955_v35 = vld [vmem:[%s2843_s5 + $0x4c8] sm:$0xff]  ;;  %v937_v44 = vld [vmem:[%s2843_s5 + $0x438] sm:$0xff] }
 0x18c   : > { %1192 = vmatpush.msrb.mxu2 %v899_v45  ;;  %1212 = vmatpush.msrb.mxu3 %v915_v46  ;;  %v953_v45 = vld [vmem:[%s2843_s5 + $0x4b8] sm:$0xff]  ;;  %v972_v46 = vld [vmem:[%s2843_s5 + $0x550] sm:$0xff] }
 0x18d   : > { %1153 = vmatpush.msrb.mxu0 %v866_v39  ;;  %1173 = vmatpush.msrb.mxu1 %v882_v40  ;;  %v990_v39 = vld [vmem:[%s2843_s5 + $0x5e0] sm:$0xff] }
 0x18e   : > { %1193 = vmatpush.msrb.mxu2 %v898_v47  ;;  %1213 = vmatpush.msrb.mxu3 %v914_v48  ;;  %v938_v40 = vld [vmem:[%s2843_s5 + $0x440] sm:$0xff]  ;;  %v988_v47 = vld [vmem:[%s2843_s5 + $0x5d0] sm:$0xff] }
 0x18f   : > { %v936_v48 = vld [vmem:[%s2843_s5 + $0x430] sm:$0xff] }
 0x1b4   : > { %v483_v52 = vpop.f32.mrf.mxu0  ;;  %v503_v53 = vpop.f32.mrf.mxu1 }
 0x1b5   : > { %v484_v54 = vadd.f32 %v483_v52, %v431_v50  ;;  %v504_v55 = vadd.f32 %v503_v53, %v432_v51  ;;  %v971_v50 = vld [vmem:[%s2843_s5 + $0x548] sm:$0xff] }
 0x1b6   : > { %v987_v51 = vld [vmem:[%s2843_s5 + $0x5c8] sm:$0xff] }
 0x1b7   : > { %v786_v56 = vmax.f32 %v484_v54, 0.0  ;;  %v787_v57 = vmax.f32 %v504_v55, 0.0  ;;  %v935_v52 = vld [vmem:[%s2843_s5 + $0x428] sm:$0xff]  ;;  %v970_v54 = vld [vmem:[%s2843_s5 + $0x540] sm:$0xff] }
 0x1b8   : > { %v951_v53 = vld [vmem:[%s2843_s5 + $0x4a8] sm:$0xff]  ;;  %v986_v55 = vld [vmem:[%s2843_s5 + $0x5c0] sm:$0xff] }
 0x1b9   : > { %1074 = vmatmul.f32.vlgmr.msra.gmra.mxu0 %v786_v56  ;;  %1094 = vmatmul.f32.vlgmr.msra.gmra.mxu1 %v787_v57  ;;  %v2516_v56 = vld [vmem:[%s2842_s4 + $0x8] sm:$0xff]  ;;  %v934_v57 = vld [vmem:[%s2843_s5 + $0x420] sm:$0xff] }
 0x1ba   : > { %1218 = vmatpush.msra.mxu0 %v945_v58  ;;  %1238 = vmatpush.msra.mxu1 %v961_v59  ;;  %v950_v58 = vld [vmem:[%s2843_s5 + $0x4a0] sm:$0xff]  ;;  %v969_v59 = vld [vmem:[%s2843_s5 + $0x538] sm:$0xff] }
 0x1bb   : > { %v523_v2 = vpop.f32.mrf.mxu2  ;;  %v543_v3 = vpop.f32.mrf.mxu3 }
 0x1bc   : > { %v524_v6 = vadd.f32 %v523_v2, %v433_v60  ;;  %v544_v7 = vadd.f32 %v543_v3, %v434_v61  ;;  %1219 = vmatpush.msra.mxu0 %v944_v62  ;;  %1239 = vmatpush.msra.mxu1 %v960_v63  ;;  %v563_v8 = vpop.f32.mrf.mxu0  ;;  %v583_v9 = vpop.f32.mrf.mxu1  ;;  %v985_v60 = vld [vmem:[%s2843_s5 + $0x5b8] sm:$0xff]  ;;  %v439_v63 = vperm.slane %v2516_v56, 0  ;;  %v984_v2 = vld [vmem:[%s2843_s5 + $0x5b0] sm:$0xff] }
 0x1bd   : > { %v564_v10 = vadd.f32 %v563_v8, %v435_v0  ;;  %v584_v12 = vadd.f32 %v583_v9, %v436_v1  ;;  %v933_v61 = vld [vmem:[%s2843_s5 + $0x418] sm:$0xff]  ;;  %v440_v0 = vperm.slane %v2516_v56, 1  ;;  %v968_v1 = vld [vmem:[%s2843_s5 + $0x530] sm:$0xff]  ;;  %v983_v8 = vld [vmem:[%s2843_s5 + $0x5a8] sm:$0xff] }
 0x1be   : > { %v788_v13 = vmax.f32 %v524_v6, 0.0  ;;  %v789_v14 = vmax.f32 %v544_v7, 0.0  ;;  %1220 = vmatpush.msra.mxu0 %v943_v4  ;;  %1240 = vmatpush.msra.mxu1 %v959_v5  ;;  %v949_v62 = vld [vmem:[%s2843_s5 + $0x498] sm:$0xff]  ;;  %v932_v5 = vld [vmem:[%s2843_s5 + $0x410] sm:$0xff]  ;;  %v967_v7 = vld [vmem:[%s2843_s5 + $0x528] sm:$0xff] }
 0x1bf   : > { %v790_v17 = vmax.f32 %v564_v10, 0.0  ;;  %v791_v18 = vmax.f32 %v584_v12, 0.0  ;;  %v948_v6 = vld [vmem:[%s2843_s5 + $0x490] sm:$0xff]  ;;  %v931_v9 = vld [vmem:[%s2843_s5 + $0x408] sm:$0xff] }
 0x1c0   : > { %1114 = vmatmul.f32.vlgmr.msra.gmra.mxu2 %v788_v13  ;;  %1134 = vmatmul.f32.vlgmr.msra.gmra.mxu3 %v789_v14  ;;  %v947_v10 = vld [vmem:[%s2843_s5 + $0x488] sm:$0xff]  ;;  %v966_v14 = vld [vmem:[%s2843_s5 + $0x520] sm:$0xff] }
 0x1c1   : > { %1221 = vmatpush.msra.mxu0 %v942_v15  ;;  %1241 = vmatpush.msra.mxu1 %v958_v16  ;;  %v982_v15 = vld [vmem:[%s2843_s5 + $0x5a0] sm:$0xff] }
 0x1c2   : > { %1258 = vmatpush.msra.mxu2 %v977_v19  ;;  %1278 = vmatpush.msra.mxu3 %v993_v11  ;;  %v930_v16 = vld [vmem:[%s2843_s5 + $0x400] sm:$0xff]  ;;  %v981_v19 = vld [vmem:[%s2843_s5 + $0x598] sm:$0xff]  ;;  %v441_v11 = vperm.slane %v2516_v56, 2 }
 0x1c3   : > { %1154 = vmatmul.f32.vlgmr.msrb.gmra.mxu0 %v790_v17  ;;  %1174 = vmatmul.f32.vlgmr.msrb.gmra.mxu1 %v791_v18  ;;  %v603_v26 = vpop.f32.mrf.mxu2  ;;  %v623_v27 = vpop.f32.mrf.mxu3  ;;  %v946_v17 = vld [vmem:[%s2843_s5 + $0x480] sm:$0xff]  ;;  %v965_v18 = vld [vmem:[%s2843_s5 + $0x518] sm:$0xff] }
 0x1c4   : > { %1222 = vmatpush.msra.mxu0 %v941_v22  ;;  %1242 = vmatpush.msra.mxu1 %v957_v23  ;;  %v604_v30 = vadd.f32 %v603_v26, %v437_v20  ;;  %v624_v31 = vadd.f32 %v623_v27, %v438_v21  ;;  %v643_v3 = vpop.f32.mrf.mxu0  ;;  %v663_v4 = vpop.f32.mrf.mxu1  ;;  %v442_v20 = vperm.slane %v2516_v56, 3  ;;  %v1025_v26 = vld [vmem:[%s2843_s5 + $0x6f8] sm:$0xff]  ;;  %v964_v27 = vld [vmem:[%s2843_s5 + $0x510] sm:$0xff] }
 0x1c5   : > { %1259 = vmatpush.msra.mxu2 %v976_v24  ;;  %1279 = vmatpush.msra.mxu3 %v992_v25  ;;  %v644_v12 = vadd.f32 %v643_v3, %v439_v63  ;;  %v664_v13 = vadd.f32 %v663_v4, %v440_v0  ;;  %v1009_v25 = vld [vmem:[%s2843_s5 + $0x678] sm:$0xff]  ;;  %v1036_v0 = vld [vmem:[%s2843_s5 + $0x750] sm:$0xff]  ;;  %v1035_v4 = vld [vmem:[%s2843_s5 + $0x748] sm:$0xff] }
 0x1c6   : > { %v792_v36 = vmax.f32 %v604_v30, 0.0  ;;  %v793_v37 = vmax.f32 %v624_v31, 0.0  ;;  %1223 = vmatpush.msra.mxu0 %v940_v28  ;;  %1243 = vmatpush.msra.mxu1 %v956_v29  ;;  %v980_v28 = vld [vmem:[%s2843_s5 + $0x590] sm:$0xff]  ;;  %v1017_v63 = vld [vmem:[%s2843_s5 + $0x6b8] sm:$0xff] }
 0x1c7   : > { %1260 = vmatpush.msra.mxu2 %v975_v32  ;;  %1280 = vmatpush.msra.mxu3 %v991_v33  ;;  %v794_v21 = vmax.f32 %v644_v12, 0.0  ;;  %v795_v22 = vmax.f32 %v664_v13, 0.0  ;;  %v1008_v29 = vld [vmem:[%s2843_s5 + $0x670] sm:$0xff]  ;;  %v963_v33 = vld [vmem:[%s2843_s5 + $0x508] sm:$0xff]  ;;  %v1014_v12 = vld [vmem:[%s2843_s5 + $0x6a0] sm:$0xff] }
 0x1c8   : > { %1224 = vmatpush.msra.mxu0 %v939_v34  ;;  %1244 = vmatpush.msra.mxu1 %v955_v35  ;;  %v1024_v30 = vld [vmem:[%s2843_s5 + $0x6f0] sm:$0xff]  ;;  %v979_v34 = vld [vmem:[%s2843_s5 + $0x588] sm:$0xff]  ;;  %v1033_v13 = vld [vmem:[%s2843_s5 + $0x738] sm:$0xff] }
 0x1c9   : > { %1261 = vmatpush.msra.mxu2 %v974_v38  ;;  %1281 = vmatpush.msra.mxu3 %v990_v39  ;;  %v1007_v35 = vld [vmem:[%s2843_s5 + $0x668] sm:$0xff]  ;;  %v978_v38 = vld [vmem:[%s2843_s5 + $0x580] sm:$0xff]  ;;  %v1016_v3 = vld [vmem:[%s2843_s5 + $0x6b0] sm:$0xff] }
 0x1ca   : > { %1194 = vmatmul.f32.vlgmr.msrb.gmra.mxu2 %v792_v36  ;;  %1214 = vmatmul.f32.vlgmr.msrb.gmra.mxu3 %v793_v37  ;;  %v1023_v36 = vld [vmem:[%s2843_s5 + $0x6e8] sm:$0xff]  ;;  %v962_v37 = vld [vmem:[%s2843_s5 + $0x500] sm:$0xff] }
 0x1cb   : > { %1225 = vmatpush.msra.mxu0 %v938_v40  ;;  %1245 = vmatpush.msra.mxu1 %v954_v41  ;;  %v683_v23 = vpop.f32.mrf.mxu2  ;;  %v703_v24 = vpop.f32.mrf.mxu3  ;;  %v1006_v41 = vld [vmem:[%s2843_s5 + $0x660] sm:$0xff] }
 0x1cc   : > { %1262 = vmatpush.msra.mxu2 %v973_v42  ;;  %1282 = vmatpush.msra.mxu3 %v989_v43  ;;  %v684_v31 = vadd.f32 %v683_v23, %v441_v11  ;;  %v704_v32 = vadd.f32 %v703_v24, %v442_v20  ;;  %v1022_v42 = vld [vmem:[%s2843_s5 + $0x6e0] sm:$0xff]  ;;  %v1041_v43 = vld [vmem:[%s2843_s5 + $0x778] sm:$0xff]  ;;  %v1048_v11 = vld [vmem:[%s2843_s5 + $0x7b0] sm:$0xff]  ;;  %v723_v20 = vpop.f32.mrf.mxu0 }
 0x1cd   : > { %1226 = vmatpush.msra.mxu0 %v937_v44  ;;  %1246 = vmatpush.msra.mxu1 %v953_v45  ;;  %v1057_v44 = vld [vmem:[%s2843_s5 + $0x7f8] sm:$0xff]  ;;  %v1012_v23 = vld [vmem:[%s2843_s5 + $0x690] sm:$0xff]  ;;  %v1031_v24 = vld [vmem:[%s2843_s5 + $0x728] sm:$0xff] }
 0x1ce   : > { %1263 = vmatpush.msra.mxu2 %v972_v46  ;;  %1283 = vmatpush.msra.mxu3 %v988_v47  ;;  %v796_v39 = vmax.f32 %v684_v31, 0.0  ;;  %v797_v40 = vmax.f32 %v704_v32, 0.0  ;;  %v1005_v45 = vld [vmem:[%s2843_s5 + $0x658] sm:$0xff]  ;;  %v1040_v47 = vld [vmem:[%s2843_s5 + $0x770] sm:$0xff]  ;;  %v1046_v31 = vld [vmem:[%s2843_s5 + $0x7a0] sm:$0xff] }
 0x1cf   : > { %1227 = vmatpush.msra.mxu0 %v936_v48  ;;  %1247 = vmatpush.msra.mxu1 %v952_v49  ;;  %v1021_v46 = vld [vmem:[%s2843_s5 + $0x6d8] sm:$0xff]  ;;  %v1056_v48 = vld [vmem:[%s2843_s5 + $0x7f0] sm:$0xff]  ;;  %v994_v32 = vld [vmem:[%s2843_s5 + $0x600] sm:$0xff] }
 0x1d0   : > { %1264 = vmatpush.msra.mxu2 %v971_v50  ;;  %1284 = vmatpush.msra.mxu3 %v987_v51  ;;  %v1004_v49 = vld [vmem:[%s2843_s5 + $0x650] sm:$0xff]  ;;  %v1039_v51 = vld [vmem:[%s2843_s5 + $0x768] sm:$0xff] }
 0x1d1   : > { %1228 = vmatpush.msra.mxu0 %v935_v52  ;;  %1248 = vmatpush.msra.mxu1 %v951_v53  ;;  %v1020_v50 = vld [vmem:[%s2843_s5 + $0x6d0] sm:$0xff]  ;;  %v1055_v52 = vld [vmem:[%s2843_s5 + $0x7e8] sm:$0xff] }
 0x1d2   : > { %1265 = vmatpush.msra.mxu2 %v970_v54  ;;  %1285 = vmatpush.msra.mxu3 %v986_v55  ;;  %v1003_v53 = vld [vmem:[%s2843_s5 + $0x648] sm:$0xff]  ;;  %v1038_v55 = vld [vmem:[%s2843_s5 + $0x760] sm:$0xff] }
 0x1d3   : > { %1229 = vmatpush.msra.mxu0 %v934_v57  ;;  %1249 = vmatpush.msra.mxu1 %v950_v58  ;;  %v1019_v54 = vld [vmem:[%s2843_s5 + $0x6c8] sm:$0xff]  ;;  %v1054_v57 = vld [vmem:[%s2843_s5 + $0x7e0] sm:$0xff] }
 0x1d4   : > { %1266 = vmatpush.msra.mxu2 %v969_v59  ;;  %1286 = vmatpush.msra.mxu3 %v985_v60  ;;  %v1002_v58 = vld [vmem:[%s2843_s5 + $0x640] sm:$0xff]  ;;  %v1037_v60 = vld [vmem:[%s2843_s5 + $0x758] sm:$0xff] }
 0x1d5   : > { %1230 = vmatpush.msra.mxu0 %v933_v61  ;;  %1250 = vmatpush.msra.mxu1 %v949_v62  ;;  %v1018_v59 = vld [vmem:[%s2843_s5 + $0x6c0] sm:$0xff]  ;;  %v1053_v61 = vld [vmem:[%s2843_s5 + $0x7d8] sm:$0xff] }
 0x1d6   : > { %1267 = vmatpush.msra.mxu2 %v968_v1  ;;  %1287 = vmatpush.msra.mxu3 %v984_v2  ;;  %v1001_v62 = vld [vmem:[%s2843_s5 + $0x638] sm:$0xff]  ;;  %v1052_v1 = vld [vmem:[%s2843_s5 + $0x7d0] sm:$0xff] }
 0x1d7   : > { %1231 = vmatpush.msra.mxu0 %v932_v5  ;;  %1251 = vmatpush.msra.mxu1 %v948_v6  ;;  %v1000_v2 = vld [vmem:[%s2843_s5 + $0x630] sm:$0xff]  ;;  %v1051_v5 = vld [vmem:[%s2843_s5 + $0x7c8] sm:$0xff] }
 0x1d8   : > { %1268 = vmatpush.msra.mxu2 %v967_v7  ;;  %1288 = vmatpush.msra.mxu3 %v983_v8  ;;  %v999_v6 = vld [vmem:[%s2843_s5 + $0x628] sm:$0xff]  ;;  %v1034_v8 = vld [vmem:[%s2843_s5 + $0x740] sm:$0xff] }
 0x1d9   : > { %1232 = vmatpush.msra.mxu0 %v931_v9  ;;  %1252 = vmatpush.msra.mxu1 %v947_v10  ;;  %v1015_v7 = vld [vmem:[%s2843_s5 + $0x6a8] sm:$0xff]  ;;  %v1050_v9 = vld [vmem:[%s2843_s5 + $0x7c0] sm:$0xff] }
 0x1da   : > { %1269 = vmatpush.msra.mxu2 %v966_v14  ;;  %1289 = vmatpush.msra.mxu3 %v982_v15  ;;  %v998_v10 = vld [vmem:[%s2843_s5 + $0x620] sm:$0xff]  ;;  %v1049_v14 = vld [vmem:[%s2843_s5 + $0x7b8] sm:$0xff] }
 0x1db   : > { %1233 = vmatpush.msra.mxu0 %v930_v16  ;;  %1253 = vmatpush.msra.mxu1 %v946_v17  ;;  %v997_v15 = vld [vmem:[%s2843_s5 + $0x618] sm:$0xff]  ;;  %v443_v17 = vperm.slane %v2516_v56, 4 }
 0x1dc   : > { %1270 = vmatpush.msra.mxu2 %v965_v18  ;;  %1290 = vmatpush.msra.mxu3 %v981_v19  ;;  %v1013_v16 = vld [vmem:[%s2843_s5 + $0x698] sm:$0xff]  ;;  %v444_v18 = vperm.slane %v2516_v56, 5  ;;  %v1032_v19 = vld [vmem:[%s2843_s5 + $0x730] sm:$0xff] }
 0x1dd   : > { %1234 = vmatmul.f32.vlgmr.msra.gmra.mxu0 %v794_v21  ;;  %1254 = vmatmul.f32.vlgmr.msra.gmra.mxu1 %v795_v22  ;;  %v743_v21 = vpop.f32.mrf.mxu1  ;;  %v996_v22 = vld [vmem:[%s2843_s5 + $0x610] sm:$0xff] }
 0x1de   : > { %1298 = vmatpush.msrb.mxu0 %v1009_v25  ;;  %1318 = vmatpush.msrb.mxu1 %v1025_v26  ;;  %v1047_v25 = vld [vmem:[%s2843_s5 + $0x7a8] sm:$0xff] }
 0x1df   : > { %1271 = vmatpush.msra.mxu2 %v964_v27  ;;  %1291 = vmatpush.msra.mxu3 %v980_v28  ;;  %v995_v26 = vld [vmem:[%s2843_s5 + $0x608] sm:$0xff]  ;;  %v724_v28 = vadd.f32 %v723_v20, %v443_v17  ;;  %v1568_v20 = vld [vmem:[%s1751_s19] sm:$0xff] }
 0x1e0   : > { %1299 = vmatpush.msrb.mxu0 %v1008_v29  ;;  %1319 = vmatpush.msrb.mxu1 %v1024_v30  ;;  %v1011_v27 = vld [vmem:[%s2843_s5 + $0x688] sm:$0xff]  ;;  %v744_v29 = vadd.f32 %v743_v21, %v444_v18  ;;  %v1030_v30 = vld [vmem:[%s2843_s5 + $0x720] sm:$0xff] }
 0x1e1   : > { %1272 = vmatpush.msra.mxu2 %v963_v33  ;;  %1292 = vmatpush.msra.mxu3 %v979_v34  ;;  %v1010_v33 = vld [vmem:[%s2843_s5 + $0x680] sm:$0xff]  ;;  %v445_v34 = vperm.slane %v2516_v56, 6 }
 0x1e2   : > { %1300 = vmatpush.msrb.mxu0 %v1007_v35  ;;  %1320 = vmatpush.msrb.mxu1 %v1023_v36  ;;  %v446_v35 = vperm.slane %v2516_v56, 7  ;;  %v1029_v36 = vld [vmem:[%s2843_s5 + $0x718] sm:$0xff]  ;;  %v1028_v56 = vld [vmem:[%s2843_s5 + $0x710] sm:$0xff] }
 0x1e3   : > { %1273 = vmatpush.msra.mxu2 %v962_v37  ;;  %1293 = vmatpush.msra.mxu3 %v978_v38  ;;  %v1045_v37 = vld [vmem:[%s2843_s5 + $0x798] sm:$0xff]  ;;  %v763_v38 = vpop.f32.mrf.mxu2 }
 0x1e4   : > { %1274 = vmatmul.f32.vlgmr.msra.gmra.mxu2 %v796_v39  ;;  %1294 = vmatmul.f32.vlgmr.msra.gmra.mxu3 %v797_v40  ;;  %v783_v39 = vpop.f32.mrf.mxu3  ;;  %v798_v40 = vmax.f32 %v724_v28, 0.0 }
 0x1e5   : > { %1301 = vmatpush.msrb.mxu0 %v1006_v41  ;;  %1321 = vmatpush.msrb.mxu1 %v1022_v42  ;;  %v799_v41 = vmax.f32 %v744_v29, 0.0  ;;  %v1044_v42 = vld [vmem:[%s2843_s5 + $0x790] sm:$0xff] }
 0x1e6   : > { %1338 = vmatpush.msrb.mxu2 %v1041_v43  ;;  %1358 = vmatpush.msrb.mxu3 %v1057_v44  ;;  %v764_v43 = vadd.f32 %v763_v38, %v445_v34  ;;  %v784_v44 = vadd.f32 %v783_v39, %v446_v35 }
 0x1e7   : > { %1302 = vmatpush.msrb.mxu0 %v1005_v45  ;;  %1322 = vmatpush.msrb.mxu1 %v1021_v46  ;;  %v1027_v45 = vld [vmem:[%s2843_s5 + $0x708] sm:$0xff] }
 0x1e8   : > { %1339 = vmatpush.msrb.mxu2 %v1040_v47  ;;  %1359 = vmatpush.msrb.mxu3 %v1056_v48  ;;  %v1043_v46 = vld [vmem:[%s2843_s5 + $0x788] sm:$0xff]  ;;  %v1026_v47 = vld [vmem:[%s2843_s5 + $0x700] sm:$0xff] }
 0x1e9   : > { %1303 = vmatpush.msrb.mxu0 %v1004_v49  ;;  %1323 = vmatpush.msrb.mxu1 %v1020_v50  ;;  %v1042_v48 = vld [vmem:[%s2843_s5 + $0x780] sm:$0xff]  ;;  %v800_v49 = vmax.f32 %v764_v43, 0.0  ;;  %v801_v50 = vmax.f32 %v784_v44, 0.0 }
 0x1ea   : > { %1340 = vmatpush.msrb.mxu2 %v1039_v51  ;;  %1360 = vmatpush.msrb.mxu3 %v1055_v52 }
 0x1eb   : > { %1304 = vmatpush.msrb.mxu0 %v1003_v53  ;;  %1324 = vmatpush.msrb.mxu1 %v1019_v54 }
 0x1ec   : > { %1341 = vmatpush.msrb.mxu2 %v1038_v55  ;;  %1361 = vmatpush.msrb.mxu3 %v1054_v57 }
 0x1ed   : > { %1305 = vmatpush.msrb.mxu0 %v1002_v58  ;;  %1325 = vmatpush.msrb.mxu1 %v1018_v59 }
 0x1ee   : > { %1342 = vmatpush.msrb.mxu2 %v1037_v60  ;;  %1362 = vmatpush.msrb.mxu3 %v1053_v61 }
 0x1ef   : > { %1306 = vmatpush.msrb.mxu0 %v1001_v62  ;;  %1326 = vmatpush.msrb.mxu1 %v1017_v63 }
 0x1f0   : > { %1343 = vmatpush.msrb.mxu2 %v1036_v0  ;;  %1363 = vmatpush.msrb.mxu3 %v1052_v1 }
 0x1f1   : > { %1307 = vmatpush.msrb.mxu0 %v1000_v2  ;;  %1327 = vmatpush.msrb.mxu1 %v1016_v3 }
 0x1f2   : > { %1344 = vmatpush.msrb.mxu2 %v1035_v4  ;;  %1364 = vmatpush.msrb.mxu3 %v1051_v5 }
 0x1f3   : > { %1308 = vmatpush.msrb.mxu0 %v999_v6  ;;  %1328 = vmatpush.msrb.mxu1 %v1015_v7 }
 0x1f4   : > { %1345 = vmatpush.msrb.mxu2 %v1034_v8  ;;  %1365 = vmatpush.msrb.mxu3 %v1050_v9 }
 0x1f5   : > { %1309 = vmatpush.msrb.mxu0 %v998_v10  ;;  %1329 = vmatpush.msrb.mxu1 %v1014_v12 }
 0x1f6   : > { %1346 = vmatpush.msrb.mxu2 %v1033_v13  ;;  %1366 = vmatpush.msrb.mxu3 %v1049_v14 }
 0x1f7   : > { %1310 = vmatpush.msrb.mxu0 %v997_v15  ;;  %1330 = vmatpush.msrb.mxu1 %v1013_v16 }
 0x1f8   : > { %1347 = vmatpush.msrb.mxu2 %v1032_v19  ;;  %1367 = vmatpush.msrb.mxu3 %v1048_v11  ;;  %v1559_v11 = vld [vmem:[%s2844_s6] ss:$0 sm:$0xff] }
 0x1f9   : > { %1311 = vmatpush.msrb.mxu0 %v996_v22  ;;  %1331 = vmatpush.msrb.mxu1 %v1012_v23 }
 0x1fa   : > { %1348 = vmatpush.msrb.mxu2 %v1031_v24  ;;  %1368 = vmatpush.msrb.mxu3 %v1047_v25 }
 0x1fb   : > { %1312 = vmatpush.msrb.mxu0 %v995_v26  ;;  %1332 = vmatpush.msrb.mxu1 %v1011_v27 }
 0x1fc   : > { %1349 = vmatpush.msrb.mxu2 %v1030_v30  ;;  %1369 = vmatpush.msrb.mxu3 %v1046_v31 }
 0x1fd   : > { %1313 = vmatpush.msrb.mxu0 %v994_v32  ;;  %1333 = vmatpush.msrb.mxu1 %v1010_v33 }
 0x1fe   : > { %1350 = vmatpush.msrb.mxu2 %v1029_v36  ;;  %1370 = vmatpush.msrb.mxu3 %v1045_v37 }
 0x1ff   : > { %1314 = vmatmul.f32.vlgmr.msrb.gmra.mxu0 %v798_v40  ;;  %1334 = vmatmul.f32.vlgmr.msrb.gmra.mxu1 %v799_v41 }
 0x200   : > { %1351 = vmatpush.msrb.mxu2 %v1028_v56  ;;  %1371 = vmatpush.msrb.mxu3 %v1044_v42 }
 0x202   : > { %1352 = vmatpush.msrb.mxu2 %v1027_v45  ;;  %1372 = vmatpush.msrb.mxu3 %v1043_v46 }
 0x204   : > { %1353 = vmatpush.msrb.mxu2 %v1026_v47  ;;  %1373 = vmatpush.msrb.mxu3 %v1042_v48 }
 0x205   : > { %1354 = vmatmul.f32.vlgmr.msrb.gmra.mxu2 %v800_v49  ;;  %1374 = vmatmul.f32.vlgmr.msrb.gmra.mxu3 %v801_v50 }
 0x236   : > { %v1075_v51 = vpop.f32.mrf.mxu0  ;;  %v1095_v52 = vpop.f32.mrf.mxu1 }
 0x237   : > { %v1096_v54 = vadd.f32 %v1095_v52, %v1075_v51 }
 0x240   : > { %v1155_v59 = vpop.f32.mrf.mxu0  ;;  %v1175_v61 = vpop.f32.mrf.mxu1 }
 0x243   : > { %v1115_v53 = vpop.f32.mrf.mxu2  ;;  %v1135_v57 = vpop.f32.mrf.mxu3 }
 0x244   : > { %v1116_v55 = vadd.f32 %v1115_v53, %v1096_v54 }
 0x246   : > { %v1136_v58 = vadd.f32 %v1135_v57, %v1116_v55 }
 0x248   : > { %v1156_v60 = vadd.f32 %v1155_v59, %v1136_v58 }
 0x24a   : > { %v1176_v62 = vadd.f32 %v1175_v61, %v1156_v60 }
 0x24d   : > { %v1195_v63 = vpop.f32.mrf.mxu2  ;;  %v1215_v1 = vpop.f32.mrf.mxu3 }
 0x24e   : > { %v1196_v0 = vadd.f32 %v1195_v63, %v1176_v62 }
 0x250   : > { %v1216_v3 = vadd.f32 %v1215_v1, %v1196_v0 }
 0x25a   : > { %v1235_v2 = vpop.f32.mrf.mxu0  ;;  %v1255_v5 = vpop.f32.mrf.mxu1 }
 0x25b   : > { %v1236_v4 = vadd.f32 %v1235_v2, %v1216_v3 }
 0x25d   : > { %v1256_v7 = vadd.f32 %v1255_v5, %v1236_v4 }
 0x267   : > { %v1275_v6 = vpop.f32.mrf.mxu2  ;;  %v1295_v9 = vpop.f32.mrf.mxu3 }
 0x268   : > { %v1276_v8 = vadd.f32 %v1275_v6, %v1256_v7 }
 0x26a   : > { %v1296_v12 = vadd.f32 %v1295_v9, %v1276_v8 }
 0x27c   : > { %v1315_v10 = vpop.f32.mrf.mxu0  ;;  %v1335_v14 = vpop.f32.mrf.mxu1 }
 0x27d   : > { %v1316_v13 = vadd.f32 %v1315_v10, %v1296_v12 }
 0x27f   : > { %v1336_v15 = vadd.f32 %v1335_v14, %v1316_v13 }
 0x288   : > { %v1355_v16 = vpop.f32.mrf.mxu2  ;;  %v1375_v18 = vpop.f32.mrf.mxu3 }
 0x289   : > { %v1356_v17 = vadd.f32 %v1355_v16, %v1336_v15 }
 0x28b   : > { %v1376_v19 = vadd.f32 %v1375_v18, %v1356_v17 }
 0x28d   : > { %v1378_v21 = vadd.f32 %v1568_v20, %v1376_v19 }
 0x28f   : > { %v1383_v22 = vadd.f32 %v1559_v11, %v1378_v21 }
 0x291   : > { %1384 = vst.msk [vmem:[%s291_s15] sm:$0xff] %vm302_vm0, %v1383_v22 }
 0x292   : > { %1596 = shalt.err (!%p1593_p5)
}
 0x293   : > { %1500 = dma.vmem_to_hbm [thread:$0]  (%p1731_p4), %s1400_s16, 128, %s1402_s17, %s1386_s27  }
 0x294 PF: > { %p1506_p6 = scmp.ge.s32.totalorder %s1647_s29, 2  ;;  %s1413_s20 = sand.u32 1, %s1627_s24  }
 0x295   : > { %s1414_s10 = scalar_lea.sflag [#allocation3], %s1413_s20 }
 0x296   : > { %p1503_p7 = pnand %p1506_p6, %p1738_p8 }
 0x298   : > { %p1504_p9 = pneg %p1503_p7 }
 0x29a   : > { %1622 = dma.done.wait (%p1504_p9), %s1414_s10, 128  }
 0x29b   : > { %1624 = vsyncadd (%p1504_p9), %s1414_s10, 4294967168  ;;  %s20_s29 = sadd.s32 1, %s1647_s29   ;;  %s2848_s24 = smov %s1631_s25 }
 0x29c   : > { %p17_p10 = scmp.ge.s32.totalorder %s20_s29, 4   ;;  %s2849_s25 = smov %s1635_s26 }
 0x29d   : > { %s2850_s26 = smov %s1744_s14  ;;  %s2851_s27 = smov %s1643_s28 }
 0x29e   : > { %s2852_s28 = smov %s2854_s9  ;;  %19 = sbr.rel (!%p17_p10) target bundleno = 4 (0x4), region = 83 }
 0x2a3   :  { %1420 = vsyncpa [#allocation3], 1 }
 0x2a4   :  { %1422 = vsyncpa [#allocation3 + $0x1], 1 }

</bundles_post_ra>
